<compile_context>
chip_gen: v7x
topology: tpu7x:2x2x1
jax: 0.10.0
libtpu: 0.0.40
codegen_flags: <defaults>
</compile_context>

<pallas_src>
import functools

import numpy as np
import jax
import jax.numpy as jnp
from jax.experimental import pallas as pl
from jax.experimental.pallas import tpu as pltpu


# ------------------------------ fused kernel --------------------------------

def fused_simple_cnn_kernel(p1patch_ref, mask2_ref, s_ref,
                            w1_ref, b1_ref, w2_ref, b2_ref,
                            wf1_ref, bf1_ref, wf2t_ref, bf2_ref,
                            o_ref, *, tb, ho1, wo1):
    """SimpleCNN forward for TB samples (rows = TB * ho1 * wo1)."""
    m1 = ho1 * wo1
    rows = tb * m1
    c1 = w2_ref.shape[0] // 9          # conv1 output channels (32)

    # ---- conv1 + ReLU + 2x2 maxpool: ONE MXU matmul --------------------------
    # p1patch_ref: (rows, 16*cin) bf16 patches over each pooled output's 4x4
    # input footprint; w1_ref: (16*cin, 4*c1) with the 4 pool offsets stacked
    # along N (zero rows outside each offset's 3x3 window).
    h1 = jnp.dot(p1patch_ref[...], w1_ref[...],
                 preferred_element_type=jnp.float32)            # (rows, 4*c1)
    h1 = jnp.maximum(h1 + b1_ref[...], 0.0)                     # one bias bcast
    # 2x2 maxpool == max over the 4 pool-offset lane blocks (XLU lane rolls).
    t = jnp.maximum(h1, pltpu.roll(h1, c1, 1))
    t = jnp.maximum(t, pltpu.roll(t, 2 * c1, 1))
    p1 = t[:, :c1]                                              # (rows, c1) f32

    # ---- conv2 im2col via row rolls + precomputed boundary mask -------------
    taps = []
    for kh in range(3):
        for kw in range(3):
            d = (kh - 1) * wo1 + (kw - 1)                       # tap row offset
            taps.append(p1 if d == 0 else pltpu.roll(p1, (-d) % rows, 0))
    patches2 = jnp.concatenate(taps, axis=1) * mask2_ref[...]   # (rows, 9*c1)
    y2 = jnp.dot(patches2.astype(jnp.bfloat16), w2_ref[...],
                 preferred_element_type=jnp.float32)            # (rows, 64)
    y2 = jnp.maximum(y2 + b2_ref[...], 0.0)

    # ---- 2x2 maxpool + AdaptiveAvgPool(1,1) ----------------------------------
    # pair-max along w then h via row rolls; S (tb, rows) selects odd-h/odd-w
    # rows of each sample and folds in the 1/(ho2*wo2) averaging factor.
    mw = jnp.maximum(y2, pltpu.roll(y2, 1, 0))
    mp = jnp.maximum(mw, pltpu.roll(mw, wo1, 0))
    avg = jnp.dot(s_ref[...], mp, preferred_element_type=jnp.float32)  # (tb,64)

    # ---- classifier head (f32) ------------------------------------------------
    h = jnp.maximum(
        jnp.dot(avg, wf1_ref[...], preferred_element_type=jnp.float32)
        + bf1_ref[...], 0.0)                                    # (tb, 64)
    logits = jax.lax.dot_general(                               # (1, tb) row
        wf2t_ref[...], h, (((1,), (1,)), ((), ())),
        preferred_element_type=jnp.float32) + bf2_ref[...]
    o_ref[...] = logits.reshape(1, 1, tb)


# ------------------------------- weight folding ------------------------------

def fold_params(params):
    """One-time prep: fold conv kernels into the kernel's im2col layouts."""
    w1 = params["w_conv1"]                      # (3, 3, cin, c1) HWIO
    cin, c1 = int(w1.shape[2]), int(w1.shape[3])
    w2 = params["w_conv2"]                      # (3, 3, c1, c2)
    c2 = int(w2.shape[3])

    # conv1: K indexed by the 4x4 footprint (t, s, cin); pool offsets (a, b)
    # stacked along N with zero rows for taps outside their 3x3 window.
    w1_np = np.asarray(w1, np.float32)
    w1n = np.zeros((16 * cin, 4 * c1), np.float32)
    for a in range(2):
        for b in range(2):
            for t in range(4):
                for s in range(4):
                    kh, kw = t - a, s - b
                    if 0 <= kh < 3 and 0 <= kw < 3:
                        w1n[(t * 4 + s) * cin:(t * 4 + s + 1) * cin,
                            (a * 2 + b) * c1:(a * 2 + b + 1) * c1] = w1_np[kh, kw]

    return {
        "w1n": jnp.asarray(w1n, jnp.bfloat16),                        # (48, 128)
        "b1n": jnp.tile(params["b_conv1"].astype(jnp.float32),
                        4).reshape(1, 4 * c1),                        # (1, 128)
        "w2f": w2.reshape(9 * c1, c2).astype(jnp.bfloat16),           # (288, 64)
        "b2": params["b_conv2"].reshape(1, c2).astype(jnp.float32),
        "wf1": params["w_fc1"].astype(jnp.float32),                   # (64, 64)
        "bf1": params["b_fc1"].reshape(1, -1).astype(jnp.float32),
        "wf2t": params["w_fc2"].T.astype(jnp.float32),                # (1, 64)
        "bf2": params["b_fc2"].reshape(1, 1).astype(jnp.float32),
    }


# --------------------------------- wrapper -----------------------------------

@functools.partial(jax.jit, static_argnames=("tb",))
def simple_cnn_forward(fparams, x_nchw, *, tb=4):
    n, cin, hh, ww = x_nchw.shape
    if hh % 4 or ww % 4:
        raise ValueError("H and W must be multiples of 4 (two 2x2 maxpools).")
    ho1, wo1 = hh // 2, ww // 2
    ho2, wo2 = ho1 // 2, wo1 // 2
    m1 = ho1 * wo1
    c1 = fparams["w2f"].shape[0] // 9

    # Pad batch to a multiple of tb (padded samples are discarded at the end).
    n_pad = -(-n // tb) * tb
    x = jnp.transpose(x_nchw, (0, 2, 3, 1)).astype(jnp.float32)        # NHWC
    if n_pad != n:
        x = jnp.pad(x, ((0, n_pad - n), (0, 0), (0, 0), (0, 0)))
    n_steps = n_pad // tb
    rows = tb * m1

    # conv1 im2col in the wrapper (pure XLA layout plumbing, ~6 KB/sample bf16):
    # column (t, s, c) = x_pad[2i + t, 2j + s, c] for pooled output (i, j).
    xp = jnp.pad(x, ((0, 0), (1, 1), (1, 1), (0, 0)))                  # SAME pad
    cols = []
    for t in range(4):
        for s in range(4):
            cols.append(xp[:, t:t + 2 * ho1:2, s:s + 2 * wo1:2, :])
    patches1 = jnp.concatenate(cols, axis=-1)                          # (n_pad,ho1,wo1,16*cin)
    patches1 = patches1.reshape(n_pad * m1, 16 * cin).astype(jnp.bfloat16)

    # Precomputed constants: conv2 tap boundary masks and the pool2+avg
    # selection matrix (per-sample segmentation + odd-h/odd-w mask + 1/16).
    rr = np.arange(m1)
    hg, wg = rr // wo1, rr % wo1
    tap_masks = []
    for kh in range(3):
        for kw in range(3):
            ok = ((hg + kh - 1 >= 0) & (hg + kh - 1 < ho1) &
                  (wg + kw - 1 >= 0) & (wg + kw - 1 < wo1))
            tap_masks.append(np.repeat(ok[:, None].astype(np.float32), c1, 1))
    mask2 = np.tile(np.concatenate(tap_masks, axis=1), (tb, 1))        # (rows, 9*c1)

    valid = ((hg % 2 == 1) & (wg % 2 == 1)).astype(np.float32) / float(ho2 * wo2)
    smat = np.zeros((tb, rows), np.float32)
    for b in range(tb):
        smat[b, b * m1:(b + 1) * m1] = valid

    kernel = functools.partial(fused_simple_cnn_kernel, tb=tb, ho1=ho1, wo1=wo1)
    out = pl.pallas_call(
        kernel,
        out_shape=jax.ShapeDtypeStruct((n_steps, 1, tb), jnp.float32),
        grid_spec=pltpu.PrefetchScalarGridSpec(
            num_scalar_prefetch=0,
            grid=(n_steps,),
            in_specs=[
                pl.BlockSpec((rows, 16 * cin), lambda i: (i, 0)),      # patches1
                pl.BlockSpec((rows, 9 * c1), lambda i: (0, 0)),        # mask2
                pl.BlockSpec((tb, rows), lambda i: (0, 0)),            # S
                pl.BlockSpec(fparams["w1n"].shape, lambda i: (0, 0)),
                pl.BlockSpec(fparams["b1n"].shape, lambda i: (0, 0)),
                pl.BlockSpec(fparams["w2f"].shape, lambda i: (0, 0)),
                pl.BlockSpec(fparams["b2"].shape, lambda i: (0, 0)),
                pl.BlockSpec(fparams["wf1"].shape, lambda i: (0, 0)),
                pl.BlockSpec(fparams["bf1"].shape, lambda i: (0, 0)),
                pl.BlockSpec(fparams["wf2t"].shape, lambda i: (0, 0)),
                pl.BlockSpec(fparams["bf2"].shape, lambda i: (0, 0)),
            ],
            out_specs=pl.BlockSpec((1, 1, tb), lambda i: (i, 0, 0)),
        ),
        compiler_params=pltpu.CompilerParams(
            dimension_semantics=("parallel",),
            vmem_limit_bytes=32 * 1024 * 1024),
    )(patches1, jnp.asarray(mask2), jnp.asarray(smat),
      fparams["w1n"], fparams["b1n"], fparams["w2f"], fparams["b2"],
      fparams["wf1"], fparams["bf1"], fparams["wf2t"], fparams["bf2"])
    return out.reshape(n_pad, 1)[:n]


# ------------------------ params & pure-JAX reference ------------------------

def init_params(key):
    keys = jax.random.split(key, 8)

    def uinit(k, shape, fan_in):
        bound = 1.0 / np.sqrt(float(fan_in))
        return jax.random.uniform(k, shape, jnp.float32, -bound, bound)

    return {
        "w_conv1": uinit(keys[0], (3, 3, 3, 32), 3 * 9),
        "b_conv1": uinit(keys[1], (32,), 3 * 9),
        "w_conv2": uinit(keys[2], (3, 3, 32, 64), 32 * 9),
        "b_conv2": uinit(keys[3], (64,), 32 * 9),
        "w_fc1": uinit(keys[4], (64, 64), 64),
        "b_fc1": uinit(keys[5], (64,), 64),
        "w_fc2": uinit(keys[6], (64, 1), 64),
        "b_fc2": uinit(keys[7], (1,), 64),
    }


def reference_forward(params, x_nchw, conv_dtype=jnp.float32):
    x = jnp.transpose(x_nchw, (0, 2, 3, 1)).astype(jnp.float32)

    def conv_block(x, w, b):
        y = jax.lax.conv_general_dilated(
            x.astype(conv_dtype), w.astype(conv_dtype), (1, 1), "SAME",
            dimension_numbers=("NHWC", "HWIO", "NHWC"),
            preferred_element_type=jnp.float32,
            precision=jax.lax.Precision.HIGHEST)
        y = jax.nn.relu(y + b)
        n, hh, ww, c = y.shape
        return y.reshape(n, hh // 2, 2, ww // 2, 2, c).max(axis=(2, 4))

    x = conv_block(x, params["w_conv1"], params["b_conv1"])
    x = conv_block(x, params["w_conv2"], params["b_conv2"])
    x = x.mean(axis=(1, 2))
    h = jax.nn.relu(
        jnp.dot(x, params["w_fc1"], precision=jax.lax.Precision.HIGHEST)
        + params["b_fc1"])
    return jnp.dot(h, params["w_fc2"],
                   precision=jax.lax.Precision.HIGHEST) + params["b_fc2"]


# ---------------------------------- main --------------------------------------

if __name__ == "__main__":
    key = jax.random.PRNGKey(0)
    pkey, xkey = jax.random.split(key)
    params = init_params(pkey)
    fparams = fold_params(params)

    # NCHW input matching nn.Conv2d(3, ...): batch=8, C=3, H=W=16.
    # TB=4 samples per grid step -> grid=(2,), so both v7x TensorCores get work.
    x = jax.random.normal(xkey, (8, 3, 16, 16), jnp.float32)

    out = jax.block_until_ready(simple_cnn_forward(fparams, x, tb=4))
    assert out.shape == (8, 1), out.shape

    # Strict check vs. a reference with matching conv precision (bf16 operands,
    # f32 accumulation), plus a sanity check vs. full f32.
    ref_bf16 = reference_forward(params, x, conv_dtype=jnp.bfloat16)
    ref_f32 = reference_forward(params, x, conv_dtype=jnp.float32)
    assert jnp.allclose(out, ref_bf16, atol=5e-3, rtol=5e-3), (out, ref_bf16)
    assert jnp.allclose(out, ref_f32, atol=5e-2, rtol=5e-2), (out, ref_f32)

    print("KERNEL_OK")
</pallas_src>

<mosaic_0001>
module attributes {stable_mosaic.version = 11 : i64} {
  func.func @fused_simple_cnn_kernel(%arg0: i32, %arg1: memref<256x48xbf16, #tpu.memory_space<vmem>>, %arg2: memref<256x288xf32, #tpu.memory_space<vmem>>, %arg3: memref<4x256xf32, #tpu.memory_space<vmem>>, %arg4: memref<48x128xbf16, #tpu.memory_space<vmem>>, %arg5: memref<1x128xf32, #tpu.memory_space<vmem>>, %arg6: memref<288x64xbf16, #tpu.memory_space<vmem>>, %arg7: memref<1x64xf32, #tpu.memory_space<vmem>>, %arg8: memref<64x64xf32, #tpu.memory_space<vmem>>, %arg9: memref<1x64xf32, #tpu.memory_space<vmem>>, %arg10: memref<1x64xf32, #tpu.memory_space<vmem>>, %arg11: memref<1x1xf32, #tpu.memory_space<vmem>>, %arg12: memref<1x1x4xf32, #tpu.memory_space<vmem>>) attributes {dimension_semantics = [#tpu.dimension_semantics<parallel>], iteration_bounds = array<i64: 2>, scalar_prefetch = 0 : i64, scratch_operands = 0 : i64, tpu.core_type = #tpu.core_type<tc>, window_params = [{transform_indices = @transform_0, window_bounds = array<i64: 256, 48>}, {pipeline_mode = #tpu.pipeline_mode<synchronous>, transform_indices = @transform_1, window_bounds = array<i64: 256, 288>}, {pipeline_mode = #tpu.pipeline_mode<synchronous>, transform_indices = @transform_2, window_bounds = array<i64: 4, 256>}, {pipeline_mode = #tpu.pipeline_mode<synchronous>, transform_indices = @transform_3, window_bounds = array<i64: 48, 128>}, {pipeline_mode = #tpu.pipeline_mode<synchronous>, transform_indices = @transform_4, window_bounds = array<i64: 1, 128>}, {pipeline_mode = #tpu.pipeline_mode<synchronous>, transform_indices = @transform_5, window_bounds = array<i64: 288, 64>}, {pipeline_mode = #tpu.pipeline_mode<synchronous>, transform_indices = @transform_6, window_bounds = array<i64: 1, 64>}, {pipeline_mode = #tpu.pipeline_mode<synchronous>, transform_indices = @transform_7, window_bounds = array<i64: 64, 64>}, {pipeline_mode = #tpu.pipeline_mode<synchronous>, transform_indices = @transform_8, window_bounds = array<i64: 1, 64>}, {pipeline_mode = #tpu.pipeline_mode<synchronous>, transform_indices = @transform_9, window_bounds = array<i64: 1, 64>}, {pipeline_mode = #tpu.pipeline_mode<synchronous>, transform_indices = @transform_10, window_bounds = array<i64: 1, 1>}, {transform_indices = @transform_11, window_bounds = array<i64: 1, 1, 4>}]} {
    %c0 = arith.constant 0 : index
    %c0_0 = arith.constant 0 : index
    %0 = vector.load %arg1[%c0, %c0_0] : memref<256x48xbf16, #tpu.memory_space<vmem>>, vector<256x48xbf16>
    %c0_1 = arith.constant 0 : index
    %c0_2 = arith.constant 0 : index
    %1 = vector.load %arg4[%c0_1, %c0_2] : memref<48x128xbf16, #tpu.memory_space<vmem>>, vector<48x128xbf16>
    %cst = arith.constant dense<0.000000e+00> : vector<256x128xf32>
    %2 = tpu.matmul %0, %1, %cst {dimension_numbers = #tpu.dot_dimension_numbers<[1], [0], [0], [1], [0, 0, 1, 1], [], []>} : vector<256x48xbf16>, vector<48x128xbf16>, vector<256x128xf32> -> vector<256x128xf32>
    %c0_3 = arith.constant 0 : index
    %c0_4 = arith.constant 0 : index
    %3 = vector.load %arg5[%c0_3, %c0_4] : memref<1x128xf32, #tpu.memory_space<vmem>>, vector<1x128xf32>
    %4 = vector.broadcast %3 : vector<1x128xf32> to vector<256x128xf32>
    %5 = arith.addf %2, %4 : vector<256x128xf32>
    %cst_5 = arith.constant 0.000000e+00 : f32
    %6 = vector.broadcast %cst_5 : f32 to vector<256x128xf32>
    %7 = arith.maximumf %5, %6 : vector<256x128xf32>
    %c32_i32 = arith.constant 32 : i32
    %8 = tpu.dynamic_rotate %7 by %c32_i32 dim 1 : vector<256x128xf32>, i32 -> vector<256x128xf32>
    %9 = arith.maximumf %7, %8 : vector<256x128xf32>
    %c64_i32 = arith.constant 64 : i32
    %10 = tpu.dynamic_rotate %9 by %c64_i32 dim 1 : vector<256x128xf32>, i32 -> vector<256x128xf32>
    %11 = arith.maximumf %9, %10 : vector<256x128xf32>
    %12 = vector.extract_strided_slice %11 {offsets = [0, 0], sizes = [256, 32], strides = [1, 1]} : vector<256x128xf32> to vector<256x32xf32>
    %c9_i32 = arith.constant 9 : i32
    %13 = tpu.dynamic_rotate %12 by %c9_i32 dim 0 : vector<256x32xf32>, i32 -> vector<256x32xf32>
    %c8_i32 = arith.constant 8 : i32
    %14 = tpu.dynamic_rotate %12 by %c8_i32 dim 0 : vector<256x32xf32>, i32 -> vector<256x32xf32>
    %c7_i32 = arith.constant 7 : i32
    %15 = tpu.dynamic_rotate %12 by %c7_i32 dim 0 : vector<256x32xf32>, i32 -> vector<256x32xf32>
    %c1_i32 = arith.constant 1 : i32
    %16 = tpu.dynamic_rotate %12 by %c1_i32 dim 0 : vector<256x32xf32>, i32 -> vector<256x32xf32>
    %c255_i32 = arith.constant 255 : i32
    %17 = tpu.dynamic_rotate %12 by %c255_i32 dim 0 : vector<256x32xf32>, i32 -> vector<256x32xf32>
    %c249_i32 = arith.constant 249 : i32
    %18 = tpu.dynamic_rotate %12 by %c249_i32 dim 0 : vector<256x32xf32>, i32 -> vector<256x32xf32>
    %c248_i32 = arith.constant 248 : i32
    %19 = tpu.dynamic_rotate %12 by %c248_i32 dim 0 : vector<256x32xf32>, i32 -> vector<256x32xf32>
    %c247_i32 = arith.constant 247 : i32
    %20 = tpu.dynamic_rotate %12 by %c247_i32 dim 0 : vector<256x32xf32>, i32 -> vector<256x32xf32>
    %21 = tpu.concatenate %13, %14, %15, %16, %12, %17, %18, %19, %20 in 1 : vector<256x32xf32>, vector<256x32xf32>, vector<256x32xf32>, vector<256x32xf32>, vector<256x32xf32>, vector<256x32xf32>, vector<256x32xf32>, vector<256x32xf32>, vector<256x32xf32> -> vector<256x288xf32>
    %c0_6 = arith.constant 0 : index
    %c0_7 = arith.constant 0 : index
    %22 = vector.load %arg2[%c0_6, %c0_7] : memref<256x288xf32, #tpu.memory_space<vmem>>, vector<256x288xf32>
    %23 = arith.mulf %21, %22 : vector<256x288xf32>
    %24 = arith.truncf %23 : vector<256x288xf32> to vector<256x288xbf16>
    %c0_8 = arith.constant 0 : index
    %c0_9 = arith.constant 0 : index
    %25 = vector.load %arg6[%c0_8, %c0_9] : memref<288x64xbf16, #tpu.memory_space<vmem>>, vector<288x64xbf16>
    %cst_10 = arith.constant dense<0.000000e+00> : vector<256x64xf32>
    %26 = tpu.matmul %24, %25, %cst_10 {dimension_numbers = #tpu.dot_dimension_numbers<[1], [0], [0], [1], [0, 0, 1, 1], [], []>} : vector<256x288xbf16>, vector<288x64xbf16>, vector<256x64xf32> -> vector<256x64xf32>
    %c0_11 = arith.constant 0 : index
    %c0_12 = arith.constant 0 : index
    %27 = vector.load %arg7[%c0_11, %c0_12] : memref<1x64xf32, #tpu.memory_space<vmem>>, vector<1x64xf32>
    %28 = vector.broadcast %27 : vector<1x64xf32> to vector<256x64xf32>
    %29 = arith.addf %26, %28 : vector<256x64xf32>
    %cst_13 = arith.constant 0.000000e+00 : f32
    %30 = vector.broadcast %cst_13 : f32 to vector<256x64xf32>
    %31 = arith.maximumf %29, %30 : vector<256x64xf32>
    %c1_i32_14 = arith.constant 1 : i32
    %32 = tpu.dynamic_rotate %31 by %c1_i32_14 dim 0 : vector<256x64xf32>, i32 -> vector<256x64xf32>
    %33 = arith.maximumf %31, %32 : vector<256x64xf32>
    %c8_i32_15 = arith.constant 8 : i32
    %34 = tpu.dynamic_rotate %33 by %c8_i32_15 dim 0 : vector<256x64xf32>, i32 -> vector<256x64xf32>
    %35 = arith.maximumf %33, %34 : vector<256x64xf32>
    %c0_16 = arith.constant 0 : index
    %c0_17 = arith.constant 0 : index
    %36 = vector.load %arg3[%c0_16, %c0_17] : memref<4x256xf32, #tpu.memory_space<vmem>>, vector<4x256xf32>
    %cst_18 = arith.constant dense<0.000000e+00> : vector<4x64xf32>
    %37 = tpu.matmul %36, %35, %cst_18 {dimension_numbers = #tpu.dot_dimension_numbers<[1], [0], [0], [1], [0, 0, 1, 1], [], []>} : vector<4x256xf32>, vector<256x64xf32>, vector<4x64xf32> -> vector<4x64xf32>
    %c0_19 = arith.constant 0 : index
    %c0_20 = arith.constant 0 : index
    %38 = vector.load %arg8[%c0_19, %c0_20] : memref<64x64xf32, #tpu.memory_space<vmem>>, vector<64x64xf32>
    %cst_21 = arith.constant dense<0.000000e+00> : vector<4x64xf32>
    %39 = tpu.matmul %37, %38, %cst_21 {dimension_numbers = #tpu.dot_dimension_numbers<[1], [0], [0], [1], [0, 0, 1, 1], [], []>} : vector<4x64xf32>, vector<64x64xf32>, vector<4x64xf32> -> vector<4x64xf32>
    %c0_22 = arith.constant 0 : index
    %c0_23 = arith.constant 0 : index
    %40 = vector.load %arg9[%c0_22, %c0_23] : memref<1x64xf32, #tpu.memory_space<vmem>>, vector<1x64xf32>
    %41 = vector.broadcast %40 : vector<1x64xf32> to vector<4x64xf32>
    %42 = arith.addf %39, %41 : vector<4x64xf32>
    %cst_24 = arith.constant 0.000000e+00 : f32
    %43 = vector.broadcast %cst_24 : f32 to vector<4x64xf32>
    %44 = arith.maximumf %42, %43 : vector<4x64xf32>
    %c0_25 = arith.constant 0 : index
    %c0_26 = arith.constant 0 : index
    %45 = vector.load %arg10[%c0_25, %c0_26] : memref<1x64xf32, #tpu.memory_space<vmem>>, vector<1x64xf32>
    %cst_27 = arith.constant dense<0.000000e+00> : vector<1x4xf32>
    %46 = tpu.matmul %45, %44, %cst_27 {dimension_numbers = #tpu.dot_dimension_numbers<[1], [1], [0], [0], [0, 0, 1, 0], [], []>} : vector<1x64xf32>, vector<4x64xf32>, vector<1x4xf32> -> vector<1x4xf32>
    %c0_28 = arith.constant 0 : index
    %c0_29 = arith.constant 0 : index
    %47 = vector.load %arg11[%c0_28, %c0_29] : memref<1x1xf32, #tpu.memory_space<vmem>>, vector<1x1xf32>
    %48 = vector.broadcast %47 : vector<1x1xf32> to vector<1x4xf32>
    %49 = arith.addf %46, %48 : vector<1x4xf32>
    %50 = vector.shape_cast %49 : vector<1x4xf32> to vector<1x1x4xf32>
    %c0_30 = arith.constant 0 : index
    %c0_31 = arith.constant 0 : index
    %c0_32 = arith.constant 0 : index
    %51 = vector.load %arg12[%c0_30, %c0_31, %c0_32] : memref<1x1x4xf32, #tpu.memory_space<vmem>>, vector<1x1x4xf32>
    tpu.vector_store %arg12[%c0_30, %c0_31, %c0_32], %50 {strides = array<i32>} : memref<1x1x4xf32, #tpu.memory_space<vmem>>, vector<1x1x4xf32>,
    return
  }
  func.func @transform_0(%arg0: i32) -> (i32, i32) {
    %c0_i32 = arith.constant 0 : i32
    %c0_i32_0 = arith.constant 0 : i32
    return %arg0, %c0_i32 : i32, i32
  }
  func.func @transform_1(%arg0: i32) -> (i32, i32) {
    %c0_i32 = arith.constant 0 : i32
    %c0_i32_0 = arith.constant 0 : i32
    %c0_i32_1 = arith.constant 0 : i32
    return %c0_i32, %c0_i32_0 : i32, i32
  }
  func.func @transform_2(%arg0: i32) -> (i32, i32) {
    %c0_i32 = arith.constant 0 : i32
    %c0_i32_0 = arith.constant 0 : i32
    %c0_i32_1 = arith.constant 0 : i32
    return %c0_i32, %c0_i32_0 : i32, i32
  }
  func.func @transform_3(%arg0: i32) -> (i32, i32) {
    %c0_i32 = arith.constant 0 : i32
    %c0_i32_0 = arith.constant 0 : i32
    %c0_i32_1 = arith.constant 0 : i32
    return %c0_i32, %c0_i32_0 : i32, i32
  }
  func.func @transform_4(%arg0: i32) -> (i32, i32) {
    %c0_i32 = arith.constant 0 : i32
    %c0_i32_0 = arith.constant 0 : i32
    %c0_i32_1 = arith.constant 0 : i32
    return %c0_i32, %c0_i32_0 : i32, i32
  }
  func.func @transform_5(%arg0: i32) -> (i32, i32) {
    %c0_i32 = arith.constant 0 : i32
    %c0_i32_0 = arith.constant 0 : i32
    %c0_i32_1 = arith.constant 0 : i32
    return %c0_i32, %c0_i32_0 : i32, i32
  }
  func.func @transform_6(%arg0: i32) -> (i32, i32) {
    %c0_i32 = arith.constant 0 : i32
    %c0_i32_0 = arith.constant 0 : i32
    %c0_i32_1 = arith.constant 0 : i32
    return %c0_i32, %c0_i32_0 : i32, i32
  }
  func.func @transform_7(%arg0: i32) -> (i32, i32) {
    %c0_i32 = arith.constant 0 : i32
    %c0_i32_0 = arith.constant 0 : i32
    %c0_i32_1 = arith.constant 0 : i32
    return %c0_i32, %c0_i32_0 : i32, i32
  }
  func.func @transform_8(%arg0: i32) -> (i32, i32) {
    %c0_i32 = arith.constant 0 : i32
    %c0_i32_0 = arith.constant 0 : i32
    %c0_i32_1 = arith.constant 0 : i32
    return %c0_i32, %c0_i32_0 : i32, i32
  }
  func.func @transform_9(%arg0: i32) -> (i32, i32) {
    %c0_i32 = arith.constant 0 : i32
    %c0_i32_0 = arith.constant 0 : i32
    %c0_i32_1 = arith.constant 0 : i32
    return %c0_i32, %c0_i32_0 : i32, i32
  }
  func.func @transform_10(%arg0: i32) -> (i32, i32) {
    %c0_i32 = arith.constant 0 : i32
    %c0_i32_0 = arith.constant 0 : i32
    %c0_i32_1 = arith.constant 0 : i32
    return %c0_i32, %c0_i32_0 : i32, i32
  }
  func.func @transform_11(%arg0: i32) -> (i32, i32, i32) {
    %c0_i32 = arith.constant 0 : i32
    %c0_i32_0 = arith.constant 0 : i32
    %c0_i32_1 = arith.constant 0 : i32
    return %arg0, %c0_i32, %c0_i32_0 : i32, i32, i32
  }
}

</mosaic_0001>

<bundles_post_ra>
// kernel: simple_cnn_forward.1
= control target key start
LH: loop header
LB: loop body
LE: loop exit
PB: predicated region body
PF: predicated region fallthrough
CT: control target
= control target key end

     0   :  { %s3737_s19 = smov 0   ;;  %s6426_s0 = inlined_call_operand.vmem [shape: bf16[512,48], index: 0, kind: input, shape index: {}]   ;;  %s6427_s1 = inlined_call_operand.vmem [shape: f32[256,288], index: 1, kind: input, shape index: {}]   ;;  %s6428_s2 = inlined_call_operand.vmem [shape: f32[4,256], index: 2, kind: input, shape index: {}]   ;;  %s6429_s3 = inlined_call_operand.vmem [shape: bf16[48,128], index: 3, kind: input, shape index: {}]   ;;  %s6430_s4 = inlined_call_operand.vmem [shape: f32[1,128], index: 4, kind: input, shape index: {}]   ;;  %s6431_s5 = inlined_call_operand.vmem [shape: bf16[288,64], index: 5, kind: input, shape index: {}]   ;;  %s6432_s6 = inlined_call_operand.vmem [shape: f32[1,64], index: 6, kind: input, shape index: {}]   ;;  %s6433_s7 = inlined_call_operand.vmem [shape: f32[64,64], index: 7, kind: input, shape index: {}]   ;;  %s6434_s8 = inlined_call_operand.vmem [shape: f32[1,64], index: 8, kind: input, shape index: {}]   ;;  %s6435_s9 = inlined_call_operand.vmem [shape: f32[1,64], index: 9, kind: input, shape index: {}]   ;;  %s6436_s10 = inlined_call_operand.<no memory space> [shape: f32[1,1], index: 10, kind: input, shape index: {}]   ;;  %s6437_s11 = inlined_call_operand.vmem [shape: f32[2,1,4], index: 11, kind: output, shape index: {}]  }
   0x1   :  { %v16_v0 = vstv %s6436_s10 }
   0x2   :  { %17 = vst [vmem:[#allocation2] sm:$0x1] %v16_v0 }
   0x3 LB: > { %s3743_s20 = sadd.s32 4294967295, %s3665_s19   ;;  %p3188_p0 = scmp.ge.s32.totalorder %s3665_s19, 1  ;;  %s3665_s19 = sphi %s3737_s19, %s23_s19  }
   0x4   : > { %p340_p1 = scmp.lt.s32.totalorder %s3665_s19, 3 }
   0x6   : > { %p341_p2 = pnand %p3188_p0, %p340_p1 }
   0x8   : > { %344 = sbr.rel (%p341_p2) target bundleno = 1898 (0x76a), region = 64 }
   0xf   : > { %v3621_v1 = vld [vmem:[%s6429_s3] sm:$0xff]   ;;  %s3189_s10 = sshll.u32 %s3743_s20, 5  ;;  %v3622_v2 = vld [vmem:[%s6429_s3 + $0x8] sm:$0xff]   ;;  %v3623_v3 = vld [vmem:[%s6429_s3 + $0x10] sm:$0xff]   ;;  %vm531_vm0 = vcmask 392192   ;;  %s3667_s14 = smov 32  }
  0x10   : > { %p379_p3 = scmp.lt.s32.totalorder %s3189_s10, 63  ;;  %3463 = vmatprep.subr.bf16.mxu0 %v3621_v1  ;;  %v3797_v20 = vld [vmem:[%s6430_s4] ss:$0 sm:$0xff]  ;;  %s3668_s15 = smov 64   ;;  %vm1769_vm3 = vcmask 261120   ;;  %vm1802_vm4 = vcmask 523264  }
  0x11   : > { %3464 = vmatpush3.bf16.msra.mxu0 %v3621_v1  ;;  %s3669_s22 = smov 96   ;;  %vm1835_vm5 = vcmask 785408   ;;  %vm3671_vm6 = vmmov 0   ;;  %p384_p4 = scmp.lt.s32.totalorder %s3743_s20, 1  ;;  %vm3135_vm7 = vcmask 24576  }
  0x12   : > { %s6817_s10 = smov (!%p379_p3, %s3189_s10), 63  ;;  %3465 = vmatprep.subr.bf16.mxu0 %v3622_v2 }
  0x13   : > { %s3190_s27 = sshll.u32 %s6817_s10, 2  ;;  %s6819_s20 = smov (!%p384_p4, %s3743_s20), 1 }
  0x14   : > { %s3760_s30 = scalar_lea.vmem %s6426_s0, %s3190_s27  ;;  %s386_s24 = scalar_lea.vmem %s6437_s11, %s6819_s20 }
  0x15   : > { %3466 = vmatpush3.bf16.msra.mxu0 %v3622_v2  ;;  %v3624_v4 = vld [vmem:[%s3760_s30] sm:$0xff]   ;;  %v3625_v5 = vld [vmem:[%s3760_s30 + $0x8] sm:$0xff]   ;;  %v3626_v6 = vld [vmem:[%s3760_s30 + $0x10] sm:$0xff]  }
  0x16   : > { %3467 = vmatprep.subr.bf16.mxu0 %v3623_v3  ;;  %3469 = vmatprep.mubr.msk.bf16.mxu0 %vm531_vm0, %v3624_v4  ;;  %v3627_v7 = vld [vmem:[%s3760_s30 + $0x18] sm:$0xff]   ;;  %v3628_v8 = vld [vmem:[%s3760_s30 + $0x20] sm:$0xff]   ;;  %v3629_v9 = vld [vmem:[%s3760_s30 + $0x28] sm:$0xff]  }
  0x17   : > { %v3630_v10 = vld [vmem:[%s3760_s30 + $0x30] sm:$0xff]   ;;  %v3631_v11 = vld [vmem:[%s3760_s30 + $0x38] sm:$0xff]   ;;  %v3632_v12 = vld [vmem:[%s3760_s30 + $0x40] sm:$0xff]  }
  0x18   : > { %v3633_v13 = vld [vmem:[%s3760_s30 + $0x48] sm:$0xff]   ;;  %v3634_v14 = vld [vmem:[%s3760_s30 + $0x50] sm:$0xff]   ;;  %v3635_v15 = vld [vmem:[%s3760_s30 + $0x58] sm:$0xff]  }
  0x19   : > { %3468 = vmatpush3.bf16.msra.mxu0 %v3623_v3  ;;  %v3636_v16 = vld [vmem:[%s3760_s30 + $0x60] sm:$0xff]   ;;  %v3637_v17 = vld [vmem:[%s3760_s30 + $0x68] sm:$0xff]   ;;  %v3638_v18 = vld [vmem:[%s3760_s30 + $0x70] sm:$0xff]  }
  0x1a   : > { %v3639_v19 = vld [vmem:[%s3760_s30 + $0x78] sm:$0xff]  }
  0x1c   : > { %3470 = vmatmul.mubr.msk.bf16.vlgmr.msra.gmra.mrb[0].mxu0 %vm531_vm0, %v3625_v5 }
  0x1d   : > { %3473 = vmatprep.mubr.msk.bf16.mxu0 %vm531_vm0, %v3626_v6 }
  0x24   : > { %3474 = vmatmul.mubr.msk.bf16.gmra.mrb[4].mxu0 %vm531_vm0, %v3627_v7 }
  0x25   : > { %3477 = vmatprep.mubr.msk.bf16.mxu0 %vm531_vm0, %v3628_v8 }
  0x2c   : > { %3478 = vmatmul.mubr.msk.bf16.gmra.mrb[8].mxu0 %vm531_vm0, %v3629_v9 }
  0x2d   : > { %3481 = vmatprep.mubr.msk.bf16.mxu0 %vm531_vm0, %v3630_v10 }
  0x34   : > { %3482 = vmatmul.mubr.msk.bf16.gmra.mrb[12].mxu0 %vm531_vm0, %v3631_v11 }
  0x35   : > { %3485 = vmatprep.mubr.msk.bf16.mxu0 %vm531_vm0, %v3632_v12 }
  0x3c   : > { %3486 = vmatmul.mubr.msk.bf16.gmra.mrb[16].mxu0 %vm531_vm0, %v3633_v13 }
  0x3d   : > { %3489 = vmatprep.mubr.msk.bf16.mxu0 %vm531_vm0, %v3634_v14 }
  0x44   : > { %3490 = vmatmul.mubr.msk.bf16.gmra.mrb[20].mxu0 %vm531_vm0, %v3635_v15 }
  0x45   : > { %3493 = vmatprep.mubr.msk.bf16.mxu0 %vm531_vm0, %v3636_v16 }
  0x4c   : > { %3494 = vmatmul.mubr.msk.bf16.gmra.mrb[24].mxu0 %vm531_vm0, %v3637_v17 }
  0x4d   : > { %3497 = vmatprep.mubr.msk.bf16.mxu0 %vm531_vm0, %v3638_v18 }
  0x54   : > { %3498 = vmatmul.mubr.msk.bf16.gmra.mrb[28].mxu0 %vm531_vm0, %v3639_v19 }
  0xef   : > { %v3471_v21 = vpop.f32.mrb[0].mxu0 }
  0xf0   : > { %v3800_v22 = vadd.f32 %v3471_v21, %v3797_v20  ;;  %v614_v23 = vpop.f32.mrb[1].mxu0 }
  0xf1   : > { %v3803_v24 = vadd.f32 %v3797_v20, %v614_v23  ;;  %v3472_v25 = vpop.f32.mrb[2].mxu0 }
  0xf2   : > { %v743_v26 = vmax.f32 %v3800_v22, 0.0  ;;  %v617_v27 = vpop.f32.mrb[3].mxu0  ;;  %v3808_v29 = vadd.f32 %v3472_v25, %v3797_v20 }
  0xf3   : > { %v741_v28 = vmax.f32 %v3803_v24, 0.0  ;;  %v3818_v31 = vadd.f32 %v3797_v20, %v617_v27 }
  0xf4   : > { %777 = vrot.lane.b32.xlu1 %v743_v26, %s3667_s14  ;;  %v744_v30 = vmax.f32 %v3808_v29, 0.0 }
  0xf5   : > { %773 = vrot.lane.b32.xlu0 %v741_v28, %s3667_s14  ;;  %v742_v40 = vmax.f32 %v3818_v31, 0.0 }
  0xf7   : > { %v3475_v32 = vpop.f32.mrb[4].mxu0 }
  0xf8   : > { %v3821_v33 = vadd.f32 %v3475_v32, %v3797_v20  ;;  %v630_v34 = vpop.f32.mrb[5].mxu0 }
  0xf9   : > { %779 = vrot.lane.b32.xlu0 %v744_v30, %s3667_s14  ;;  %v3827_v35 = vadd.f32 %v3797_v20, %v630_v34  ;;  %v3476_v36 = vpop.f32.mrb[6].mxu0 }
  0xfa   : > { %v747_v37 = vmax.f32 %v3821_v33, 0.0  ;;  %v3831_v38 = vadd.f32 %v3476_v36, %v3797_v20  ;;  %v633_v39 = vpop.f32.mrb[7].mxu0 }
  0xfb   : > { %v745_v41 = vmax.f32 %v3827_v35, 0.0  ;;  %v3843_v43 = vadd.f32 %v3797_v20, %v633_v39 }
  0xfc   : > { %785 = vrot.lane.b32.xlu1 %v747_v37, %s3667_s14  ;;  %v748_v42 = vmax.f32 %v3831_v38, 0.0 }
  0xfd   : > { %775 = vrot.lane.b32.xlu0 %v742_v40, %s3667_s14  ;;  %v746_v47 = vmax.f32 %v3843_v43, 0.0 }
  0xff   : > { %v3479_v44 = vpop.f32.mrb[8].mxu0 }
 0x100   : > { %v3846_v45 = vadd.f32 %v3479_v44, %v3797_v20  ;;  %781 = vrot.lane.b32.xlu1 %v745_v41, %s3667_s14  ;;  %v646_v46 = vpop.f32.mrb[9].mxu0 }
 0x101   : > { %787 = vrot.lane.b32.xlu0 %v748_v42, %s3667_s14  ;;  %v3856_v48 = vadd.f32 %v3797_v20, %v646_v46  ;;  %v3480_v49 = vpop.f32.mrb[10].mxu0 }
 0x102   : > { %v751_v50 = vmax.f32 %v3846_v45, 0.0  ;;  %v3860_v51 = vadd.f32 %v3480_v49, %v3797_v20  ;;  %v649_v52 = vpop.f32.mrb[11].mxu0 }
 0x103   : > { %v749_v53 = vmax.f32 %v3856_v48, 0.0  ;;  %v3871_v55 = vadd.f32 %v3797_v20, %v649_v52 }
 0x104   : > { %793 = vrot.lane.b32.xlu1 %v751_v50, %s3667_s14  ;;  %v752_v54 = vmax.f32 %v3860_v51, 0.0 }
 0x105   : > { %783 = vrot.lane.b32.xlu0 %v746_v47, %s3667_s14  ;;  %v750_v59 = vmax.f32 %v3871_v55, 0.0 }
 0x107   : > { %v3483_v56 = vpop.f32.mrb[12].mxu0 }
 0x108   : > { %v3874_v57 = vadd.f32 %v3483_v56, %v3797_v20  ;;  %789 = vrot.lane.b32.xlu1 %v749_v53, %s3667_s14  ;;  %v662_v58 = vpop.f32.mrb[13].mxu0 }
 0x109   : > { %795 = vrot.lane.b32.xlu0 %v752_v54, %s3667_s14  ;;  %v3884_v60 = vadd.f32 %v3797_v20, %v662_v58  ;;  %v3484_v61 = vpop.f32.mrb[14].mxu0 }
 0x10a   : > { %v755_v62 = vmax.f32 %v3874_v57, 0.0  ;;  %v3888_v63 = vadd.f32 %v3484_v61, %v3797_v20  ;;  %v665_v0 = vpop.f32.mrb[15].mxu0 }
 0x10b   : > { %v753_v1 = vmax.f32 %v3884_v60, 0.0  ;;  %v3899_v3 = vadd.f32 %v3797_v20, %v665_v0 }
 0x10c   : > { %801 = vrot.lane.b32.xlu1 %v755_v62, %s3667_s14  ;;  %v756_v2 = vmax.f32 %v3888_v63, 0.0 }
 0x10d   : > { %791 = vrot.lane.b32.xlu0 %v750_v59, %s3667_s14  ;;  %v754_v6 = vmax.f32 %v3899_v3, 0.0 }
 0x10f   : > { %v3487_v4 = vpop.f32.mrb[16].mxu0 }
 0x110   : > { %v678_v5 = vpop.f32.mrb[17].mxu0  ;;  %797 = vrot.lane.b32.xlu1 %v753_v1, %s3667_s14  ;;  %v3906_v7 = vadd.f32 %v3487_v4, %v3797_v20 }
 0x111   : > { %v3909_v8 = vadd.f32 %v3797_v20, %v678_v5  ;;  %803 = vrot.lane.b32.xlu0 %v756_v2, %s3667_s14  ;;  %v3488_v9 = vpop.f32.mrb[18].mxu0 }
 0x112   : > { %v3915_v10 = vadd.f32 %v3488_v9, %v3797_v20  ;;  %v681_v11 = vpop.f32.mrb[19].mxu0  ;;  %v759_v13 = vmax.f32 %v3906_v7, 0.0 }
 0x113   : > { %v757_v12 = vmax.f32 %v3909_v8, 0.0  ;;  %v3927_v15 = vadd.f32 %v3797_v20, %v681_v11 }
 0x114   : > { %v760_v14 = vmax.f32 %v3915_v10, 0.0 }
 0x115   : > { %805 = vrot.lane.b32.xlu1 %v757_v12, %s3667_s14  ;;  %799 = vrot.lane.b32.xlu0 %v754_v6, %s3667_s14  ;;  %v758_v19 = vmax.f32 %v3927_v15, 0.0 }
 0x117   : > { %v3491_v16 = vpop.f32.mrb[20].mxu0 }
 0x118   : > { %v3930_v17 = vadd.f32 %v3491_v16, %v3797_v20  ;;  %v694_v18 = vpop.f32.mrb[21].mxu0 }
 0x119   : > { %811 = vrot.lane.b32.xlu1 %v760_v14, %s3667_s14  ;;  %809 = vrot.lane.b32.xlu0 %v759_v13, %s3667_s14  ;;  %v3940_v21 = vadd.f32 %v3797_v20, %v694_v18  ;;  %v3492_v23 = vpop.f32.mrb[22].mxu0 }
 0x11a   : > { %v763_v25 = vmax.f32 %v3930_v17, 0.0  ;;  %v3944_v27 = vadd.f32 %v3492_v23, %v3797_v20  ;;  %v697_v32 = vpop.f32.mrb[23].mxu0 }
 0x11b   : > { %v761_v34 = vmax.f32 %v3940_v21, 0.0  ;;  %v3955_v39 = vadd.f32 %v3797_v20, %v697_v32 }
 0x11c   : > { %v764_v36 = vmax.f32 %v3944_v27, 0.0 }
 0x11d   : > { %807 = vrot.lane.b32.xlu1 %v758_v19, %s3667_s14  ;;  %817 = vrot.lane.b32.xlu0 %v763_v25, %s3667_s14  ;;  %v6439_v52 = vmax.f32 %v3955_v39, 0.0 }
 0x11f   : > { %v3495_v44 = vpop.f32.mrb[24].mxu0 }
 0x120   : > { %v3958_v46 = vadd.f32 %v3495_v44, %v3797_v20  ;;  %v710_v49 = vpop.f32.mrb[25].mxu0 }
 0x121   : > { %819 = vrot.lane.b32.xlu1 %v764_v36, %s3667_s14  ;;  %813 = vrot.lane.b32.xlu0 %v761_v34, %s3667_s14  ;;  %v3968_v56 = vadd.f32 %v3797_v20, %v710_v49  ;;  %v3496_v58 = vpop.f32.mrb[26].mxu0 }
 0x122   : > { %v6438_v61 = vmax.f32 %v3958_v46, 0.0  ;;  %v3972_v0 = vadd.f32 %v3496_v58, %v3797_v20  ;;  %v713_v4 = vpop.f32.mrb[27].mxu0  ;;  %v6505_v27 = vmax.f32 %v3958_v46, 0.0 }
 0x123   : > { %v765_v5 = vmax.f32 %v3968_v56, 0.0  ;;  %v3983_v11 = vadd.f32 %v3797_v20, %v713_v4 }
 0x124   : > { %v6440_v9 = vmax.f32 %v3972_v0, 0.0 }
 0x125   : > { %815 = vrot.lane.b32.xlu1 %v6439_v52, %s3667_s14  ;;  %825 = vrot.lane.b32.xlu0 %v6438_v61, %s3667_s14  ;;  %v766_v32 = vmax.f32 %v3983_v11, 0.0 }
 0x127   : > { %v3499_v16 = vpop.f32.mrb[28].mxu0 }
 0x128   : > { %v3986_v18 = vadd.f32 %v3499_v16, %v3797_v20  ;;  %v726_v23 = vpop.f32.mrb[29].mxu0 }
 0x129   : > { %827 = vrot.lane.b32.xlu1 %v6440_v9, %s3667_s14  ;;  %821 = vrot.lane.b32.xlu0 %v765_v5, %s3667_s14  ;;  %v3996_v44 = vadd.f32 %v3797_v20, %v726_v23  ;;  %v3500_v49 = vpop.f32.mrb[30].mxu0 }
 0x12a   : > { %v6442_v58 = vmax.f32 %v3986_v18, 0.0  ;;  %v4000_v4 = vadd.f32 %v3500_v49, %v3797_v20  ;;  %v729_v16 = vpop.f32.mrb[31].mxu0 }
 0x12b   : > { %v4003_v61 = vadd.f32 %v3797_v20, %v729_v16  ;;  %v6443_v52 = vmax.f32 %v3996_v44, 0.0 }
 0x12c   : > { %v6441_v9 = vmax.f32 %v4000_v4, 0.0 }
 0x12d   : > { %823 = vrot.lane.b32.xlu1 %v766_v32, %s3667_s14  ;;  %833 = vrot.lane.b32.xlu0 %v6442_v58, %s3667_s14  ;;  %v770_v23 = vmax.f32 %v4003_v61, 0.0  ;;  %v997_v61 = vlaneseq }
 0x131   : > { %835 = vrot.lane.b32.xlu1 %v6441_v9, %s3667_s14  ;;  %829 = vrot.lane.b32.xlu0 %v6443_v52, %s3667_s14  ;;  %v3640_v52 = vld [vmem:[%s6431_s5 + $0x80] sm:$0xff]  }
 0x132   : > { %3501 = vmatprep.subr.bf16.mxu0 %v3640_v52 }
 0x133   : > { %3502 = vmatpush3.bf16.msra.mxu0 %v3640_v52 }
 0x135   : > { %831 = vrot.lane.b32.xlu1 %v770_v23, %s3667_s14 }
 0x166   : > { %v778_v20 = vpop.permute.xlu1 %777 }
 0x167   : > { %v4025_v49 = vmax.f32 %v743_v26, %v778_v20  ;;  %v774_v16 = vpop.permute.xlu0 %773 }
 0x168   : > { %v4031_v9 = vmax.f32 %v741_v28, %v774_v16  ;;  %v3641_v28 = vld [vmem:[%s6431_s5 + $0x88] sm:$0xff]  }
 0x169   : > { %873 = vrot.lane.b32.xlu1 %v4025_v49, %s3668_s15  ;;  %3503 = vmatprep.subr.bf16.mxu0 %v3641_v28 }
 0x16a   : > { %3504 = vmatpush3.bf16.msra.mxu0 %v3641_v28  ;;  %v6506_v28 = vmax.f32 %v3972_v0, 0.0 }
 0x16b   : > { %v780_v58 = vpop.permute.xlu0 %779 }
 0x16c   : > { %v4040_v26 = vmax.f32 %v744_v30, %v780_v58 }
 0x16d   : > { %869 = vrot.lane.b32.xlu1 %v4031_v9, %s3668_s15 }
 0x16e   : > { %v786_v22 = vpop.permute.xlu1 %785 }
 0x16f   : > { %v776_v20 = vpop.permute.xlu0 %775  ;;  %v4055_v30 = vmax.f32 %v747_v37, %v786_v22 }
 0x170   : > { %v4044_v24 = vmax.f32 %v742_v40, %v776_v20 }
 0x171   : > { %875 = vrot.lane.b32.xlu1 %v4040_v26, %s3668_s15 }
 0x172   : > { %v782_v16 = vpop.permute.xlu1 %781  ;;  %871 = vrot.lane.b32.xlu0 %v4044_v24, %s3668_s15 }
 0x173   : > { %v788_v29 = vpop.permute.xlu0 %787  ;;  %v4067_v58 = vmax.f32 %v745_v41, %v782_v16 }
 0x174   : > { %v4059_v31 = vmax.f32 %v748_v42, %v788_v29 }
 0x176   : > { %v794_v40 = vpop.permute.xlu1 %793  ;;  %881 = vrot.lane.b32.xlu0 %v4055_v30, %s3668_s15  ;;  %883 = vrot.lane.b32.xlu1 %v4059_v31, %s3668_s15 }
 0x177   : > { %v784_v52 = vpop.permute.xlu0 %783  ;;  %v4079_v42 = vmax.f32 %v751_v50, %v794_v40  ;;  %v6507_v40 = vmax.f32 %v3986_v18, 0.0  ;;  %v6509_v18 = vmax.f32 %v4000_v4, 0.0 }
 0x178   : > { %v4071_v33 = vmax.f32 %v746_v47, %v784_v52 }
 0x17a   : > { %v790_v37 = vpop.permute.xlu1 %789  ;;  %877 = vrot.lane.b32.xlu0 %v4067_v58, %s3668_s15  ;;  %879 = vrot.lane.b32.xlu1 %v4071_v33, %s3668_s15 }
 0x17b   : > { %v796_v38 = vpop.permute.xlu0 %795  ;;  %v4091_v47 = vmax.f32 %v749_v53, %v790_v37 }
 0x17c   : > { %v4083_v35 = vmax.f32 %v752_v54, %v796_v38 }
 0x17e   : > { %v802_v41 = vpop.permute.xlu1 %801  ;;  %889 = vrot.lane.b32.xlu0 %v4079_v42, %s3668_s15  ;;  %891 = vrot.lane.b32.xlu1 %v4083_v35, %s3668_s15 }
 0x17f   : > { %v792_v43 = vpop.permute.xlu0 %791  ;;  %v4103_v54 = vmax.f32 %v755_v62, %v802_v41  ;;  %v4226_v41 = vshrl.u32 %v997_v61, 7  ;;  %v1978_v61 = vld [vmem:[%s6427_s1 + $0x70] sm:$0xff] }
 0x180   : > { %v4095_v45 = vmax.f32 %v750_v59, %v792_v43 }
 0x181   : > { %vm1064_vm1 = vcmp.lt.s32.totalorder %v4226_v41, 7  ;;  %vm999_vm2 = vcmp.lt.s32.totalorder %v4226_v41, 1 }
 0x182   : > { %v798_v50 = vpop.permute.xlu1 %797  ;;  %885 = vrot.lane.b32.xlu0 %v4091_v47, %s3668_s15  ;;  %887 = vrot.lane.b32.xlu1 %v4095_v45, %s3668_s15 }
 0x183   : > { %v804_v51 = vpop.permute.xlu0 %803  ;;  %v4109_v55 = vmax.f32 %v753_v1, %v798_v50 }
 0x184   : > { %v4121_v22 = vmax.f32 %v756_v2, %v804_v51 }
 0x186   : > { %897 = vrot.lane.b32.xlu0 %v4103_v54, %s3668_s15 }
 0x187   : > { %v806_v48 = vpop.permute.xlu1 %805  ;;  %v800_v53 = vpop.permute.xlu0 %799 }
 0x188   : > { %v4113_v59 = vmax.f32 %v754_v6, %v800_v53  ;;  %v4125_v60 = vmax.f32 %v757_v12, %v806_v48 }
 0x18a   : > { %893 = vrot.lane.b32.xlu0 %v4109_v55, %s3668_s15  ;;  %895 = vrot.lane.b32.xlu1 %v4113_v59, %s3668_s15 }
 0x18b   : > { %v812_v57 = vpop.permute.xlu1 %811  ;;  %v810_v62 = vpop.permute.xlu0 %809 }
 0x18c   : > { %v4133_v6 = vmax.f32 %v760_v14, %v812_v57  ;;  %v4137_v63 = vmax.f32 %v759_v13, %v810_v62 }
 0x18e   : > { %899 = vrot.lane.b32.xlu0 %v4121_v22, %s3668_s15  ;;  %901 = vrot.lane.b32.xlu1 %v4125_v60, %s3668_s15 }
 0x18f   : > { %v808_v1 = vpop.permute.xlu1 %807  ;;  %v818_v3 = vpop.permute.xlu0 %817 }
 0x190   : > { %v4145_v12 = vmax.f32 %v758_v19, %v808_v1  ;;  %v4149_v10 = vmax.f32 %v763_v25, %v818_v3  ;;  %v6504_v25 = vmax.f32 %v3955_v39, 0.0 }
 0x192   : > { %907 = vrot.lane.b32.xlu1 %v4133_v6, %s3668_s15  ;;  %905 = vrot.lane.b32.xlu0 %v4137_v63, %s3668_s15 }
 0x193   : > { %v820_v2 = vpop.permute.xlu1 %819  ;;  %v814_v8 = vpop.permute.xlu0 %813 }
 0x194   : > { %v4157_v14 = vmax.f32 %v764_v36, %v820_v2  ;;  %v4161_v15 = vmax.f32 %v761_v34, %v814_v8 }
 0x196   : > { %903 = vrot.lane.b32.xlu1 %v4145_v12, %s3668_s15  ;;  %913 = vrot.lane.b32.xlu0 %v4149_v10, %s3668_s15 }
 0x197   : > { %v816_v7 = vpop.permute.xlu1 %815  ;;  %v826_v13 = vpop.permute.xlu0 %825 }
 0x198   : > { %v4169_v20 = vmax.f32 %v6504_v25, %v816_v7  ;;  %v4173_v36 = vmax.f32 %v6505_v27, %v826_v13 }
 0x19a   : > { %915 = vrot.lane.b32.xlu1 %v4157_v14, %s3668_s15  ;;  %909 = vrot.lane.b32.xlu0 %v4161_v15, %s3668_s15 }
 0x19b   : > { %v828_v17 = vpop.permute.xlu1 %827  ;;  %v822_v19 = vpop.permute.xlu0 %821 }
 0x19c   : > { %v4181_v16 = vmax.f32 %v6506_v28, %v828_v17  ;;  %v4185_v39 = vmax.f32 %v765_v5, %v822_v19  ;;  %v6508_v5 = vmax.f32 %v3996_v44, 0.0 }
 0x19e   : > { %911 = vrot.lane.b32.xlu1 %v4169_v20, %s3668_s15  ;;  %921 = vrot.lane.b32.xlu0 %v4173_v36, %s3668_s15 }
 0x19f   : > { %v824_v21 = vpop.permute.xlu1 %823  ;;  %v834_v34 = vpop.permute.xlu0 %833 }
 0x1a0   : > { %v4193_v29 = vmax.f32 %v766_v32, %v824_v21  ;;  %v4197_v0 = vmax.f32 %v6507_v40, %v834_v34 }
 0x1a2   : > { %923 = vrot.lane.b32.xlu1 %v4181_v16, %s3668_s15  ;;  %917 = vrot.lane.b32.xlu0 %v4185_v39, %s3668_s15 }
 0x1a3   : > { %v836_v46 = vpop.permute.xlu1 %835  ;;  %v830_v52 = vpop.permute.xlu0 %829 }
 0x1a4   : > { %v4205_v37 = vmax.f32 %v6508_v5, %v830_v52  ;;  %v4217_v32 = vmax.f32 %v6509_v18, %v836_v46  ;;  %v1975_v52 = vld [vmem:[%s6427_s1 + $0x58] sm:$0xff] }
 0x1a6   : > { %919 = vrot.lane.b32.xlu1 %v4193_v29, %s3668_s15  ;;  %929 = vrot.lane.b32.xlu0 %v4197_v0, %s3668_s15 }
 0x1a7   : > { %v832_v56 = vpop.permute.xlu1 %831 }
 0x1a8   : > { %v4209_v11 = vmax.f32 %v770_v23, %v832_v56 }
 0x1aa   : > { %927 = vrot.lane.b32.xlu1 %v4209_v11, %s3668_s15  ;;  %925 = vrot.lane.b32.xlu0 %v4205_v37, %s3668_s15 }
 0x1ae   : > { %931 = vrot.lane.b32.xlu0 %v4217_v32, %s3668_s15 }
 0x1db   : > { %v874_v44 = vpop.permute.xlu1 %873 }
 0x1dc   : > { %v4222_v38 = vmax.f32 %v4025_v49, %v874_v44 }
 0x1de   : > { %6510 = vst [vmem:[#allocation3_spill] sm:$0xff] %v4222_v38  ;;  %1675 = vrot.lane.b32.xlu0 %v4222_v38, %s3669_s22  ;;  %v1034_v48 = vrot.slane %v4222_v38, 1  ;;  %v967_v17 = vrot.slane %v4222_v38, 7 }
 0x1df   : > { %v870_v23 = vpop.permute.xlu1 %869 }
 0x1e0   : > { %v4231_v43 = vmax.f32 %v4031_v9, %v870_v23  ;;  %v1981_v23 = vld [vmem:[%s6427_s1 + $0x88] sm:$0xff] }
 0x1e2   : > { %1135 = vrot.lane.b32.xlu0 %v4222_v38, %s3667_s14 }
 0x1e3   : > { %v876_v4 = vpop.permute.xlu1 %875 }
 0x1e4   : > { %v4234_v50 = vmax.f32 %v4040_v26, %v876_v4  ;;  %v872_v49 = vpop.permute.xlu0 %871  ;;  %v1969_v26 = vld [vmem:[%s6427_s1 + $0x28] sm:$0xff] }
 0x1e5   : > { %v4237_v51 = vmax.f32 %v4044_v24, %v872_v49  ;;  %v1966_v24 = vld [vmem:[%s6427_s1 + $0x10] sm:$0xff] }
 0x1e6   : > { %6511 = vst [vmem:[#allocation4_spill] sm:$0xff] %v4234_v50  ;;  %1677 = vrot.lane.b32.xlu1 %v4234_v50, %s3669_s22  ;;  %1131 = vrot.lane.b32.xlu0 %v4231_v43, %s3667_s14  ;;  %v1035_v9 = vrot.slane %v4234_v50, 1  ;;  %v6446_v3 = vrot.slane %v4234_v50, 7 }
 0x1e7   : > { %v1033_v53 = vrot.slane %v4237_v51, 1  ;;  %v966_v18 = vrot.slane %v4237_v51, 7 }
 0x1e8   : > { %v884_v57 = vpop.permute.xlu1 %883  ;;  %v882_v62 = vpop.permute.xlu0 %881  ;;  %v1093_v1 = vsel %vm1064_vm1, %v1034_v48, %v1035_v9  ;;  %v4286_v46 = vsel %vm999_vm2, %v967_v17, %v6446_v3 }
 0x1e9   : > { %v4257_v2 = vmax.f32 %v4059_v31, %v884_v57  ;;  %v4260_v8 = vmax.f32 %v4055_v30, %v882_v62  ;;  %v2065_v7 = vmul.f32 %v1969_v26, %v1093_v1  ;;  %v4266_v13 = vsel %vm1064_vm1, %v1033_v53, %v1034_v48  ;;  %6514 = vst [vmem:[#allocation7_spill] sm:$0xff] %v4286_v46 }
 0x1ea   : > { %1137 = vrot.lane.b32.xlu1 %v4234_v50, %s3667_s14  ;;  %1263 = vrot.lane.b32.xlu0 %v1093_v1, %s3668_s15  ;;  %v2062_v31 = vmul.f32 %v1966_v24, %v4266_v13 }
 0x1eb   : > { %6512 = vst [vmem:[#allocation5_spill] sm:$0xff] %v4257_v2  ;;  %6513 = vst [vmem:[#allocation6_spill] sm:$0xff] %v4260_v8  ;;  %v1039_v30 = vrot.slane %v4257_v2, 1  ;;  %v1038_v19 = vrot.slane %v4260_v8, 1 }
 0x1ec   : > { %v2158_v25 = vpack.c.bf16 %v2065_v7, %v2062_v31  ;;  %v880_v27 = vpop.permute.xlu1 %879  ;;  %v878_v21 = vpop.permute.xlu0 %877 }
 0x1ed   : > { %v4277_v34 = vmax.f32 %v4071_v33, %v880_v27  ;;  %v4280_v28 = vmax.f32 %v4067_v58, %v878_v21  ;;  %v1972_v58 = vld [vmem:[%s6427_s1 + $0x40] sm:$0xff]  ;;  %v4304_v44 = vsel %vm1064_vm1, %v1038_v19, %v1039_v30 }
 0x1ee   : > { %1391 = vrot.lane.b32.xlu0 %v4286_v46, %s3669_s22  ;;  %1673 = vrot.lane.b32.xlu1 %v4237_v51, %s3669_s22  ;;  %v2077_v7 = vmul.f32 %v1981_v23, %v4304_v44 }
 0x1ef   : > { %v1037_v40 = vrot.slane %v4277_v34, 1  ;;  %v1036_v33 = vrot.slane %v4280_v28, 1  ;;  %3505 = vmatprep.mubr.msk.bf16.mxu0 %vm1769_vm3, %v2158_v25 }
 0x1f0   : > { %v892_v56 = vpop.permute.xlu1 %891  ;;  %v890_v5 = vpop.permute.xlu0 %889 }
 0x1f1   : > { %v4314_v4 = vsel %vm1064_vm1, %v1036_v33, %v1037_v40  ;;  %v4318_v49 = vsel %vm1064_vm1, %v1035_v9, %v1036_v33  ;;  %v4321_v48 = vmax.f32 %v4083_v35, %v892_v56  ;;  %v4324_v26 = vmax.f32 %v4079_v42, %v890_v5  ;;  %v1987_v56 = vld [vmem:[%s6427_s1 + $0xb8] sm:$0xff]  ;;  %v1990_v5 = vld [vmem:[%s6427_s1 + $0xd0] sm:$0xff] }
 0x1f2   : > { %1133 = vrot.lane.b32.xlu1 %v4237_v51, %s3667_s14  ;;  %1483 = vrot.lane.b32.xlu0 %v4266_v13, %s3667_s14  ;;  %v2068_v24 = vmul.f32 %v1972_v58, %v4318_v49  ;;  %v2071_v57 = vmul.f32 %v1975_v52, %v4314_v4  ;;  %v4334_v9 = vsel %vm1064_vm1, %v1037_v40, %v1038_v19  ;;  %v6444_v58 = vrot.slane %v4231_v43, 1 }
 0x1f3   : > { %6515 = vst [vmem:[#allocation8_spill] sm:$0xff] %v4321_v48  ;;  %6516 = vst [vmem:[#allocation9_spill] sm:$0xff] %v4324_v26  ;;  %v1043_v35 = vrot.slane %v4321_v48, 1  ;;  %v1042_v62 = vrot.slane %v4324_v26, 1  ;;  %v2074_v42 = vmul.f32 %v1978_v61, %v4334_v9  ;;  %v4348_v19 = vsel %vm999_vm2, %v966_v18, %v967_v17 }
 0x1f4   : > { %v888_v31 = vpop.permute.xlu1 %887  ;;  %v886_v25 = vpop.permute.xlu0 %885  ;;  %v2161_v27 = vpack.c.bf16 %v2071_v57, %v2068_v24  ;;  %6519 = vst [vmem:[#allocation12_spill] sm:$0xff] %v4348_v19  ;;  %v4380_v23 = vsel %vm1064_vm1, %v6444_v58, %v1033_v53 }
 0x1f5   : > { %v4341_v21 = vmax.f32 %v4095_v45, %v888_v31  ;;  %v4344_v33 = vmax.f32 %v4091_v47, %v886_v25  ;;  %v2164_v40 = vpack.c.bf16 %v2077_v7, %v2074_v42  ;;  %v4356_v52 = vsel %vm1064_vm1, %v1042_v62, %v1043_v35  ;;  %v1993_v47 = vld [vmem:[%s6427_s1 + $0xe8] sm:$0xff] }
 0x1f6   : > { %1485 = vrot.lane.b32.xlu1 %v1093_v1, %s3667_s14  ;;  %1579 = vrot.lane.b32.xlu0 %v4348_v19, %s3668_s15  ;;  %v1984_v1 = vld [vmem:[%s6427_s1 + $0xa0] sm:$0xff]  ;;  %v2089_v7 = vmul.f32 %v1993_v47, %v4356_v52 }
 0x1f7   : > { %6517 = vst [vmem:[#allocation10_spill] sm:$0xff] %v4341_v21  ;;  %6518 = vst [vmem:[#allocation11_spill] sm:$0xff] %v4344_v33  ;;  %v1041_v45 = vrot.slane %v4341_v21, 1  ;;  %v1040_v17 = vrot.slane %v4344_v33, 1  ;;  %3506 = vmatmul.mubr.msk.bf16.vlgmr.msra.gmra.mrb[32].mxu0 %vm1769_vm3, %v2161_v27 }
 0x1f8   : > { %3509 = vmatprep.mubr.msk.bf16.mxu0 %vm1769_vm3, %v2164_v40  ;;  %v898_v61 = vpop.permute.xlu0 %897 }
 0x1f9   : > { %v4384_v24 = vsel %vm1064_vm1, %v1040_v17, %v1041_v45  ;;  %v4388_v57 = vsel %vm1064_vm1, %v1039_v30, %v1040_v17  ;;  %v4392_v42 = vsel %vm1064_vm1, %v1041_v45, %v1042_v62  ;;  %v6445_v30 = vrot.slane %v4231_v43, 7 }
 0x1fa   : > { %1581 = vrot.lane.b32.xlu1 %v4286_v46, %s3668_s15  ;;  %1259 = vrot.lane.b32.xlu0 %v4380_v23, %s3668_s15  ;;  %v2080_v53 = vmul.f32 %v1984_v1, %v4388_v57  ;;  %v2083_v31 = vmul.f32 %v1987_v56, %v4384_v24  ;;  %v2086_v25 = vmul.f32 %v1990_v5, %v4392_v42 }
 0x1fb   : > { %v4404_v27 = vmax.f32 %v4103_v54, %v898_v61  ;;  %v4416_v1 = vsel %vm999_vm2, %v6445_v30, %v966_v18  ;;  %v1999_v18 = vld [vmem:[%s6427_s1 + $0x118] sm:$0xff] }
 0x1fc   : > { %v896_v62 = vpop.permute.xlu1 %895  ;;  %v894_v40 = vpop.permute.xlu0 %893  ;;  %v2167_v47 = vpack.c.bf16 %v2083_v31, %v2080_v53  ;;  %v2170_v45 = vpack.c.bf16 %v2089_v7, %v2086_v25  ;;  %6523 = vst [vmem:[#allocation16_spill] sm:$0xff] %v4416_v1 }
 0x1fd   : > { %6520 = vst [vmem:[#allocation13_spill] sm:$0xff] %v4404_v27  ;;  %v4407_v17 = vmax.f32 %v4113_v59, %v896_v62  ;;  %v4410_v58 = vmax.f32 %v4109_v55, %v894_v40  ;;  %v1996_v55 = vld [vmem:[%s6427_s1 + $0x100] sm:$0xff]  ;;  %v1046_v56 = vrot.slane %v4404_v27, 1 }
 0x1fe   : > { %1481 = vrot.lane.b32.xlu1 %v4380_v23, %s3667_s14  ;;  %1387 = vrot.lane.b32.xlu0 %v4416_v1, %s3669_s22 }
 0x1ff   : > { %6521 = vst [vmem:[#allocation14_spill] sm:$0xff] %v4407_v17  ;;  %6522 = vst [vmem:[#allocation15_spill] sm:$0xff] %v4410_v58  ;;  %v1045_v54 = vrot.slane %v4407_v17, 1  ;;  %v1044_v59 = vrot.slane %v4410_v58, 1  ;;  %3510 = vmatmul.mubr.msk.bf16.gmra.mrb[36].mxu0 %vm1769_vm3, %v2167_v47  ;;  %v2005_v47 = vld [vmem:[%s6427_s1 + $0x148] sm:$0xff] }
 0x200   : > { %3513 = vmatprep.mubr.msk.bf16.mxu0 %vm1769_vm3, %v2170_v45  ;;  %v902_v5 = vpop.permute.xlu1 %901  ;;  %v900_v61 = vpop.permute.xlu0 %899 }
 0x201   : > { %v4434_v7 = vmax.f32 %v4125_v60, %v902_v5  ;;  %v4437_v53 = vmax.f32 %v4121_v22, %v900_v61  ;;  %v4441_v31 = vsel %vm1064_vm1, %v1044_v59, %v1045_v54  ;;  %v4445_v25 = vsel %vm1064_vm1, %v1043_v35, %v1044_v59  ;;  %v2002_v35 = vld [vmem:[%s6427_s1 + $0x130] sm:$0xff] }
 0x202   : > { %1577 = vrot.lane.b32.xlu1 %v4416_v1, %s3668_s15  ;;  %1683 = vrot.lane.b32.xlu0 %v4260_v8, %s3669_s22  ;;  %v2092_v60 = vmul.f32 %v1996_v55, %v4445_v25  ;;  %v2095_v62 = vmul.f32 %v1999_v18, %v4441_v31  ;;  %v4456_v40 = vsel %vm1064_vm1, %v1045_v54, %v1046_v56 }
 0x203   : > { %6524 = vst [vmem:[#allocation17_spill] sm:$0xff] %v4437_v53  ;;  %v1047_v22 = vrot.slane %v4437_v53, 1  ;;  %v1048_v55 = vrot.slane %v4434_v7, 1 }
 0x204   : > { %v908_v45 = vpop.permute.xlu1 %907  ;;  %v906_v59 = vpop.permute.xlu0 %905  ;;  %v2173_v5 = vpack.c.bf16 %v2095_v62, %v2092_v60  ;;  %v2098_v60 = vmul.f32 %v2002_v35, %v4456_v40  ;;  %v2008_v35 = vld [vmem:[%s6427_s1 + $0x160] sm:$0xff] }
 0x205   : > { %v4466_v18 = vmax.f32 %v4133_v6, %v908_v45  ;;  %v4469_v61 = vmax.f32 %v4137_v63, %v906_v59  ;;  %v4473_v54 = vsel %vm1064_vm1, %v1046_v56, %v1047_v22 }
 0x206   : > { %1261 = vrot.lane.b32.xlu1 %v4266_v13, %s3668_s15  ;;  %1143 = vrot.lane.b32.xlu0 %v4260_v8, %s3667_s14  ;;  %v2101_v62 = vmul.f32 %v2005_v47, %v4473_v54  ;;  %v4489_v13 = vsel %vm1064_vm1, %v1047_v22, %v1048_v55 }
 0x207   : > { %6525 = vst [vmem:[#allocation18_spill] sm:$0xff] %v4466_v18  ;;  %v1051_v6 = vrot.slane %v4466_v18, 1  ;;  %v1050_v45 = vrot.slane %v4469_v61, 1  ;;  %3514 = vmatmul.mubr.msk.bf16.gmra.mrb[40].mxu0 %vm1769_vm3, %v2173_v5  ;;  %v2014_v5 = vld [vmem:[%s6427_s1 + $0x190] sm:$0xff]  ;;  %v2104_v3 = vmul.f32 %v2008_v35, %v4489_v13 }
 0x208   : > { %v904_v63 = vpop.permute.xlu1 %903  ;;  %v914_v59 = vpop.permute.xlu0 %913  ;;  %v2176_v56 = vpack.c.bf16 %v2101_v62, %v2098_v60  ;;  %v2017_v60 = vld [vmem:[%s6427_s1 + $0x1a8] sm:$0xff] }
 0x209   : > { %v4485_v30 = vmax.f32 %v4145_v12, %v904_v63  ;;  %v2011_v12 = vld [vmem:[%s6427_s1 + $0x178] sm:$0xff]  ;;  %v4505_v22 = vsel %vm1064_vm1, %v1050_v45, %v1051_v6  ;;  %v4514_v62 = vmax.f32 %v4149_v10, %v914_v59 }
 0x20a   : > { %1389 = vrot.lane.b32.xlu1 %v4348_v19, %s3669_s22  ;;  %1679 = vrot.lane.b32.xlu0 %v4280_v28, %s3669_s22 }
 0x20b   : > { %6526 = vst [vmem:[#allocation19_spill] sm:$0xff] %v4485_v30  ;;  %v1049_v47 = vrot.slane %v4485_v30, 1  ;;  %3517 = vmatprep.mubr.msk.bf16.mxu0 %vm1769_vm3, %v2176_v56  ;;  %6527 = vst [vmem:[#allocation20_spill] sm:$0xff] %v4514_v62  ;;  %v1054_v30 = vrot.slane %v4514_v62, 1 }
 0x20c   : > { %v916_v63 = vpop.permute.xlu1 %915  ;;  %v910_v56 = vpop.permute.xlu0 %909 }
 0x20d   : > { %v4518_v46 = vmax.f32 %v4157_v14, %v916_v63  ;;  %v4521_v19 = vmax.f32 %v4161_v15, %v910_v56  ;;  %v4525_v1 = vsel %vm1064_vm1, %v1048_v55, %v1049_v47  ;;  %v4529_v38 = vsel %vm1064_vm1, %v1049_v47, %v1050_v45 }
 0x20e   : > { %1685 = vrot.lane.b32.xlu1 %v4257_v2, %s3669_s22  ;;  %1139 = vrot.lane.b32.xlu0 %v4280_v28, %s3667_s14  ;;  %v2107_v10 = vmul.f32 %v2011_v12, %v4525_v1  ;;  %v2110_v14 = vmul.f32 %v2014_v5, %v4529_v38  ;;  %v2113_v15 = vmul.f32 %v2017_v60, %v4505_v22  ;;  %v6461_v56 = vrot.slane %v4280_v28, 7  ;;  %v2020_v5 = vld [vmem:[%s6427_s1 + $0x1c0] sm:$0xff]  ;;  %v2026_v60 = vld [vmem:[%s6427_s1 + $0x1f0] sm:$0xff] }
 0x20f   : > { %6528 = vst [vmem:[#allocation21_spill] sm:$0xff] %v4518_v46  ;;  %6529 = vst [vmem:[#allocation22_spill] sm:$0xff] %v4521_v19  ;;  %v1055_v59 = vrot.slane %v4518_v46, 1  ;;  %v1052_v55 = vrot.slane %v4521_v19, 1 }
 0x210   : > { %v912_v35 = vpop.permute.xlu1 %911  ;;  %v922_v63 = vpop.permute.xlu0 %921  ;;  %v2179_v45 = vpack.c.bf16 %v2107_v10, %v2104_v3  ;;  %v2182_v47 = vpack.c.bf16 %v2113_v15, %v2110_v14  ;;  %v2029_v10 = vld [vmem:[%s6427_s1 + $0x208] sm:$0xff] }
 0x211   : > { %v4543_v18 = vmax.f32 %v4169_v20, %v912_v35  ;;  %v4547_v12 = vsel %vm1064_vm1, %v1051_v6, %v1052_v55  ;;  %v2023_v20 = vld [vmem:[%s6427_s1 + $0x1d8] sm:$0xff]  ;;  %v4563_v6 = vsel %vm1064_vm1, %v1054_v30, %v1055_v59  ;;  %v4572_v14 = vmax.f32 %v4173_v36, %v922_v63 }
 0x212   : > { %6531 = vst [vmem:[#allocation24_spill] sm:$0xff] %v4547_v12  ;;  %1145 = vrot.lane.b32.xlu1 %v4257_v2, %s3667_s14  ;;  %1487 = vrot.lane.b32.xlu0 %v4318_v49, %s3667_s14 }
 0x213   : > { %6530 = vst [vmem:[#allocation23_spill] sm:$0xff] %v4543_v18  ;;  %v1053_v3 = vrot.slane %v4543_v18, 1  ;;  %3518 = vmatmul.mubr.msk.bf16.gmra.mrb[44].mxu0 %vm1769_vm3, %v2179_v45  ;;  %6532 = vst [vmem:[#allocation25_spill] sm:$0xff] %v4572_v14  ;;  %v6533_v45 = vrot.slane %v4234_v50, 7  ;;  %v2116_v18 = vmul.f32 %v2020_v5, %v4547_v12  ;;  %v6472_v50 = vrot.slane %v4257_v2, 7 }
 0x214   : > { %3521 = vmatprep.mubr.msk.bf16.mxu0 %vm1769_vm3, %v2182_v47  ;;  %v924_v15 = vpop.permute.xlu1 %923  ;;  %v918_v35 = vpop.permute.xlu0 %917  ;;  %v1058_v12 = vrot.slane %v4572_v14, 1 }
 0x215   : > { %v4581_v46 = vsel %vm999_vm2, %v6533_v45, %v6461_v56  ;;  %v4585_v19 = vmax.f32 %v4181_v16, %v924_v15  ;;  %v4588_v36 = vmax.f32 %v4185_v39, %v918_v35  ;;  %v4592_v63 = vsel %vm1064_vm1, %v1052_v55, %v1053_v3 }
 0x216   : > { %6534 = vst [vmem:[#allocation26_spill] sm:$0xff] %v4581_v46  ;;  %v4596_v47 = vsel %vm1064_vm1, %v1053_v3, %v1054_v30  ;;  %1681 = vrot.lane.b32.xlu1 %v4277_v34, %s3669_s22  ;;  %1583 = vrot.lane.b32.xlu0 %v4581_v46, %s3668_s15  ;;  %v2119_v16 = vmul.f32 %v2023_v20, %v4592_v63  ;;  %v971_v56 = vrot.slane %v4260_v8, 7 }
 0x217   : > { %6535 = vst [vmem:[#allocation27_spill] sm:$0xff] %v4585_v19  ;;  %6536 = vst [vmem:[#allocation28_spill] sm:$0xff] %v4588_v36  ;;  %v2122_v5 = vmul.f32 %v2026_v60, %v4596_v47  ;;  %v2125_v39 = vmul.f32 %v2029_v10, %v4563_v6  ;;  %v1059_v15 = vrot.slane %v4585_v19, 1  ;;  %v1056_v55 = vrot.slane %v4588_v36, 1  ;;  %v2032_v10 = vld [vmem:[%s6427_s1 + $0x220] sm:$0xff] }
 0x218   : > { %v920_v35 = vpop.permute.xlu1 %919  ;;  %v930_v45 = vpop.permute.xlu0 %929  ;;  %v2185_v30 = vpack.c.bf16 %v2119_v16, %v2116_v18  ;;  %v2038_v16 = vld [vmem:[%s6427_s1 + $0x250] sm:$0xff]  ;;  %v4647_v8 = vsel %vm999_vm2, %v971_v56, %v6472_v50  ;;  %v970_v50 = vrot.slane %v4277_v34, 7 }
 0x219   : > { %v2188_v3 = vpack.c.bf16 %v2125_v39, %v2122_v5  ;;  %v4611_v20 = vmax.f32 %v4193_v29, %v920_v35  ;;  %v4615_v60 = vsel %vm1064_vm1, %v1055_v59, %v1056_v55  ;;  %v2035_v29 = vld [vmem:[%s6427_s1 + $0x238] sm:$0xff]  ;;  %v4631_v59 = vsel %vm1064_vm1, %v1058_v12, %v1059_v15  ;;  %v2041_v5 = vld [vmem:[%s6427_s1 + $0x268] sm:$0xff]  ;;  %6538 = vst [vmem:[#allocation30_spill] sm:$0xff] %v4647_v8 }
 0x21a   : > { %1141 = vrot.lane.b32.xlu1 %v4277_v34, %s3667_s14  ;;  %1271 = vrot.lane.b32.xlu0 %v4304_v44, %s3668_s15  ;;  %v4640_v39 = vmax.f32 %v4197_v0, %v930_v45  ;;  %v2128_v19 = vmul.f32 %v2032_v10, %v4615_v60 }
 0x21b   : > { %6537 = vst [vmem:[#allocation29_spill] sm:$0xff] %v4611_v20  ;;  %v1057_v18 = vrot.slane %v4611_v20, 1  ;;  %3522 = vmatmul.mubr.msk.bf16.gmra.mrb[48].mxu0 %vm1769_vm3, %v2185_v30 }
 0x21c   : > { %3525 = vmatprep.mubr.msk.bf16.mxu0 %vm1769_vm3, %v2188_v3  ;;  %v928_v35 = vpop.permute.xlu1 %927  ;;  %v926_v30 = vpop.permute.xlu0 %925 }
 0x21d   : > { %v4651_v14 = vmax.f32 %v4209_v11, %v928_v35  ;;  %v4654_v20 = vmax.f32 %v4205_v37, %v926_v30  ;;  %v4658_v0 = vsel %vm1064_vm1, %v1056_v55, %v1057_v18  ;;  %v4662_v45 = vsel %vm1064_vm1, %v1057_v18, %v1058_v12 }
 0x21e   : > { %1265 = vrot.lane.b32.xlu1 %v4318_v49, %s3668_s15  ;;  %1399 = vrot.lane.b32.xlu0 %v4647_v8, %s3669_s22  ;;  %v2131_v11 = vmul.f32 %v2035_v29, %v4658_v0  ;;  %v2134_v3 = vmul.f32 %v2038_v16, %v4662_v45  ;;  %v2137_v37 = vmul.f32 %v2041_v5, %v4631_v59  ;;  %v1062_v18 = vrot.slane %v4640_v39, 1  ;;  %v2047_v16 = vld [vmem:[%s6427_s1 + $0x298] sm:$0xff] }
 0x21f   : > { %v1061_v10 = vrot.slane %v4651_v14, 1  ;;  %v1060_v55 = vrot.slane %v4654_v20, 1 }
 0x220   : > { %v932_v35 = vpop.permute.xlu0 %931  ;;  %v2191_v30 = vpack.c.bf16 %v2131_v11, %v2128_v19  ;;  %v2194_v12 = vpack.c.bf16 %v2137_v37, %v2134_v3  ;;  %v2053_v3 = vld [vmem:[%s6427_s1 + $0x2c8] sm:$0xff]  ;;  %v4711_v37 = vsel %vm999_vm2, %v970_v50, %v971_v56 }
 0x221   : > { %v4675_v49 = vmax.f32 %v4217_v32, %v932_v35  ;;  %v4684_v29 = vsel %vm1064_vm1, %v1060_v55, %v1061_v10  ;;  %v4688_v19 = vsel %vm1064_vm1, %v1059_v15, %v1060_v55  ;;  %v2044_v32 = vld [vmem:[%s6427_s1 + $0x280] sm:$0xff]  ;;  %v4700_v11 = vsel %vm1064_vm1, %v1061_v10, %v1062_v18  ;;  %v2050_v15 = vld [vmem:[%s6427_s1 + $0x2b0] sm:$0xff]  ;;  %6539 = vst [vmem:[#allocation31_spill] sm:$0xff] %v4711_v37 }
 0x222   : > { %1393 = vrot.lane.b32.xlu1 %v4581_v46, %s3669_s22  ;;  %1491 = vrot.lane.b32.xlu0 %v4334_v9, %s3667_s14  ;;  %v2140_v55 = vmul.f32 %v2044_v32, %v4688_v19  ;;  %v2143_v35 = vmul.f32 %v2047_v16, %v4684_v29  ;;  %v2056_v32 = vld [vmem:[%s6427_s1 + $0x2e0] sm:$0xff]  ;;  %v2059_v16 = vld [vmem:[%s6427_s1 + $0x2f8] sm:$0xff] }
 0x223   : > { %v1063_v5 = vrot.slane %v4675_v49, 1  ;;  %3526 = vmatmul.mubr.msk.bf16.gmra.mrb[52].mxu0 %vm1769_vm3, %v2191_v30  ;;  %v2146_v30 = vmul.f32 %v2050_v15, %v4700_v11  ;;  %v6541_v15 = vrot.slane %v4280_v28, 7 }
 0x224   : > { %3529 = vmatprep.mubr.msk.bf16.mxu0 %vm1769_vm3, %v2194_v12  ;;  %v2197_v46 = vpack.c.bf16 %v2143_v35, %v2140_v55  ;;  %v6474_v35 = vrot.slane %v4321_v48, 7 }
 0x225   : > { %v4717_v10 = vsel %vm1064_vm1, %v1062_v18, %v1063_v5  ;;  %v6540_v18 = vrot.slane %v4231_v43, 1 }
 0x226   : > { %1493 = vrot.lane.b32.xlu1 %v4304_v44, %s3667_s14  ;;  %1587 = vrot.lane.b32.xlu0 %v4711_v37, %s3668_s15  ;;  %v2149_v12 = vmul.f32 %v2053_v3, %v4717_v10  ;;  %v4747_v3 = vsel %vm999_vm2, %v6541_v15, %v970_v50  ;;  %v973_v50 = vrot.slane %v4344_v33, 7 }
 0x227   : > { %v4733_v44 = vsel %vm1064_vm1, %v1063_v5, %v6540_v18  ;;  %6542 = vst [vmem:[#allocation32_spill] sm:$0xff] %v4747_v3 }
 0x228   : > { %v2200_v56 = vpack.c.bf16 %v2149_v12, %v2146_v30  ;;  %v2152_v5 = vmul.f32 %v2056_v32, %v4733_v44 }
 0x22a   : > { %1589 = vrot.lane.b32.xlu1 %v4647_v8, %s3668_s15  ;;  %1267 = vrot.lane.b32.xlu0 %v4314_v4, %s3668_s15 }
 0x22b   : > { %3530 = vmatmul.mubr.msk.bf16.gmra.mrb[56].mxu0 %vm1769_vm3, %v2197_v46  ;;  %v2155_v46 = vmul.f32 %v2059_v16, %v4380_v23  ;;  %v975_v23 = vrot.slane %v4324_v26, 7 }
 0x22c   : > { %3533 = vmatprep.mubr.msk.bf16.mxu0 %vm1769_vm3, %v2200_v56  ;;  %v974_v56 = vrot.slane %v4341_v21, 7 }
 0x22d   : > { %v2203_v55 = vpack.c.bf16 %v2155_v46, %v2152_v5  ;;  %v4801_v12 = vsel %vm999_vm2, %v975_v23, %v6474_v35 }
 0x22e   : > { %1489 = vrot.lane.b32.xlu1 %v4314_v4, %s3667_s14  ;;  %1395 = vrot.lane.b32.xlu0 %v4747_v3, %s3669_s22  ;;  %v6543_v4 = vrot.slane %v4257_v2, 7  ;;  %6545 = vst [vmem:[#allocation34_spill] sm:$0xff] %v4801_v12  ;;  %v4832_v5 = vsel %vm999_vm2, %v973_v50, %v974_v56  ;;  %v6594_v2 = vld [vmem:[#allocation24_spill] sm:$0xff] }
 0x22f   : > { %6549 = vst [vmem:[#allocation38_spill] sm:$0xff] %v4832_v5 }
 0x232   : > { %1585 = vrot.lane.b32.xlu1 %v4747_v3, %s3668_s15  ;;  %1691 = vrot.lane.b32.xlu0 %v4324_v26, %s3669_s22 }
 0x233   : > { %3534 = vmatmul.mubr.msk.bf16.gmra.mrb[60].mxu0 %vm1769_vm3, %v2203_v55 }
 0x236   : > { %1269 = vrot.lane.b32.xlu1 %v4334_v9, %s3668_s15  ;;  %1151 = vrot.lane.b32.xlu0 %v4324_v26, %s3667_s14  ;;  %v4785_v9 = vsel %vm999_vm2, %v6543_v4, %v973_v50 }
 0x237   : > { %6544 = vst [vmem:[#allocation33_spill] sm:$0xff] %v4785_v9 }
 0x23a   : > { %1397 = vrot.lane.b32.xlu1 %v4711_v37, %s3669_s22  ;;  %1687 = vrot.lane.b32.xlu0 %v4344_v33, %s3669_s22 }
 0x23e   : > { %1693 = vrot.lane.b32.xlu1 %v4321_v48, %s3669_s22  ;;  %1147 = vrot.lane.b32.xlu0 %v4344_v33, %s3667_s14 }
 0x242   : > { %1689 = vrot.lane.b32.xlu1 %v4341_v21, %s3669_s22  ;;  %1153 = vrot.lane.b32.xlu0 %v4321_v48, %s3667_s14 }
 0x246   : > { %1149 = vrot.lane.b32.xlu1 %v4341_v21, %s3667_s14  ;;  %1495 = vrot.lane.b32.xlu0 %v4388_v57, %s3667_s14  ;;  %v980_v21 = vrot.slane %v4437_v53, 7 }
 0x24a   : > { %1273 = vrot.lane.b32.xlu1 %v4388_v57, %s3668_s15  ;;  %1591 = vrot.lane.b32.xlu0 %v4785_v9, %s3668_s15 }
 0x24e   : > { %1401 = vrot.lane.b32.xlu1 %v4785_v9, %s3669_s22  ;;  %1279 = vrot.lane.b32.xlu0 %v4356_v52, %s3668_s15 }
 0x250   : > { %v1676_v30 = vpop.permute.xlu0 %1675 }
 0x252   : > { %1501 = vrot.lane.b32.xlu1 %v4356_v52, %s3667_s14  ;;  %1407 = vrot.lane.b32.xlu0 %v4801_v12, %s3669_s22  ;;  %v4820_v52 = vsel %vm999_vm2, %v974_v56, %v975_v23 }
 0x253   : > { %6546 = vst [vmem:[#allocation35_spill] sm:$0xff] %v4820_v52 }
 0x254   : > { %v4807_v57 = vpop.permute.xlu0 %1135 }
 0x256   : > { %1597 = vrot.lane.b32.xlu1 %v4801_v12, %s3668_s15  ;;  %1499 = vrot.lane.b32.xlu0 %v4392_v42, %s3667_s14 }
 0x258   : > { %v4814_v18 = vpop.permute.xlu1 %1677  ;;  %v4816_v32 = vpop.permute.xlu0 %1131 }
 0x25a   : > { %1497 = vrot.lane.b32.xlu1 %v4384_v24, %s3667_s14  ;;  %1595 = vrot.lane.b32.xlu0 %v4820_v52, %s3668_s15 }
 0x25c   : > { %v4826_v16 = vpop.permute.xlu1 %1137  ;;  %v4828_v15 = vpop.permute.xlu0 %1263 }
 0x25d   : > { %6547 = vst [vmem:[#allocation36_spill] sm:$0xff] %v4826_v16  ;;  %6548 = vst [vmem:[#allocation37_spill] sm:$0xff] %v4828_v15 }
 0x25e   : > { %1275 = vrot.lane.b32.xlu0 %v4384_v24, %s3668_s15  ;;  %1593 = vrot.lane.b32.xlu1 %v4832_v5, %s3668_s15 }
 0x260   : > { %v1674_v46 = vpop.permute.xlu1 %1673  ;;  %v4838_v55 = vpop.permute.xlu0 %1391 }
 0x261   : > { %6550 = vst [vmem:[#allocation39_spill] sm:$0xff] %v4838_v55 }
 0x262   : > { %1403 = vrot.lane.b32.xlu0 %v4832_v5, %s3669_s22  ;;  %1277 = vrot.lane.b32.xlu1 %v4392_v42, %s3668_s15 }
 0x264   : > { %v4844_v4 = vpop.permute.xlu1 %1133  ;;  %v1484_v23 = vpop.permute.xlu0 %1483 }
 0x265   : > { %v1869_v35 = vsel %vm1769_vm3, %v4237_v51, %v1484_v23  ;;  %v1965_v23 = vld [vmem:[%s6427_s1 + $0x8] sm:$0xff] }
 0x266   : > { %1405 = vrot.lane.b32.xlu1 %v4820_v52, %s3669_s22  ;;  %1695 = vrot.lane.b32.xlu0 %v4410_v58, %s3669_s22 }
 0x268   : > { %v4850_v24 = vpop.permute.xlu1 %1485  ;;  %v1580_v50 = vpop.permute.xlu0 %1579 }
 0x269   : > { %v1901_v5 = vsel %vm1802_vm4, %v1869_v35, %v1580_v50  ;;  %v1968_v35 = vld [vmem:[%s6427_s1 + $0x20] sm:$0xff] }
 0x26a   : > { %1699 = vrot.lane.b32.xlu1 %v4404_v27, %s3669_s22  ;;  %1701 = vrot.lane.b32.xlu0 %v4437_v53, %s3669_s22  ;;  %v1933_v51 = vsel %vm1835_vm5, %v1901_v5, %v1676_v30 }
 0x26b   : > { %v2064_v37 = vmul.f32 %v1968_v35, %v1933_v51 }
 0x26c   : > { %v4856_v56 = vpop.permute.xlu1 %1581  ;;  %v4858_v42 = vpop.permute.xlu0 %1259 }
 0x26e   : > { %1159 = vrot.lane.b32.xlu1 %v4404_v27, %s3667_s14  ;;  %1161 = vrot.lane.b32.xlu0 %v4437_v53, %s3667_s14  ;;  %v977_v53 = vrot.slane %v4410_v58, 7 }
 0x270   : > { %v1482_v12 = vpop.permute.xlu1 %1481  ;;  %v4866_v52 = vpop.permute.xlu0 %1387 }
 0x271   : > { %v1868_v8 = vsel %vm1769_vm3, %v4231_v43, %v1482_v12  ;;  %v979_v12 = vrot.slane %v4404_v27, 7 }
 0x272   : > { %1155 = vrot.lane.b32.xlu1 %v4410_v58, %s3667_s14  ;;  %1697 = vrot.lane.b32.xlu0 %v4407_v17, %s3669_s22 }
 0x274   : > { %v1578_v26 = vpop.permute.xlu1 %1577  ;;  %v4875_v9 = vpop.permute.xlu0 %1683 }
 0x275   : > { %6551 = vst [vmem:[#allocation40_spill] sm:$0xff] %v4875_v9  ;;  %v1900_v50 = vsel %vm1802_vm4, %v1868_v8, %v1578_v26  ;;  %v4898_v8 = vsel %vm999_vm2, %v979_v12, %v980_v21 }
 0x276   : > { %1157 = vrot.lane.b32.xlu0 %v4407_v17, %s3667_s14  ;;  %1287 = vrot.lane.b32.xlu1 %v4473_v54, %s3668_s15  ;;  %v1932_v30 = vsel %vm1835_vm5, %v1900_v50, %v1674_v46 }
 0x277   : > { %v2061_v5 = vmul.f32 %v1965_v23, %v1932_v30  ;;  %v6553_v23 = vrot.slane %v4321_v48, 7 }
 0x278   : > { %v4892_v3 = vpop.permute.xlu1 %1261  ;;  %v4894_v33 = vpop.permute.xlu0 %1143 }
 0x279   : > { %6552 = vst [vmem:[#allocation41_spill] sm:$0xff] %v4894_v33  ;;  %v2157_v26 = vpack.c.bf16 %v2064_v37, %v2061_v5  ;;  %v4913_v35 = vsel %vm999_vm2, %v6553_v23, %v977_v53  ;;  %v978_v37 = vrot.slane %v4407_v17, 7 }
 0x27a   : > { %1503 = vrot.lane.b32.xlu0 %v4445_v25, %s3667_s14  ;;  %1415 = vrot.lane.b32.xlu1 %v4898_v8, %s3669_s22  ;;  %6554 = vst [vmem:[#allocation42_spill] sm:$0xff] %v4913_v35 }
 0x27b   : > { %2435 = vmatprep.mubr.bf16.mxu1 %v2157_v26  ;;  %v4926_v5 = vsel %vm999_vm2, %v978_v37, %v979_v12  ;;  %v4946_v17 = vsel %vm999_vm2, %v977_v53, %v978_v37 }
 0x27c   : > { %v4905_v46 = vpop.permute.xlu1 %1389  ;;  %v4907_v51 = vpop.permute.xlu0 %1679  ;;  %6557 = vst [vmem:[#allocation45_spill] sm:$0xff] %v4926_v5  ;;  %6560 = vst [vmem:[#allocation48_spill] sm:$0xff] %v4946_v17 }
 0x27e   : > { %1599 = vrot.lane.b32.xlu0 %v4913_v35, %s3668_s15  ;;  %1505 = vrot.lane.b32.xlu1 %v4441_v31, %s3667_s14 }
 0x280   : > { %v4920_v50 = vpop.permute.xlu1 %1685  ;;  %v4922_v30 = vpop.permute.xlu0 %1139 }
 0x281   : > { %6555 = vst [vmem:[#allocation43_spill] sm:$0xff] %v4920_v50  ;;  %6556 = vst [vmem:[#allocation44_spill] sm:$0xff] %v4922_v30 }
 0x282   : > { %1603 = vrot.lane.b32.xlu1 %v4926_v5, %s3668_s15  ;;  %1281 = vrot.lane.b32.xlu0 %v4445_v25, %s3668_s15 }
 0x284   : > { %v4932_v26 = vpop.permute.xlu1 %1145  ;;  %v4934_v23 = vpop.permute.xlu0 %1487 }
 0x285   : > { %6558 = vst [vmem:[#allocation46_spill] sm:$0xff] %v4932_v26 }
 0x286   : > { %1283 = vrot.lane.b32.xlu1 %v4441_v31, %s3668_s15  ;;  %1409 = vrot.lane.b32.xlu0 %v4913_v35, %s3669_s22 }
 0x288   : > { %v4940_v27 = vpop.permute.xlu1 %1681  ;;  %v4942_v12 = vpop.permute.xlu0 %1583 }
 0x289   : > { %6559 = vst [vmem:[#allocation47_spill] sm:$0xff] %v4940_v27 }
 0x28a   : > { %1411 = vrot.lane.b32.xlu1 %v4946_v17, %s3669_s22  ;;  %1509 = vrot.lane.b32.xlu0 %v4473_v54, %s3667_s14 }
 0x28c   : > { %v4952_v25 = vpop.permute.xlu1 %1141  ;;  %v4954_v31 = vpop.permute.xlu0 %1271 }
 0x28d   : > { %6561 = vst [vmem:[#allocation49_spill] sm:$0xff] %v4952_v25  ;;  %6562 = vst [vmem:[#allocation50_spill] sm:$0xff] %v4954_v31  ;;  %v981_v31 = vrot.slane %v4434_v7, 7 }
 0x28e   : > { %1707 = vrot.lane.b32.xlu1 %v4469_v61, %s3669_s22  ;;  %1605 = vrot.lane.b32.xlu0 %v4898_v8, %s3668_s15 }
 0x28f   : > { %v4999_v25 = vsel %vm999_vm2, %v980_v21, %v981_v31 }
 0x290   : > { %v4960_v35 = vpop.permute.xlu1 %1265  ;;  %v4962_v53 = vpop.permute.xlu0 %1399 }
 0x291   : > { %6563 = vst [vmem:[#allocation51_spill] sm:$0xff] %v4960_v35  ;;  %6564 = vst [vmem:[#allocation52_spill] sm:$0xff] %v4962_v53 }
 0x292   : > { %1167 = vrot.lane.b32.xlu1 %v4469_v61, %s3667_s14  ;;  %1507 = vrot.lane.b32.xlu0 %v4456_v40, %s3667_s14 }
 0x294   : > { %v4968_v54 = vpop.permute.xlu1 %1393  ;;  %v4970_v37 = vpop.permute.xlu0 %1491 }
 0x295   : > { %6565 = vst [vmem:[#allocation53_spill] sm:$0xff] %v4968_v54 }
 0x296   : > { %1703 = vrot.lane.b32.xlu1 %v4434_v7, %s3669_s22  ;;  %1601 = vrot.lane.b32.xlu0 %v4946_v17, %s3668_s15 }
 0x298   : > { %v4976_v58 = vpop.permute.xlu1 %1493  ;;  %v4978_v26 = vpop.permute.xlu0 %1587 }
 0x299   : > { %6566 = vst [vmem:[#allocation54_spill] sm:$0xff] %v4976_v58  ;;  %6567 = vst [vmem:[#allocation55_spill] sm:$0xff] %v4978_v26 }
 0x29a   : > { %1163 = vrot.lane.b32.xlu1 %v4434_v7, %s3667_s14  ;;  %1285 = vrot.lane.b32.xlu0 %v4456_v40, %s3668_s15  ;;  %v6571_v40 = vld [vmem:[#allocation18_spill] sm:$0xff] }
 0x29b   : > { %v984_v35 = vrot.slane %v6571_v40, 7 }
 0x29c   : > { %v4984_v48 = vpop.permute.xlu1 %1589  ;;  %v4986_v53 = vpop.permute.xlu0 %1267 }
 0x29d   : > { %6568 = vst [vmem:[#allocation56_spill] sm:$0xff] %v4984_v48  ;;  %6569 = vst [vmem:[#allocation57_spill] sm:$0xff] %v4986_v53 }
 0x29e   : > { %1511 = vrot.lane.b32.xlu1 %v4489_v13, %s3667_s14  ;;  %1413 = vrot.lane.b32.xlu0 %v4926_v5, %s3669_s22  ;;  %v983_v5 = vrot.slane %v4469_v61, 7 }
 0x2a0   : > { %v4993_v17 = vpop.permute.xlu1 %1489  ;;  %v4995_v33 = vpop.permute.xlu0 %1395  ;;  %v5021_v48 = vsel %vm999_vm2, %v983_v5, %v984_v35 }
 0x2a1   : > { %6570 = vst [vmem:[#allocation58_spill] sm:$0xff] %v4995_v33 }
 0x2a2   : > { %1607 = vrot.lane.b32.xlu1 %v4999_v25, %s3668_s15  ;;  %1709 = vrot.lane.b32.xlu0 %v6571_v40, %s3669_s22 }
 0x2a4   : > { %v5005_v50 = vpop.permute.xlu1 %1585  ;;  %v5007_v54 = vpop.permute.xlu0 %1691 }
 0x2a5   : > { %6572 = vst [vmem:[#allocation18_spill] sm:$0xff] %v5007_v54  ;;  %v6575_v54 = vld [vmem:[#allocation19_spill] sm:$0xff] }
 0x2a6   : > { %1295 = vrot.lane.b32.xlu1 %v4505_v22, %s3668_s15  ;;  %1169 = vrot.lane.b32.xlu0 %v6571_v40, %s3667_s14  ;;  %v982_v30 = vrot.slane %v6575_v54, 7 }
 0x2a8   : > { %v5015_v21 = vpop.permute.xlu1 %1269  ;;  %v5017_v33 = vpop.permute.xlu0 %1151  ;;  %v5042_v16 = vsel %vm999_vm2, %v982_v30, %v983_v5 }
 0x2a9   : > { %6573 = vst [vmem:[#allocation59_spill] sm:$0xff] %v5015_v21  ;;  %6574 = vst [vmem:[#allocation60_spill] sm:$0xff] %v5017_v33 }
 0x2aa   : > { %1423 = vrot.lane.b32.xlu1 %v5021_v48, %s3669_s22  ;;  %1705 = vrot.lane.b32.xlu0 %v6575_v54, %s3669_s22 }
 0x2ac   : > { %v5027_v53 = vpop.permute.xlu1 %1397  ;;  %v5029_v58 = vpop.permute.xlu0 %1687 }
 0x2ad   : > { %6576 = vst [vmem:[#allocation19_spill] sm:$0xff] %v5027_v53  ;;  %6577 = vst [vmem:[#allocation61_spill] sm:$0xff] %v5029_v58 }
 0x2ae   : > { %1515 = vrot.lane.b32.xlu1 %v4529_v38, %s3667_s14  ;;  %1165 = vrot.lane.b32.xlu0 %v6575_v54, %s3667_s14 }
 0x2b0   : > { %v5036_v33 = vpop.permute.xlu1 %1693  ;;  %v5038_v21 = vpop.permute.xlu0 %1147 }
 0x2b1   : > { %6578 = vst [vmem:[#allocation62_spill] sm:$0xff] %v5036_v33  ;;  %6579 = vst [vmem:[#allocation63_spill] sm:$0xff] %v5038_v21  ;;  %v5062_v21 = vsel %vm999_vm2, %v981_v31, %v982_v30  ;;  %v6588_v31 = vld [vmem:[#allocation22_spill] sm:$0xff] }
 0x2b2   : > { %1611 = vrot.lane.b32.xlu1 %v5042_v16, %s3668_s15  ;;  %1289 = vrot.lane.b32.xlu0 %v4489_v13, %s3668_s15 }
 0x2b4   : > { %v5048_v53 = vpop.permute.xlu1 %1689  ;;  %v5050_v58 = vpop.permute.xlu0 %1153 }
 0x2b5   : > { %6580 = vst [vmem:[#allocation64_spill] sm:$0xff] %v5048_v53  ;;  %6581 = vst [vmem:[#allocation65_spill] sm:$0xff] %v5050_v58 }
 0x2b6   : > { %1291 = vrot.lane.b32.xlu1 %v4525_v1, %s3668_s15  ;;  %1417 = vrot.lane.b32.xlu0 %v4999_v25, %s3669_s22 }
 0x2b8   : > { %v5056_v33 = vpop.permute.xlu1 %1149  ;;  %v5058_v5 = vpop.permute.xlu0 %1495 }
 0x2b9   : > { %6582 = vst [vmem:[#allocation66_spill] sm:$0xff] %v5056_v33  ;;  %6583 = vst [vmem:[#allocation67_spill] sm:$0xff] %v5058_v5 }
 0x2ba   : > { %1419 = vrot.lane.b32.xlu1 %v5062_v21, %s3669_s22  ;;  %1517 = vrot.lane.b32.xlu0 %v4505_v22, %s3667_s14  ;;  %v3642_v22 = vld [vmem:[%s6431_s5 + $0x40] sm:$0xff]  }
 0x2bb   : > { %3287 = vmatprep.subr.bf16.mxu1 %v3642_v22  ;;  %v985_v22 = vrot.slane %v6588_v31, 7 }
 0x2bc   : > { %v5068_v13 = vpop.permute.xlu1 %1273  ;;  %v5070_v58 = vpop.permute.xlu0 %1591 }
 0x2bd   : > { %6584 = vst [vmem:[#allocation68_spill] sm:$0xff] %v5068_v13  ;;  %6585 = vst [vmem:[#allocation69_spill] sm:$0xff] %v5070_v58  ;;  %v3643_v13 = vld [vmem:[%s6431_s5] sm:$0xff]  }
 0x2be   : > { %1715 = vrot.lane.b32.xlu1 %v4514_v62, %s3669_s22  ;;  %1613 = vrot.lane.b32.xlu0 %v5021_v48, %s3668_s15 }
 0x2bf   : > { %3288 = vmatpush3.bf16.msra.mxu1 %v3643_v13 }
 0x2c0   : > { %v5076_v33 = vpop.permute.xlu1 %1401  ;;  %v5078_v30 = vpop.permute.xlu0 %1279 }
 0x2c1   : > { %6586 = vst [vmem:[#allocation70_spill] sm:$0xff] %v5076_v33  ;;  %6587 = vst [vmem:[#allocation71_spill] sm:$0xff] %v5078_v30  ;;  %v3644_v30 = vld [vmem:[%s6431_s5 + $0x48] sm:$0xff]  }
 0x2c2   : > { %1711 = vrot.lane.b32.xlu1 %v6588_v31, %s3669_s22  ;;  %1513 = vrot.lane.b32.xlu0 %v4525_v1, %s3667_s14  ;;  %v3645_v1 = vld [vmem:[%s6431_s5 + $0x8] sm:$0xff]  }
 0x2c3   : > { %3289 = vmatprep.subr.bf16.mxu1 %v3644_v30  ;;  %v3647_v30 = vld [vmem:[%s6431_s5 + $0x10] sm:$0xff]  }
 0x2c4   : > { %v5090_v53 = vpop.permute.xlu1 %1501  ;;  %v5092_v58 = vpop.permute.xlu0 %1407  ;;  %3290 = vmatpush3.bf16.msra.mxu1 %v3645_v1  ;;  %v3648_v1 = vld [vmem:[%s6431_s5 + $0x58] sm:$0xff]  }
 0x2c5   : > { %6589 = vst [vmem:[#allocation22_spill] sm:$0xff] %v5090_v53  ;;  %6590 = vst [vmem:[#allocation72_spill] sm:$0xff] %v5092_v58 }
 0x2c6   : > { %1171 = vrot.lane.b32.xlu1 %v6588_v31, %s3667_s14  ;;  %1609 = vrot.lane.b32.xlu0 %v5062_v21, %s3668_s15 }
 0x2c8   : > { %v5104_v33 = vpop.permute.xlu1 %1597  ;;  %v5106_v53 = vpop.permute.xlu0 %1499 }
 0x2c9   : > { %6591 = vst [vmem:[#allocation73_spill] sm:$0xff] %v5104_v33  ;;  %6592 = vst [vmem:[#allocation74_spill] sm:$0xff] %v5106_v53  ;;  %v3646_v33 = vld [vmem:[%s6431_s5 + $0x50] sm:$0xff]  }
 0x2ca   : > { %v5109_v58 = vpop.f32.mrb[32].mxu0  ;;  %1519 = vrot.lane.b32.xlu1 %v6594_v2, %s3667_s14  ;;  %1293 = vrot.lane.b32.xlu0 %v4529_v38, %s3668_s15  ;;  %v5133_v38 = vsel %vm999_vm2, %v984_v35, %v985_v22 }
 0x2cb   : > { %6593 = vst [vmem:[#allocation75_spill] sm:$0xff] %v5109_v58  ;;  %v5115_v13 = vpop.f32.mrb[33].mxu0  ;;  %3291 = vmatprep.subr.bf16.mxu1 %v3646_v33  ;;  %v6602_v33 = vld [vmem:[#allocation23_spill] sm:$0xff] }
 0x2cc   : > { %6595 = vst [vmem:[#allocation24_spill] sm:$0xff] %v5115_v13  ;;  %v5123_v53 = vpop.f32.mrb[34].mxu0  ;;  %v5125_v58 = vpop.permute.xlu1 %1497  ;;  %3292 = vmatpush3.bf16.msra.mxu1 %v3647_v30  ;;  %v986_v13 = vrot.slane %v6602_v33, 7  ;;  %v3650_v30 = vld [vmem:[%s6431_s5 + $0x60] sm:$0xff]  }
 0x2cd   : > { %6596 = vst [vmem:[#allocation76_spill] sm:$0xff] %v5123_v53  ;;  %6597 = vst [vmem:[#allocation77_spill] sm:$0xff] %v5125_v58  ;;  %v5127_v5 = vpop.f32.mrb[35].mxu0  ;;  %v5129_v9 = vpop.permute.xlu0 %1595  ;;  %v3649_v53 = vld [vmem:[%s6431_s5 + $0x18] sm:$0xff]   ;;  %3293 = vmatprep.subr.bf16.mxu1 %v3648_v1  ;;  %v3651_v1 = vld [vmem:[%s6431_s5 + $0x20] sm:$0xff]  }
 0x2ce   : > { %6598 = vst [vmem:[#allocation78_spill] sm:$0xff] %v5127_v5  ;;  %6599 = vst [vmem:[#allocation79_spill] sm:$0xff] %v5129_v9  ;;  %1615 = vrot.lane.b32.xlu1 %v5133_v38, %s3668_s15  ;;  %1421 = vrot.lane.b32.xlu0 %v5042_v16, %s3669_s22 }
 0x2d0   : > { %v5145_v5 = vpop.permute.xlu1 %1593  ;;  %3294 = vmatpush3.bf16.msra.mxu1 %v3649_v53  ;;  %v3652_v53 = vld [vmem:[%s6431_s5 + $0x68] sm:$0xff]  }
 0x2d1   : > { %6600 = vst [vmem:[#allocation80_spill] sm:$0xff] %v5145_v5  ;;  %v5147_v35 = vpop.permute.xlu0 %1275  ;;  %v987_v5 = vrot.slane %v4514_v62, 7  ;;  %3295 = vmatprep.subr.bf16.mxu1 %v3650_v30  ;;  %v3653_v30 = vld [vmem:[%s6431_s5 + $0x28] sm:$0xff]  }
 0x2d2   : > { %6601 = vst [vmem:[#allocation81_spill] sm:$0xff] %v5147_v35  ;;  %v5150_v9 = vpop.f32.mrb[36].mxu0  ;;  %1523 = vrot.lane.b32.xlu1 %v4596_v47, %s3667_s14  ;;  %1713 = vrot.lane.b32.xlu0 %v6602_v33, %s3669_s22 }
 0x2d3   : > { %6603 = vst [vmem:[#allocation23_spill] sm:$0xff] %v5150_v9  ;;  %v5159_v58 = vpop.f32.mrb[37].mxu0  ;;  %v5175_v15 = vsel %vm999_vm2, %v986_v13, %v987_v5 }
 0x2d4   : > { %6604 = vst [vmem:[#allocation82_spill] sm:$0xff] %v5159_v58  ;;  %v5165_v9 = vpop.f32.mrb[38].mxu0  ;;  %v5167_v35 = vpop.permute.xlu1 %1277  ;;  %6609 = vst [vmem:[#allocation87_spill] sm:$0xff] %v5175_v15  ;;  %3296 = vmatpush3.bf16.msra.mxu1 %v3651_v1  ;;  %v3654_v1 = vld [vmem:[%s6431_s5 + $0x70] sm:$0xff]  }
 0x2d5   : > { %6605 = vst [vmem:[#allocation83_spill] sm:$0xff] %v5165_v9  ;;  %6606 = vst [vmem:[#allocation84_spill] sm:$0xff] %v5167_v35  ;;  %v5169_v55 = vpop.f32.mrb[39].mxu0  ;;  %v5171_v27 = vpop.permute.xlu0 %1403  ;;  %3297 = vmatprep.subr.bf16.mxu1 %v3652_v53 }
 0x2d6   : > { %6607 = vst [vmem:[#allocation85_spill] sm:$0xff] %v5169_v55  ;;  %6608 = vst [vmem:[#allocation86_spill] sm:$0xff] %v5171_v27  ;;  %1619 = vrot.lane.b32.xlu1 %v5175_v15, %s3668_s15  ;;  %1297 = vrot.lane.b32.xlu0 %v6594_v2, %s3668_s15 }
 0x2d8   : > { %v5187_v9 = vpop.permute.xlu1 %1405  ;;  %3298 = vmatpush3.bf16.msra.mxu1 %v3653_v30  ;;  %v3656_v30 = vld [vmem:[%s6431_s5 + $0x78] sm:$0xff]  }
 0x2d9   : > { %6610 = vst [vmem:[#allocation88_spill] sm:$0xff] %v5187_v9  ;;  %v5189_v55 = vpop.permute.xlu0 %1695  ;;  %3299 = vmatprep.subr.bf16.mxu1 %v3654_v1 }
 0x2da   : > { %6611 = vst [vmem:[#allocation89_spill] sm:$0xff] %v5189_v55  ;;  %v5191_v58 = vpop.f32.mrb[40].mxu0  ;;  %1299 = vrot.lane.b32.xlu1 %v4592_v63, %s3668_s15  ;;  %1425 = vrot.lane.b32.xlu0 %v5133_v38, %s3669_s22 }
 0x2db   : > { %6612 = vst [vmem:[#allocation90_spill] sm:$0xff] %v5191_v58  ;;  %v5197_v2 = vpop.f32.mrb[41].mxu0  ;;  %v3655_v58 = vld [vmem:[%s6431_s5 + $0x30] sm:$0xff]  }
 0x2dc   : > { %6613 = vst [vmem:[#allocation91_spill] sm:$0xff] %v5197_v2  ;;  %v5202_v35 = vpop.f32.mrb[42].mxu0  ;;  %v5204_v53 = vpop.permute.xlu1 %1699  ;;  %v5215_v2 = vsel %vm999_vm2, %v985_v22, %v986_v13  ;;  %3300 = vmatpush3.bf16.msra.mxu1 %v3655_v58  ;;  %v6494_v58 = vrot.slane %v4675_v49, 7 }
 0x2dd   : > { %6614 = vst [vmem:[#allocation92_spill] sm:$0xff] %v5202_v35  ;;  %6615 = vst [vmem:[#allocation93_spill] sm:$0xff] %v5204_v53  ;;  %v5209_v9 = vpop.f32.mrb[43].mxu0  ;;  %v5211_v55 = vpop.permute.xlu0 %1701  ;;  %v3657_v35 = vld [vmem:[%s6431_s5 + $0x38] sm:$0xff]   ;;  %3301 = vmatprep.subr.bf16.mxu1 %v3656_v30 }
 0x2de   : > { %6616 = vst [vmem:[#allocation94_spill] sm:$0xff] %v5209_v9  ;;  %6617 = vst [vmem:[#allocation95_spill] sm:$0xff] %v5211_v55  ;;  %1427 = vrot.lane.b32.xlu1 %v5215_v2, %s3669_s22  ;;  %1525 = vrot.lane.b32.xlu0 %v4563_v6, %s3667_s14 }
 0x2df   : > { %6618 = vst [vmem:[#allocation96_spill] sm:$0xff] %v5215_v2 }
 0x2e0   : > { %v5227_v9 = vpop.permute.xlu1 %1159  ;;  %3302 = vmatpush3.bf16.msra.mxu1 %v3657_v35  ;;  %v6626_v35 = vrot.slane %v4231_v43, 7 }
 0x2e1   : > { %6619 = vst [vmem:[#allocation97_spill] sm:$0xff] %v5227_v9  ;;  %v5229_v22 = vpop.permute.xlu0 %1161 }
 0x2e2   : > { %1129 = vrot.lane.b32.xlu1 %v4675_v49, %s3667_s14  ;;  %1521 = vrot.lane.b32.xlu0 %v4592_v63, %s3667_s14 }
 0x2e4   : > { %v5235_v13 = vpop.permute.xlu1 %1155 }
 0x2e5   : > { %6620 = vst [vmem:[#allocation98_spill] sm:$0xff] %v5235_v13  ;;  %v5238_v1 = vpop.permute.xlu0 %1697  ;;  %v5258_v13 = vsel %vm999_vm2, %v6494_v58, %v6626_v35 }
 0x2e6   : > { %6621 = vst [vmem:[#allocation99_spill] sm:$0xff] %v5238_v1  ;;  %v5240_v55 = vpop.f32.mrb[44].mxu0  ;;  %1257 = vrot.lane.b32.xlu1 %v4733_v44, %s3668_s15  ;;  %1617 = vrot.lane.b32.xlu0 %v5215_v2, %s3668_s15  ;;  %v6629_v1 = vld [vmem:[#allocation21_spill] sm:$0xff] }
 0x2e7   : > { %6622 = vst [vmem:[#allocation100_spill] sm:$0xff] %v5240_v55  ;;  %v5246_v30 = vpop.f32.mrb[45].mxu0  ;;  %v988_v27 = vrot.slane %v6629_v1, 7 }
 0x2e8   : > { %6623 = vst [vmem:[#allocation101_spill] sm:$0xff] %v5246_v30  ;;  %v5248_v9 = vpop.f32.mrb[46].mxu0  ;;  %v5250_v63 = vpop.permute.xlu1 %1287 }
 0x2e9   : > { %6624 = vst [vmem:[#allocation102_spill] sm:$0xff] %v5248_v9  ;;  %6625 = vst [vmem:[#allocation103_spill] sm:$0xff] %v5250_v63  ;;  %v5260_v55 = vpop.f32.mrb[47].mxu0  ;;  %v5262_v53 = vpop.permute.xlu0 %1157  ;;  %v5275_v35 = vsel %vm999_vm2, %v987_v5, %v988_v27  ;;  %v989_v5 = vrot.slane %v4588_v36, 7 }
 0x2ea   : > { %6627 = vst [vmem:[#allocation104_spill] sm:$0xff] %v5260_v55  ;;  %6628 = vst [vmem:[#allocation105_spill] sm:$0xff] %v5262_v53  ;;  %1385 = vrot.lane.b32.xlu1 %v5258_v13, %s3669_s22  ;;  %1173 = vrot.lane.b32.xlu0 %v6602_v33, %s3667_s14 }
 0x2eb   : > { %6632 = vst [vmem:[#allocation108_spill] sm:$0xff] %v5275_v35 }
 0x2ec   : > { %v5269_v9 = vpop.permute.xlu1 %1415 }
 0x2ed   : > { %6630 = vst [vmem:[#allocation106_spill] sm:$0xff] %v5269_v9  ;;  %v5271_v30 = vpop.permute.xlu0 %1503 }
 0x2ee   : > { %6631 = vst [vmem:[#allocation107_spill] sm:$0xff] %v5271_v30  ;;  %v5277_v58 = vpop.f32.mrb[48].mxu0  ;;  %1527 = vrot.lane.b32.xlu1 %v4615_v60, %s3667_s14  ;;  %1621 = vrot.lane.b32.xlu0 %v5275_v35, %s3668_s15 }
 0x2ef   : > { %6633 = vst [vmem:[#allocation109_spill] sm:$0xff] %v5277_v58  ;;  %v5283_v55 = vpop.f32.mrb[49].mxu0 }
 0x2f0   : > { %6634 = vst [vmem:[#allocation110_spill] sm:$0xff] %v5283_v55  ;;  %v5285_v63 = vpop.f32.mrb[50].mxu0  ;;  %v5287_v53 = vpop.permute.xlu1 %1505 }
 0x2f1   : > { %6635 = vst [vmem:[#allocation111_spill] sm:$0xff] %v5285_v63  ;;  %6636 = vst [vmem:[#allocation112_spill] sm:$0xff] %v5287_v53  ;;  %v5289_v9 = vpop.f32.mrb[51].mxu0  ;;  %v5291_v30 = vpop.permute.xlu0 %1599  ;;  %v5304_v63 = vsel %vm999_vm2, %v988_v27, %v989_v5 }
 0x2f2   : > { %6637 = vst [vmem:[#allocation113_spill] sm:$0xff] %v5289_v9  ;;  %6638 = vst [vmem:[#allocation114_spill] sm:$0xff] %v5291_v30  ;;  %1175 = vrot.lane.b32.xlu1 %v4514_v62, %s3667_s14  ;;  %1301 = vrot.lane.b32.xlu0 %v4596_v47, %s3668_s15 }
 0x2f3   : > { %6641 = vst [vmem:[#allocation117_spill] sm:$0xff] %v5304_v63 }
 0x2f4   : > { %v5298_v58 = vpop.permute.xlu1 %1603 }
 0x2f5   : > { %6639 = vst [vmem:[#allocation115_spill] sm:$0xff] %v5298_v58  ;;  %v5300_v2 = vpop.permute.xlu0 %1281 }
 0x2f6   : > { %6640 = vst [vmem:[#allocation116_spill] sm:$0xff] %v5300_v2  ;;  %v5306_v55 = vpop.f32.mrb[52].mxu0  ;;  %1623 = vrot.lane.b32.xlu1 %v5304_v63, %s3668_s15  ;;  %1717 = vrot.lane.b32.xlu0 %v6629_v1, %s3669_s22 }
 0x2f7   : > { %6642 = vst [vmem:[#allocation118_spill] sm:$0xff] %v5306_v55  ;;  %v5312_v9 = vpop.f32.mrb[53].mxu0 }
 0x2f8   : > { %6643 = vst [vmem:[#allocation119_spill] sm:$0xff] %v5312_v9  ;;  %v5314_v53 = vpop.f32.mrb[54].mxu0  ;;  %v5316_v47 = vpop.permute.xlu1 %1283 }
 0x2f9   : > { %6644 = vst [vmem:[#allocation120_spill] sm:$0xff] %v5314_v53  ;;  %6645 = vst [vmem:[#allocation121_spill] sm:$0xff] %v5316_v47  ;;  %v5318_v58 = vpop.f32.mrb[55].mxu0  ;;  %v5320_v2 = vpop.permute.xlu0 %1409 }
 0x2fa   : > { %6646 = vst [vmem:[#allocation122_spill] sm:$0xff] %v5318_v58  ;;  %6647 = vst [vmem:[#allocation123_spill] sm:$0xff] %v5320_v2  ;;  %1303 = vrot.lane.b32.xlu1 %v4563_v6, %s3668_s15  ;;  %1429 = vrot.lane.b32.xlu0 %v5175_v15, %s3669_s22 }
 0x2fc   : > { %v5326_v27 = vpop.permute.xlu1 %1411 }
 0x2fd   : > { %6648 = vst [vmem:[#allocation124_spill] sm:$0xff] %v5326_v27  ;;  %v5328_v55 = vpop.permute.xlu0 %1509  ;;  %v6655_v27 = vld [vmem:[#allocation29_spill] sm:$0xff] }
 0x2fe   : > { %6649 = vst [vmem:[#allocation125_spill] sm:$0xff] %v5328_v55  ;;  %v5330_v30 = vpop.f32.mrb[56].mxu0  ;;  %1719 = vrot.lane.b32.xlu1 %v4588_v36, %s3669_s22  ;;  %1529 = vrot.lane.b32.xlu0 %v4658_v0, %s3667_s14  ;;  %v990_v55 = vrot.slane %v6655_v27, 7 }
 0x2ff   : > { %6650 = vst [vmem:[#allocation126_spill] sm:$0xff] %v5330_v30  ;;  %v5336_v53 = vpop.f32.mrb[57].mxu0 }
 0x300   : > { %6651 = vst [vmem:[#allocation127_spill] sm:$0xff] %v5336_v53  ;;  %v5338_v58 = vpop.f32.mrb[58].mxu0  ;;  %v5340_v6 = vpop.permute.xlu1 %1707 }
 0x301   : > { %6652 = vst [vmem:[#allocation128_spill] sm:$0xff] %v5338_v58  ;;  %v5342_v9 = vpop.f32.mrb[59].mxu0  ;;  %v5344_v2 = vpop.permute.xlu0 %1605  ;;  %v5355_v58 = vsel %vm999_vm2, %v989_v5, %v990_v55  ;;  %v6664_v5 = vld [vmem:[#allocation25_spill] sm:$0xff] }
 0x302   : > { %6653 = vst [vmem:[#allocation129_spill] sm:$0xff] %v5342_v9  ;;  %6654 = vst [vmem:[#allocation130_spill] sm:$0xff] %v5344_v2  ;;  %1431 = vrot.lane.b32.xlu1 %v5275_v35, %s3669_s22  ;;  %1177 = vrot.lane.b32.xlu0 %v6629_v1, %s3667_s14 }
 0x303   : > { %6657 = vst [vmem:[#allocation132_spill] sm:$0xff] %v5355_v58 }
 0x304   : > { %v1168_v30 = vpop.permute.xlu1 %1167 }
 0x305   : > { %v5351_v47 = vpop.permute.xlu0 %1507 }
 0x306   : > { %6656 = vst [vmem:[#allocation131_spill] sm:$0xff] %v5351_v47  ;;  %v5357_v53 = vpop.f32.mrb[60].mxu0  ;;  %1531 = vrot.lane.b32.xlu1 %v4662_v45, %s3667_s14  ;;  %1625 = vrot.lane.b32.xlu0 %v5355_v58, %s3668_s15 }
 0x307   : > { %6658 = vst [vmem:[#allocation133_spill] sm:$0xff] %v5357_v53  ;;  %v5363_v9 = vpop.f32.mrb[61].mxu0  ;;  %v991_v53 = vrot.slane %v6664_v5, 7 }
 0x308   : > { %6659 = vst [vmem:[#allocation134_spill] sm:$0xff] %v5363_v9  ;;  %v5365_v35 = vpop.f32.mrb[62].mxu0  ;;  %v5367_v2 = vpop.permute.xlu1 %1703 }
 0x309   : > { %6660 = vst [vmem:[#allocation135_spill] sm:$0xff] %v5365_v35  ;;  %6661 = vst [vmem:[#allocation136_spill] sm:$0xff] %v5367_v2  ;;  %v5369_v15 = vpop.f32.mrb[63].mxu0  ;;  %v5371_v47 = vpop.permute.xlu0 %1601  ;;  %v5382_v35 = vsel %vm999_vm2, %v990_v55, %v991_v53  ;;  %v6669_v2 = vld [vmem:[#allocation27_spill] sm:$0xff] }
 0x30a   : > { %6662 = vst [vmem:[#allocation137_spill] sm:$0xff] %v5369_v15  ;;  %6663 = vst [vmem:[#allocation138_spill] sm:$0xff] %v5371_v47  ;;  %1179 = vrot.lane.b32.xlu1 %v4588_v36, %s3667_s14  ;;  %1305 = vrot.lane.b32.xlu0 %v4615_v60, %s3668_s15 }
 0x30c   : > { %v1164_v1 = vpop.permute.xlu1 %1163 }
 0x30d   : > { %v5378_v62 = vpop.permute.xlu0 %1285 }
 0x30e   : > { %6665 = vst [vmem:[#allocation25_spill] sm:$0xff] %v5378_v62  ;;  %1627 = vrot.lane.b32.xlu1 %v5382_v35, %s3668_s15  ;;  %1721 = vrot.lane.b32.xlu0 %v6655_v27, %s3669_s22 }
 0x310   : > { %v5388_v15 = vpop.permute.xlu1 %1511 }
 0x311   : > { %6666 = vst [vmem:[#allocation139_spill] sm:$0xff] %v5388_v15  ;;  %v5390_v9 = vpop.permute.xlu0 %1413 }
 0x312   : > { %6667 = vst [vmem:[#allocation140_spill] sm:$0xff] %v5390_v9  ;;  %1307 = vrot.lane.b32.xlu1 %v4658_v0, %s3668_s15  ;;  %1433 = vrot.lane.b32.xlu0 %v5304_v63, %s3669_s22  ;;  %v992_v9 = vrot.slane %v6669_v2, 7  ;;  %v1789_v0 = vsel %vm1769_vm3, %v5042_v16, %v1168_v30  ;;  %v993_v16 = vrot.slane %v4654_v20, 7 }
 0x314   : > { %v5396_v60 = vpop.permute.xlu1 %1607  ;;  %v5417_v26 = vsel %vm999_vm2, %v991_v53, %v992_v9 }
 0x315   : > { %6668 = vst [vmem:[#allocation141_spill] sm:$0xff] %v5396_v60  ;;  %v1710_v55 = vpop.permute.xlu0 %1709 }
 0x316   : > { %1723 = vrot.lane.b32.xlu1 %v6664_v5, %s3669_s22  ;;  %1533 = vrot.lane.b32.xlu0 %v4631_v59, %s3667_s14 }
 0x318   : > { %v1296_v36 = vpop.permute.xlu1 %1295 }
 0x319   : > { %v5402_v62 = vpop.permute.xlu0 %1169  ;;  %v1822_v63 = vsel %vm1802_vm4, %v1789_v0, %v1296_v36 }
 0x31a   : > { %1435 = vrot.lane.b32.xlu1 %v5355_v58, %s3669_s22  ;;  %1181 = vrot.lane.b32.xlu0 %v6655_v27, %s3667_s14 }
 0x31c   : > { %v1424_v60 = vpop.permute.xlu1 %1423 }
 0x31d   : > { %v5413_v15 = vsel %vm1835_vm5, %v1822_v63, %v1424_v60  ;;  %v1706_v47 = vpop.permute.xlu0 %1705  ;;  %v5435_v60 = vsel %vm999_vm2, %v992_v9, %v993_v16  ;;  %v1787_v9 = vsel %vm1769_vm3, %v4999_v25, %v1164_v1 }
 0x31e   : > { %1535 = vrot.lane.b32.xlu1 %v4688_v19, %s3667_s14  ;;  %1629 = vrot.lane.b32.xlu0 %v5417_v26, %s3668_s15 }
 0x320   : > { %v1516_v58 = vpop.permute.xlu1 %1515 }
 0x321   : > { %v1166_v27 = vpop.permute.xlu0 %1165  ;;  %v1885_v36 = vsel %vm1769_vm3, %v6575_v54, %v1516_v58 }
 0x322   : > { %1183 = vrot.lane.b32.xlu1 %v6664_v5, %s3667_s14  ;;  %1309 = vrot.lane.b32.xlu0 %v4662_v45, %s3668_s15  ;;  %v1786_v45 = vsel %vm1769_vm3, %v4898_v8, %v5229_v22  ;;  %v2015_v8 = vld [vmem:[%s6427_s1 + $0x198] sm:$0xff] }
 0x324   : > { %v1612_v53 = vpop.permute.xlu1 %1611 }
 0x325   : > { %v1917_v30 = vsel %vm1802_vm4, %v1885_v36, %v1612_v53  ;;  %v1290_v63 = vpop.permute.xlu0 %1289  ;;  %v2012_v53 = vld [vmem:[%s6427_s1 + $0x180] sm:$0xff] }
 0x326   : > { %1631 = vrot.lane.b32.xlu1 %v5435_v60, %s3668_s15  ;;  %1725 = vrot.lane.b32.xlu0 %v6669_v2, %s3669_s22  ;;  %v1819_v58 = vsel %vm1802_vm4, %v1786_v45, %v1290_v63 }
 0x328   : > { %v1292_v54 = vpop.permute.xlu1 %1291 }
 0x329   : > { %v1418_v0 = vpop.permute.xlu0 %1417  ;;  %v1820_v22 = vsel %vm1802_vm4, %v1787_v9, %v1292_v54 }
 0x32a   : > { %v1852_v36 = vsel %vm1835_vm5, %v1819_v58, %v1418_v0  ;;  %1311 = vrot.lane.b32.xlu1 %v4631_v59, %s3668_s15  ;;  %1437 = vrot.lane.b32.xlu0 %v5382_v35, %s3669_s22 }
 0x32b   : > { %v5460_v58 = vmul.f32 %v2012_v53, %v1852_v36 }
 0x32c   : > { %v1420_v63 = vpop.permute.xlu1 %1419 }
 0x32d   : > { %v1853_v45 = vsel %vm1835_vm5, %v1820_v22, %v1420_v63  ;;  %v1518_v59 = vpop.permute.xlu0 %1517  ;;  %v2016_v63 = vld [vmem:[%s6427_s1 + $0x1a0] sm:$0xff] }
 0x32e   : > { %v5462_v0 = vmul.f32 %v2015_v8, %v1853_v45  ;;  %1727 = vrot.lane.b32.xlu1 %v4654_v20, %s3669_s22  ;;  %1185 = vrot.lane.b32.xlu0 %v6669_v2, %s3667_s14  ;;  %v1886_v54 = vsel %vm1769_vm3, %v4469_v61, %v1518_v59  ;;  %v1949_v45 = vsel %vm1835_vm5, %v1917_v30, %v5340_v6 }
 0x32f   : > { %v1788_v30 = vsel %vm1769_vm3, %v5062_v21, %v1166_v27  ;;  %v2019_v21 = vld [vmem:[%s6427_s1 + $0x1b8] sm:$0xff] }
 0x330   : > { %v1716_v25 = vpop.permute.xlu1 %1715 }
 0x331   : > { %v1614_v9 = vpop.permute.xlu0 %1613 }
 0x332   : > { %v1918_v22 = vsel %vm1802_vm4, %v1886_v54, %v1614_v9  ;;  %1439 = vrot.lane.b32.xlu1 %v5417_v26, %s3669_s22  ;;  %1313 = vrot.lane.b32.xlu0 %v4688_v19, %s3668_s15 }
 0x333   : > { %v1950_v36 = vsel %vm1835_vm5, %v1918_v22, %v1710_v55  ;;  %v2013_v55 = vld [vmem:[%s6427_s1 + $0x188] sm:$0xff]  ;;  %v5498_v22 = vmul.f32 %v2016_v63, %v1949_v45  ;;  %v2022_v45 = vld [vmem:[%s6427_s1 + $0x1d0] sm:$0xff] }
 0x334   : > { %v1712_v53 = vpop.permute.xlu1 %1711  ;;  %v2021_v63 = vld [vmem:[%s6427_s1 + $0x1c8] sm:$0xff] }
 0x335   : > { %v1514_v8 = vpop.permute.xlu0 %1513 }
 0x336   : > { %1187 = vrot.lane.b32.xlu1 %v4654_v20, %s3667_s14  ;;  %1729 = vrot.lane.b32.xlu0 %v4651_v14, %s3669_s22  ;;  %v1884_v19 = vsel %vm1769_vm3, %v4434_v7, %v1514_v8 }
 0x338   : > { %v1172_v61 = vpop.permute.xlu1 %1171 }
 0x339   : > { %v1610_v59 = vpop.permute.xlu0 %1609 }
 0x33a   : > { %v1916_v54 = vsel %vm1802_vm4, %v1884_v19, %v1610_v59  ;;  %1731 = vrot.lane.b32.xlu1 %v4640_v39, %s3669_s22  ;;  %1441 = vrot.lane.b32.xlu0 %v5435_v60, %s3669_s22 }
 0x33b   : > { %v1948_v9 = vsel %vm1835_vm5, %v1916_v54, %v1706_v47 }
 0x33c   : > { %v5500_v6 = vmul.f32 %v2013_v55, %v1948_v9  ;;  %v1520_v7 = vpop.permute.xlu1 %1519  ;;  %v2018_v55 = vld [vmem:[%s6427_s1 + $0x1b0] sm:$0xff] }
 0x33d   : > { %v1294_v8 = vpop.permute.xlu0 %1293  ;;  %v1887_v27 = vsel %vm1769_vm3, %v6571_v40, %v1520_v7  ;;  %v995_v40 = vrot.slane %v4640_v39, 7  ;;  %v5534_v7 = vmul.f32 %v2021_v63, %v5413_v15  ;;  %v6768_v15 = vld [vmem:[#allocation45_spill] sm:$0xff] }
 0x33e   : > { %v1821_v1 = vsel %vm1802_vm4, %v1788_v30, %v1294_v8  ;;  %1191 = vrot.lane.b32.xlu1 %v4640_v39, %s3667_s14  ;;  %1189 = vrot.lane.b32.xlu0 %v4651_v14, %s3667_s14  ;;  %v5536_v8 = vmul.f32 %v2019_v21, %v1950_v36  ;;  %v1790_v21 = vsel %vm1769_vm3, %v5021_v48, %v5402_v62 }
 0x340   : > { %v1616_v19 = vpop.permute.xlu1 %1615 }
 0x341   : > { %v1919_v59 = vsel %vm1802_vm4, %v1887_v27, %v1616_v19  ;;  %v1422_v54 = vpop.permute.xlu0 %1421 }
 0x342   : > { %v1951_v9 = vsel %vm1835_vm5, %v1919_v59, %v1712_v53  ;;  %v1854_v30 = vsel %vm1835_vm5, %v1821_v1, %v1422_v54  ;;  %1543 = vrot.lane.b32.xlu1 %v4733_v44, %s3667_s14  ;;  %1541 = vrot.lane.b32.xlu0 %v4717_v10, %s3667_s14  ;;  %v6670_v1 = vrot.slane %v4675_v49, 7  ;;  %v994_v54 = vrot.slane %v4651_v14, 7 }
 0x343   : > { %v5538_v47 = vmul.f32 %v2022_v45, %v1951_v9  ;;  %v5540_v27 = vmul.f32 %v2018_v55, %v1854_v30 }
 0x344   : > { %v1524_v53 = vpop.permute.xlu1 %1523  ;;  %v5546_v44 = vsel %vm999_vm2, %v995_v40, %v6670_v1 }
 0x345   : > { %v1714_v19 = vpop.permute.xlu0 %1713  ;;  %v2184_v59 = vpack.c.bf16 %v5538_v47, %v5536_v8  ;;  %v1889_v36 = vsel %vm1769_vm3, %v6602_v33, %v1524_v53  ;;  %v1791_v33 = vsel %vm1769_vm3, %v5133_v38, %v1172_v61  ;;  %v2027_v38 = vld [vmem:[%s6427_s1 + $0x1f8] sm:$0xff] }
 0x346   : > { %1639 = vrot.lane.b32.xlu1 %v5258_v13, %s3668_s15  ;;  %1637 = vrot.lane.b32.xlu0 %v5546_v44, %s3668_s15  ;;  %v6776_v47 = vld [vmem:[#allocation29_spill] sm:$0xff] }
 0x348   : > { %v1620_v63 = vpop.permute.xlu1 %1619 }
 0x349   : > { %v1921_v45 = vsel %vm1802_vm4, %v1889_v36, %v1620_v63  ;;  %v1298_v55 = vpop.permute.xlu0 %1297  ;;  %v5592_v63 = vsel %vm999_vm2, %v994_v54, %v995_v40 }
 0x34a   : > { %v1953_v9 = vsel %vm1835_vm5, %v1921_v45, %v1716_v25  ;;  %v1823_v30 = vsel %vm1802_vm4, %v1790_v21, %v1298_v55  ;;  %1319 = vrot.lane.b32.xlu1 %v4717_v10, %s3668_s15  ;;  %1537 = vrot.lane.b32.xlu0 %v4684_v29, %s3667_s14  ;;  %v5576_v25 = vsel %vm999_vm2, %v993_v16, %v994_v54  ;;  %v2024_v10 = vld [vmem:[%s6427_s1 + $0x1e0] sm:$0xff] }
 0x34c   : > { %v1300_v53 = vpop.permute.xlu1 %1299 }
 0x34d   : > { %v1824_v48 = vsel %vm1802_vm4, %v1791_v33, %v1300_v53  ;;  %v1426_v62 = vpop.permute.xlu0 %1425  ;;  %v6671_v53 = vld [vmem:[#allocation4_spill] sm:$0xff] }
 0x34e   : > { %v1856_v1 = vsel %vm1835_vm5, %v1823_v30, %v1426_v62  ;;  %1539 = vrot.lane.b32.xlu1 %v4700_v11, %s3667_s14  ;;  %1633 = vrot.lane.b32.xlu0 %v5576_v25, %s3668_s15  ;;  %v1871_v40 = vsel %vm1769_vm3, %v6671_v53, %v4934_v23 }
 0x34f   : > { %v5594_v21 = vmul.f32 %v2024_v10, %v1856_v1  ;;  %v1903_v54 = vsel %vm1802_vm4, %v1871_v40, %v4942_v12  ;;  %v1771_v10 = vsel %vm1769_vm3, %v5258_v13, %v4816_v32  ;;  %v2025_v12 = vld [vmem:[%s6427_s1 + $0x1e8] sm:$0xff]  ;;  %v1974_v32 = vld [vmem:[%s6427_s1 + $0x50] sm:$0xff] }
 0x350   : > { %v1428_v61 = vpop.permute.xlu1 %1427 }
 0x351   : > { %v1857_v16 = vsel %vm1835_vm5, %v1824_v48, %v1428_v61  ;;  %v1526_v36 = vpop.permute.xlu0 %1525  ;;  %v6672_v48 = vld [vmem:[#allocation3_spill] sm:$0xff] }
 0x352   : > { %v5596_v45 = vmul.f32 %v2027_v38, %v1857_v16  ;;  %1635 = vrot.lane.b32.xlu1 %v5592_v63, %s3668_s15  ;;  %1733 = vrot.lane.b32.xlu0 %v4675_v49, %s3669_s22  ;;  %v1870_v62 = vsel %vm1769_vm3, %v6672_v48, %v4850_v24  ;;  %v1804_v38 = vsel %vm1802_vm4, %v1771_v10, %v4858_v42  ;;  %v1964_v16 = vld [vmem:[%s6427_s1] sm:$0xff] }
 0x353   : > { %v1902_v23 = vsel %vm1802_vm4, %v1870_v62, %v4856_v56  ;;  %v1935_v56 = vsel %vm1835_vm5, %v1903_v54, %v4907_v51  ;;  %v1837_v42 = vsel %vm1835_vm5, %v1804_v38, %v4866_v52 }
 0x354   : > { %v1130_v55 = vpop.permute.xlu1 %1129  ;;  %v1934_v53 = vsel %vm1835_vm5, %v1902_v23, %v4814_v18  ;;  %v2070_v48 = vmul.f32 %v1974_v32, %v1935_v56  ;;  %v6675_v56 = vld [vmem:[#allocation55_spill] sm:$0xff]  ;;  %v6767_v18 = vld [vmem:[#allocation97_spill] sm:$0xff] }
 0x355   : > { %v1522_v33 = vpop.permute.xlu0 %1521  ;;  %v1770_v61 = vsel %vm1769_vm3, %v5546_v44, %v1130_v55 }
 0x356   : > { %1315 = vrot.lane.b32.xlu1 %v4684_v29, %s3668_s15  ;;  %1317 = vrot.lane.b32.xlu0 %v4700_v11, %s3668_s15  ;;  %v2028_v29 = vld [vmem:[%s6427_s1 + $0x200] sm:$0xff]  ;;  %v1888_v11 = vsel %vm1769_vm3, %v6588_v31, %v1522_v33  ;;  %v1967_v31 = vld [vmem:[%s6427_s1 + $0x18] sm:$0xff] }
 0x357   : > { %v1971_v33 = vld [vmem:[%s6427_s1 + $0x38] sm:$0xff]  ;;  %v5657_v40 = vmul.f32 %v2028_v29, %v1953_v9  ;;  %v2063_v10 = vmul.f32 %v1967_v31, %v1837_v42  ;;  %v6673_v9 = vld [vmem:[#allocation16_spill] sm:$0xff] }
 0x358   : > { %v1258_v1 = vpop.permute.xlu1 %1257  ;;  %v2067_v23 = vmul.f32 %v1971_v33, %v1934_v53  ;;  %v6679_v33 = vld [vmem:[#allocation39_spill] sm:$0xff] }
 0x359   : > { %v1618_v24 = vpop.permute.xlu0 %1617  ;;  %v1803_v52 = vsel %vm1802_vm4, %v1770_v61, %v1258_v1  ;;  %v1772_v1 = vsel %vm1769_vm3, %v6673_v9, %v4844_v4  ;;  %v1970_v4 = vld [vmem:[%s6427_s1 + $0x30] sm:$0xff] }
 0x35a   : > { %v1920_v13 = vsel %vm1802_vm4, %v1888_v11, %v1618_v24  ;;  %1443 = vrot.lane.b32.xlu1 %v5576_v25, %s3669_s22  ;;  %1445 = vrot.lane.b32.xlu0 %v5592_v63, %s3669_s22  ;;  %v1872_v11 = vsel %vm1769_vm3, %v4280_v28, %v4993_v17  ;;  %v1805_v28 = vsel %vm1802_vm4, %v1772_v1, %v4892_v3  ;;  %v6677_v61 = vld [vmem:[#allocation37_spill] sm:$0xff] }
 0x35b   : > { %v1952_v51 = vsel %vm1835_vm5, %v1920_v13, %v1714_v19  ;;  %v1904_v29 = vsel %vm1802_vm4, %v1872_v11, %v5005_v50  ;;  %v1838_v50 = vsel %vm1835_vm5, %v1805_v28, %v4905_v46  ;;  %v2160_v42 = vpack.c.bf16 %v2070_v48, %v2067_v23  ;;  %v6680_v48 = vld [vmem:[#allocation40_spill] sm:$0xff]  ;;  %v6682_v23 = vld [vmem:[#allocation67_spill] sm:$0xff] }
 0x35c   : > { %v5660_v54 = vmul.f32 %v2025_v12, %v1952_v51  ;;  %v1386_v55 = vpop.permute.xlu1 %1385  ;;  %v6674_v12 = vld [vmem:[#allocation12_spill] sm:$0xff]  ;;  %v6678_v51 = vld [vmem:[#allocation47_spill] sm:$0xff] }
 0x35d   : > { %v1836_v19 = vsel %vm1835_vm5, %v1803_v52, %v1386_v55  ;;  %v1174_v62 = vpop.permute.xlu0 %1173  ;;  %v1773_v38 = vsel %vm1769_vm3, %v6674_v12, %v4807_v57  ;;  %v6676_v57 = vld [vmem:[#allocation20_spill] sm:$0xff]  ;;  %v2066_v52 = vmul.f32 %v1970_v4, %v1838_v50  ;;  %v1980_v55 = vld [vmem:[%s6427_s1 + $0x80] sm:$0xff] }
 0x35e   : > { %v2060_v24 = vmul.f32 %v1964_v16, %v1836_v19  ;;  %1735 = vrot.lane.b32.xlu1 %v4231_v43, %s3669_s22  ;;  %v1873_v43 = vsel %vm1769_vm3, %v4277_v34, %v4970_v37  ;;  %v1890_v31 = vsel %vm1769_vm3, %v6676_v57, %v1526_v36  ;;  %v1806_v34 = vsel %vm1802_vm4, %v1773_v38, %v6677_v61  ;;  %v1977_v37 = vld [vmem:[%s6427_s1 + $0x68] sm:$0xff]  ;;  %v6687_v50 = vld [vmem:[#allocation26_spill] sm:$0xff]  ;;  %v6688_v57 = vld [vmem:[#allocation69_spill] sm:$0xff] }
 0x35f   : > { %v1905_v13 = vsel %vm1802_vm4, %v1873_v43, %v6675_v56  ;;  %v1936_v16 = vsel %vm1835_vm5, %v1904_v29, %v6678_v51  ;;  %v1973_v36 = vld [vmem:[%s6427_s1 + $0x48] sm:$0xff]  ;;  %v1839_v53 = vsel %vm1835_vm5, %v1806_v34, %v6679_v33  ;;  %v6683_v29 = vld [vmem:[#allocation5_spill] sm:$0xff] }
 0x360   : > { %v1528_v17 = vpop.permute.xlu1 %1527  ;;  %v2156_v32 = vpack.c.bf16 %v2063_v10, %v2060_v24  ;;  %v1937_v19 = vsel %vm1835_vm5, %v1905_v13, %v6680_v48  ;;  %v2073_v11 = vmul.f32 %v1977_v37, %v1936_v16  ;;  %v2069_v1 = vmul.f32 %v1973_v36, %v1839_v53  ;;  %v6684_v28 = vld [vmem:[#allocation36_spill] sm:$0xff]  ;;  %v6685_v43 = vld [vmem:[#allocation7_spill] sm:$0xff]  ;;  %v6691_v61 = vld [vmem:[#allocation57_spill] sm:$0xff] }
 0x361   : > { %v1622_v3 = vpop.permute.xlu0 %1621  ;;  %v1875_v12 = vsel %vm1769_vm3, %v6683_v29, %v6682_v23  ;;  %v6686_v4 = vld [vmem:[#allocation44_spill] sm:$0xff]  ;;  %v2076_v13 = vmul.f32 %v1980_v55, %v1937_v19  ;;  %v6692_v37 = vld [vmem:[#allocation21_spill] sm:$0xff]  ;;  %v6694_v48 = vld [vmem:[#allocation58_spill] sm:$0xff] }
 0x362   : > { %v1922_v46 = vsel %vm1802_vm4, %v1890_v31, %v1622_v3  ;;  %1447 = vrot.lane.b32.xlu1 %v5546_v44, %s3669_s22  ;;  %2436 = vmatmul.mubr.bf16.vlgmr.msra.gmra.mrb[0].mxu1 %v2156_v32  ;;  %v6681_v44 = vld [vmem:[#allocation96_spill] sm:$0xff]  ;;  %v1774_v32 = vsel %vm1769_vm3, %v6685_v43, %v6684_v28  ;;  %v1775_v56 = vsel %vm1769_vm3, %v6687_v50, %v6686_v4  ;;  %v6689_v31 = vld [vmem:[#allocation54_spill] sm:$0xff]  ;;  %v6695_v23 = vld [vmem:[#allocation51_spill] sm:$0xff] }
 0x363   : > { %2443 = vmatprep.mubr.bf16.mxu1 %v2160_v42  ;;  %v1792_v24 = vsel %vm1769_vm3, %v6681_v44, %v1174_v62  ;;  %v1907_v62 = vsel %vm1802_vm4, %v1875_v12, %v6688_v57  ;;  %v6690_v3 = vld [vmem:[#allocation6_spill] sm:$0xff]  ;;  %v1808_v34 = vsel %vm1802_vm4, %v1775_v56, %v6691_v61  ;;  %v1891_v51 = vsel %vm1769_vm3, %v6692_v37, %v1528_v17  ;;  %v6693_v33 = vld [vmem:[#allocation56_spill] sm:$0xff]  ;;  %v6697_v43 = vld [vmem:[#allocation53_spill] sm:$0xff] }
 0x364   : > { %v1176_v10 = vpop.permute.xlu1 %1175  ;;  %v1874_v42 = vsel %vm1769_vm3, %v6690_v3, %v6689_v31  ;;  %v2159_v36 = vpack.c.bf16 %v2069_v1, %v2066_v52  ;;  %v1979_v55 = vld [vmem:[%s6427_s1 + $0x78] sm:$0xff]  ;;  %v1841_v19 = vsel %vm1835_vm5, %v1808_v34, %v6694_v48  ;;  %v1807_v29 = vsel %vm1802_vm4, %v1774_v32, %v6695_v23  ;;  %v1986_v17 = vld [vmem:[%s6427_s1 + $0xb0] sm:$0xff]  ;;  %v1976_v28 = vld [vmem:[%s6427_s1 + $0x60] sm:$0xff] }
 0x365   : > { %v1302_v9 = vpop.permute.xlu0 %1301  ;;  %v1906_v53 = vsel %vm1802_vm4, %v1874_v42, %v6693_v33  ;;  %v6696_v52 = vld [vmem:[#allocation61_spill] sm:$0xff]  ;;  %v6698_v4 = vld [vmem:[#allocation43_spill] sm:$0xff]  ;;  %v2075_v56 = vmul.f32 %v1979_v55, %v1841_v19  ;;  %v6704_v55 = vld [vmem:[#allocation80_spill] sm:$0xff] }
 0x366   : > { %v1825_v38 = vsel %vm1802_vm4, %v1792_v24, %v1302_v9  ;;  %v2163_v9 = vpack.c.bf16 %v2076_v13, %v2073_v11  ;;  %v1939_v1 = vsel %vm1835_vm5, %v1907_v62, %v6696_v52  ;;  %v1840_v11 = vsel %vm1835_vm5, %v1807_v29, %v6697_v43  ;;  %v1983_v32 = vld [vmem:[%s6427_s1 + $0x98] sm:$0xff]  ;;  %v6699_v13 = vld [vmem:[#allocation87_spill] sm:$0xff]  ;;  %v2034_v19 = vld [vmem:[%s6427_s1 + $0x230] sm:$0xff] }
 0x367   : > { %v1938_v50 = vsel %vm1835_vm5, %v1906_v53, %v6698_v4  ;;  %v2082_v62 = vmul.f32 %v1986_v17, %v1939_v1  ;;  %v2072_v42 = vmul.f32 %v1976_v28, %v1840_v11  ;;  %v6700_v61 = vld [vmem:[#allocation77_spill] sm:$0xff]  ;;  %v6701_v34 = vld [vmem:[#allocation11_spill] sm:$0xff]  ;;  %v6708_v17 = vld [vmem:[#allocation74_spill] sm:$0xff] }
 0x368   : > { %v1624_v16 = vpop.permute.xlu1 %1623  ;;  %v1876_v37 = vsel %vm1769_vm3, %v6701_v34, %v6700_v61  ;;  %v2079_v53 = vmul.f32 %v1983_v32, %v1938_v50  ;;  %v2031_v48 = vld [vmem:[%s6427_s1 + $0x218] sm:$0xff]  ;;  %v6707_v23 = vld [vmem:[#allocation59_spill] sm:$0xff]  ;;  %v1982_v11 = vld [vmem:[%s6427_s1 + $0x90] sm:$0xff] }
 0x369   : > { %v1923_v44 = vsel %vm1802_vm4, %v1891_v51, %v1624_v16  ;;  %v1718_v24 = vpop.permute.xlu0 %1717  ;;  %v6702_v16 = vld [vmem:[#allocation49_spill] sm:$0xff]  ;;  %v6709_v52 = vld [vmem:[#allocation10_spill] sm:$0xff]  ;;  %v2162_v43 = vpack.c.bf16 %v2075_v56, %v2072_v42  ;;  %v6710_v32 = vld [vmem:[#allocation19_spill] sm:$0xff] }
 0x36a   : > { %v1954_v12 = vsel %vm1835_vm5, %v1922_v46, %v1718_v24  ;;  %2444 = vmatmul.mubr.bf16.gmra.mrb[4].mxu1 %v2159_v36  ;;  %v1793_v46 = vsel %vm1769_vm3, %v6699_v13, %v1176_v10  ;;  %v6703_v36 = vld [vmem:[#allocation32_spill] sm:$0xff]  ;;  %v1908_v10 = vsel %vm1802_vm4, %v1876_v37, %v6704_v55  ;;  %v6705_v24 = vld [vmem:[#allocation41_spill] sm:$0xff]  ;;  %v1877_v1 = vsel %vm1769_vm3, %v6709_v52, %v6708_v17  ;;  %v6711_v50 = vld [vmem:[#allocation79_spill] sm:$0xff] }
 0x36b   : > { %2451 = vmatprep.mubr.bf16.mxu1 %v2163_v9  ;;  %v1776_v33 = vsel %vm1769_vm3, %v6703_v36, %v6702_v16  ;;  %v6706_v9 = vld [vmem:[#allocation31_spill] sm:$0xff]  ;;  %v1909_v13 = vsel %vm1802_vm4, %v1877_v1, %v6711_v50  ;;  %v6712_v61 = vld [vmem:[#allocation50_spill] sm:$0xff]  ;;  %v6713_v42 = vld [vmem:[#allocation64_spill] sm:$0xff]  ;;  %v5802_v16 = vmul.f32 %v2031_v48, %v1954_v12 }
 0x36c   : > { %v1304_v57 = vpop.permute.xlu1 %1303  ;;  %v1809_v29 = vsel %vm1802_vm4, %v1776_v33, %v6707_v23  ;;  %v1989_v56 = vld [vmem:[%s6427_s1 + $0xc8] sm:$0xff]  ;;  %v1940_v37 = vsel %vm1835_vm5, %v1908_v10, %v6713_v42  ;;  %v1992_v10 = vld [vmem:[%s6427_s1 + $0xe0] sm:$0xff] }
 0x36d   : > { %v1826_v31 = vsel %vm1802_vm4, %v1793_v46, %v1304_v57  ;;  %v1430_v3 = vpop.permute.xlu0 %1429  ;;  %v1842_v4 = vsel %vm1835_vm5, %v1809_v29, %v6710_v32  ;;  %v2033_v12 = vld [vmem:[%s6427_s1 + $0x228] sm:$0xff]  ;;  %v6715_v48 = vld [vmem:[#allocation18_spill] sm:$0xff] }
 0x36e   : > { %v1858_v51 = vsel %vm1835_vm5, %v1825_v38, %v1430_v3  ;;  %v1777_v38 = vsel %vm1769_vm3, %v6706_v9, %v6705_v24  ;;  %v2166_v3 = vpack.c.bf16 %v2082_v62, %v2079_v53  ;;  %v6714_v62 = vld [vmem:[#allocation52_spill] sm:$0xff]  ;;  %v2078_v55 = vmul.f32 %v1982_v11, %v1842_v4  ;;  %v6716_v52 = vld [vmem:[#allocation107_spill] sm:$0xff]  ;;  %v6719_v4 = vld [vmem:[#allocation33_spill] sm:$0xff] }
 0x36f   : > { %v1810_v34 = vsel %vm1802_vm4, %v1777_v38, %v6712_v61  ;;  %v2030_v53 = vld [vmem:[%s6427_s1 + $0x210] sm:$0xff]  ;;  %v2085_v38 = vmul.f32 %v1989_v56, %v1940_v37  ;;  %v6718_v32 = vld [vmem:[#allocation63_spill] sm:$0xff] }
 0x370   : > { %v1720_v28 = vpop.permute.xlu1 %1719  ;;  %v1843_v33 = vsel %vm1835_vm5, %v1810_v34, %v6714_v62  ;;  %v6717_v1 = vld [vmem:[#allocation8_spill] sm:$0xff]  ;;  %v1779_v50 = vsel %vm1769_vm3, %v6719_v4, %v6718_v32  ;;  %v6722_v61 = vld [vmem:[#allocation9_spill] sm:$0xff]  ;;  %v6724_v62 = vld [vmem:[#allocation46_spill] sm:$0xff] }
 0x371   : > { %v1955_v46 = vsel %vm1835_vm5, %v1923_v44, %v1720_v28  ;;  %v5793_v57 = vpop.permute.xlu0 %1529  ;;  %v1985_v44 = vld [vmem:[%s6427_s1 + $0xa8] sm:$0xff]  ;;  %v1879_v28 = vsel %vm1769_vm3, %v6717_v1, %v6716_v52  ;;  %v6723_v56 = vld [vmem:[#allocation81_spill] sm:$0xff]  ;;  %v1988_v4 = vld [vmem:[%s6427_s1 + $0xc0] sm:$0xff] }
 0x372   : > { %v5804_v36 = vmul.f32 %v2034_v19, %v1955_v46  ;;  %2452 = vmatmul.mubr.bf16.gmra.mrb[8].mxu1 %v2162_v43  ;;  %v1941_v19 = vsel %vm1835_vm5, %v1909_v13, %v6715_v48  ;;  %v2081_v17 = vmul.f32 %v1985_v44, %v1843_v33  ;;  %v5830_v43 = vmul.f32 %v2030_v53, %v1858_v51  ;;  %v6720_v46 = vld [vmem:[#allocation114_spill] sm:$0xff]  ;;  %v1998_v1 = vld [vmem:[%s6427_s1 + $0x110] sm:$0xff] }
 0x373   : > { %2459 = vmatprep.mubr.bf16.mxu1 %v2166_v3  ;;  %v2088_v13 = vmul.f32 %v1992_v10, %v1941_v19  ;;  %v1911_v3 = vsel %vm1802_vm4, %v1879_v28, %v6720_v46  ;;  %v1812_v42 = vsel %vm1802_vm4, %v1779_v50, %v6723_v56  ;;  %v6725_v33 = vld [vmem:[#allocation30_spill] sm:$0xff]  ;;  %v6729_v28 = vld [vmem:[#allocation89_spill] sm:$0xff] }
 0x374   : > { %v1432_v24 = vpop.permute.xlu1 %1431  ;;  %v2165_v51 = vpack.c.bf16 %v2081_v17, %v2078_v55  ;;  %v1778_v53 = vsel %vm1769_vm3, %v6725_v33, %v6724_v62  ;;  %v1991_v48 = vld [vmem:[%s6427_s1 + $0xd8] sm:$0xff]  ;;  %v6728_v17 = vld [vmem:[#allocation68_spill] sm:$0xff]  ;;  %v1943_v32 = vsel %vm1835_vm5, %v1911_v3, %v6729_v28  ;;  %v6733_v62 = vld [vmem:[#allocation15_spill] sm:$0xff] }
 0x375   : > { %v1859_v23 = vsel %vm1835_vm5, %v1826_v31, %v1432_v24  ;;  %v5825_v29 = vpop.permute.xlu0 %1177  ;;  %v6721_v31 = vld [vmem:[#allocation22_spill] sm:$0xff]  ;;  %v2169_v55 = vpack.c.bf16 %v2088_v13, %v2085_v38  ;;  %v1811_v52 = vsel %vm1802_vm4, %v1778_v53, %v6728_v17  ;;  %v2094_v3 = vmul.f32 %v1998_v1, %v1943_v32  ;;  %v6734_v53 = vld [vmem:[#allocation131_spill] sm:$0xff]  ;;  %v6739_v1 = vld [vmem:[#allocation84_spill] sm:$0xff] }
 0x376   : > { %v5832_v11 = vmul.f32 %v2033_v12, %v1859_v23  ;;  %v1878_v34 = vsel %vm1769_vm3, %v6722_v61, %v6721_v31  ;;  %v6726_v12 = vld [vmem:[#allocation73_spill] sm:$0xff]  ;;  %v6727_v19 = vld [vmem:[#allocation86_spill] sm:$0xff] }
 0x377   : > { %v1910_v10 = vsel %vm1802_vm4, %v1878_v34, %v6726_v12  ;;  %v1845_v24 = vsel %vm1835_vm5, %v1812_v42, %v6727_v19  ;;  %v6730_v50 = vld [vmem:[#allocation70_spill] sm:$0xff]  ;;  %v6754_v44 = vld [vmem:[#allocation125_spill] sm:$0xff] }
 0x378   : > { %v5844_v37 = vpop.permute.xlu1 %1531  ;;  %v1844_v46 = vsel %vm1835_vm5, %v1811_v52, %v6730_v50  ;;  %v1995_v38 = vld [vmem:[%s6427_s1 + $0xf8] sm:$0xff]  ;;  %v2087_v61 = vmul.f32 %v1991_v48, %v1845_v24  ;;  %v6740_v50 = vld [vmem:[#allocation60_spill] sm:$0xff] }
 0x379   : > { %v5858_v23 = vpop.permute.xlu0 %1625  ;;  %v6731_v13 = vld [vmem:[#allocation62_spill] sm:$0xff]  ;;  %v2084_v42 = vmul.f32 %v1988_v4, %v1844_v46  ;;  %v6741_v46 = vld [vmem:[#allocation35_spill] sm:$0xff]  ;;  %v6756_v9 = vld [vmem:[#allocation65_spill] sm:$0xff]  ;;  %v1893_v8 = vsel %vm1769_vm3, %v6776_v47, %v5844_v37  ;;  %v6778_v37 = vpack.c.bf16 %v5596_v45, %v5594_v21 }
 0x37a   : > { %2460 = vmatmul.mubr.bf16.gmra.mrb[12].mxu1 %v2165_v51  ;;  %v1942_v31 = vsel %vm1835_vm5, %v1910_v10, %v6731_v13  ;;  %v6732_v51 = vld [vmem:[#allocation112_spill] sm:$0xff]  ;;  %v6735_v12 = vld [vmem:[#allocation14_spill] sm:$0xff]  ;;  %v1781_v13 = vsel %vm1769_vm3, %v6741_v46, %v6740_v50  ;;  %v6780_v21 = vld [vmem:[#allocation117_spill] sm:$0xff] }
 0x37b   : > { %2467 = vmatprep.mubr.bf16.mxu1 %v2169_v55  ;;  %v1880_v33 = vsel %vm1769_vm3, %v6733_v62, %v6732_v51  ;;  %v1881_v19 = vsel %vm1769_vm3, %v6735_v12, %v6734_v53  ;;  %v6736_v55 = vld [vmem:[#allocation66_spill] sm:$0xff]  ;;  %v2091_v10 = vmul.f32 %v1995_v38, %v1942_v31  ;;  %v2168_v4 = vpack.c.bf16 %v2087_v61, %v2084_v42  ;;  %v1994_v51 = vld [vmem:[%s6427_s1 + $0xf0] sm:$0xff]  ;;  %v6743_v31 = vld [vmem:[#allocation115_spill] sm:$0xff] }
 0x37c   : > { %v5877_v34 = vpop.permute.xlu1 %1179  ;;  %v6737_v17 = vld [vmem:[#allocation38_spill] sm:$0xff]  ;;  %v6742_v62 = vld [vmem:[#allocation88_spill] sm:$0xff] }
 0x37d   : > { %v5879_v56 = vpop.permute.xlu0 %1305  ;;  %v1780_v52 = vsel %vm1769_vm3, %v6737_v17, %v6736_v55  ;;  %v6738_v48 = vld [vmem:[#allocation138_spill] sm:$0xff]  ;;  %v2172_v12 = vpack.c.bf16 %v2094_v3, %v2091_v10  ;;  %v6744_v55 = vld [vmem:[#allocation71_spill] sm:$0xff]  ;;  %v6747_v10 = vld [vmem:[#allocation93_spill] sm:$0xff]  ;;  %v1795_v45 = vsel %vm1769_vm3, %v6780_v21, %v5877_v34 }
 0x37e   : > { %v1912_v24 = vsel %vm1802_vm4, %v1880_v33, %v6738_v48  ;;  %v1813_v28 = vsel %vm1802_vm4, %v1780_v52, %v6739_v1  ;;  %v1913_v33 = vsel %vm1802_vm4, %v1881_v19, %v6743_v31  ;;  %v1814_v61 = vsel %vm1802_vm4, %v1781_v13, %v6744_v55  ;;  %v2001_v42 = vld [vmem:[%s6427_s1 + $0x128] sm:$0xff]  ;;  %v2004_v46 = vld [vmem:[%s6427_s1 + $0x140] sm:$0xff]  ;;  %v6749_v31 = vld [vmem:[#allocation17_spill] sm:$0xff] }
 0x37f   : > { %v1846_v38 = vsel %vm1835_vm5, %v1813_v28, %v6742_v62  ;;  %v6745_v17 = vld [vmem:[#allocation99_spill] sm:$0xff]  ;;  %v6746_v1 = vld [vmem:[#allocation72_spill] sm:$0xff]  ;;  %v1945_v28 = vsel %vm1835_vm5, %v1913_v33, %v6747_v10 }
 0x380   : > { %v5894_v32 = vpop.permute.xlu1 %1627  ;;  %v1944_v52 = vsel %vm1835_vm5, %v1912_v24, %v6745_v17  ;;  %v1997_v48 = vld [vmem:[%s6427_s1 + $0x108] sm:$0xff]  ;;  %v1847_v19 = vsel %vm1835_vm5, %v1814_v61, %v6746_v1  ;;  %v2090_v3 = vmul.f32 %v1994_v51, %v1846_v38  ;;  %v6750_v61 = vld [vmem:[#allocation98_spill] sm:$0xff]  ;;  %v6752_v38 = vld [vmem:[#allocation141_spill] sm:$0xff]  ;;  %v2100_v17 = vmul.f32 %v2004_v46, %v1945_v28 }
 0x381   : > { %v5906_v53 = vpop.permute.xlu0 %1721  ;;  %v2097_v24 = vmul.f32 %v2001_v42, %v1944_v52  ;;  %v2093_v13 = vmul.f32 %v1997_v48, %v1847_v19  ;;  %v6748_v62 = vld [vmem:[#allocation139_spill] sm:$0xff]  ;;  %v6753_v1 = vld [vmem:[#allocation121_spill] sm:$0xff]  ;;  %v6759_v46 = vld [vmem:[#allocation130_spill] sm:$0xff] }
 0x382   : > { %2468 = vmatmul.mubr.bf16.gmra.mrb[16].mxu1 %v2168_v4  ;;  %v1883_v55 = vsel %vm1769_vm3, %v6749_v31, %v6748_v62  ;;  %v6755_v42 = vld [vmem:[#allocation13_spill] sm:$0xff]  ;;  %v6757_v62 = vld [vmem:[#allocation34_spill] sm:$0xff] }
 0x383   : > { %2475 = vmatprep.mubr.bf16.mxu1 %v2172_v12  ;;  %v6751_v12 = vld [vmem:[#allocation42_spill] sm:$0xff]  ;;  %v1915_v33 = vsel %vm1802_vm4, %v1883_v55, %v6752_v38  ;;  %v1882_v52 = vsel %vm1769_vm3, %v6755_v42, %v6754_v44  ;;  %v2171_v19 = vpack.c.bf16 %v2093_v13, %v2090_v3  ;;  %v1782_v31 = vsel %vm1769_vm3, %v6757_v62, %v6756_v9  ;;  %v6758_v55 = vld [vmem:[#allocation124_spill] sm:$0xff]  ;;  %v6762_v42 = vld [vmem:[#allocation123_spill] sm:$0xff] }
 0x384   : > { %v5922_v50 = vpop.permute.xlu1 %1307  ;;  %v1783_v51 = vsel %vm1769_vm3, %v6751_v12, %v6750_v61  ;;  %v2003_v61 = vld [vmem:[%s6427_s1 + $0x138] sm:$0xff]  ;;  %v1914_v12 = vsel %vm1802_vm4, %v1882_v52, %v6759_v46  ;;  %v2175_v44 = vpack.c.bf16 %v2100_v17, %v2097_v24  ;;  %v6760_v38 = vld [vmem:[#allocation116_spill] sm:$0xff]  ;;  %v6763_v62 = vld [vmem:[#allocation95_spill] sm:$0xff] }
 0x385   : > { %v5927_v4 = vpop.permute.xlu0 %1433  ;;  %v1816_v10 = vsel %vm1802_vm4, %v1783_v51, %v6753_v1  ;;  %v1815_v3 = vsel %vm1802_vm4, %v1782_v31, %v6760_v38  ;;  %v2010_v9 = vld [vmem:[%s6427_s1 + $0x170] sm:$0xff]  ;;  %v2007_v17 = vld [vmem:[%s6427_s1 + $0x158] sm:$0xff]  ;;  %v1946_v31 = vsel %vm1835_vm5, %v1914_v12, %v6763_v62  ;;  %v1785_v12 = vsel %vm1769_vm3, %v6768_v15, %v6767_v18 }
 0x386   : > { %v1849_v28 = vsel %vm1835_vm5, %v1816_v10, %v6758_v55  ;;  %v6761_v13 = vld [vmem:[#allocation136_spill] sm:$0xff]  ;;  %v2000_v10 = vld [vmem:[%s6427_s1 + $0x120] sm:$0xff]  ;;  %v1848_v52 = vsel %vm1835_vm5, %v1815_v3, %v6762_v42  ;;  %v6764_v38 = vld [vmem:[#allocation105_spill] sm:$0xff]  ;;  %v2103_v3 = vmul.f32 %v2007_v17, %v1946_v31 }
 0x387   : > { %v1947_v1 = vsel %vm1835_vm5, %v1915_v33, %v6761_v13  ;;  %v2099_v24 = vmul.f32 %v2003_v61, %v1849_v28  ;;  %v2096_v46 = vmul.f32 %v2000_v10, %v1848_v52  ;;  %v6765_v13 = vld [vmem:[#allocation48_spill] sm:$0xff]  ;;  %v6770_v17 = vld [vmem:[#allocation103_spill] sm:$0xff] }
 0x388   : > { %v5942_v48 = vpop.permute.xlu1 %1723  ;;  %v2106_v33 = vmul.f32 %v2010_v9, %v1947_v1  ;;  %v1784_v30 = vsel %vm1769_vm3, %v6765_v13, %v6764_v38  ;;  %v2006_v9 = vld [vmem:[%s6427_s1 + $0x150] sm:$0xff]  ;;  %v1818_v31 = vsel %vm1802_vm4, %v1785_v12, %v6770_v17 }
 0x389   : > { %v5954_v51 = vpop.permute.xlu0 %1533  ;;  %v2174_v42 = vpack.c.bf16 %v2099_v24, %v2096_v46  ;;  %v6769_v1 = vld [vmem:[#allocation140_spill] sm:$0xff]  ;;  %v6771_v24 = vld [vmem:[#allocation106_spill] sm:$0xff] }
 0x38a   : > { %2476 = vmatmul.mubr.bf16.gmra.mrb[20].mxu1 %v2171_v19  ;;  %v2178_v62 = vpack.c.bf16 %v2106_v33, %v2103_v3  ;;  %v1851_v15 = vsel %vm1835_vm5, %v1818_v31, %v6771_v24  ;;  %v1925_v24 = vsel %vm1802_vm4, %v1893_v8, %v5894_v32 }
 0x38b   : > { %2483 = vmatprep.mubr.bf16.mxu1 %v2175_v44  ;;  %v6766_v44 = vld [vmem:[#allocation25_spill] sm:$0xff] }
 0x38c   : > { %v5973_v55 = vpop.permute.xlu1 %1435  ;;  %v1817_v61 = vsel %vm1802_vm4, %v1784_v30, %v6766_v44  ;;  %v2009_v30 = vld [vmem:[%s6427_s1 + $0x168] sm:$0xff] }
 0x38d   : > { %v5975_v19 = vpop.permute.xlu0 %1181  ;;  %v1850_v10 = vsel %vm1835_vm5, %v1817_v61, %v6769_v1  ;;  %v2105_v13 = vmul.f32 %v2009_v30, %v1851_v15  ;;  %v6772_v61 = vpack.c.bf16 %v5498_v22, %v5500_v6  ;;  %v6774_v6 = vpack.c.bf16 %v5534_v7, %v5540_v27  ;;  %v6777_v7 = vld [vmem:[#allocation28_spill] sm:$0xff] }
 0x38e   : > { %v2102_v18 = vmul.f32 %v2006_v9, %v1850_v10  ;;  %v6773_v9 = vpack.c.bf16 %v5462_v0, %v5460_v58  ;;  %v6775_v30 = vpack.c.bf16 %v5657_v40, %v5660_v54  ;;  %v1892_v27 = vsel %vm1769_vm3, %v6777_v7, %v5793_v57  ;;  %v2040_v40 = vld [vmem:[%s6427_s1 + $0x260] sm:$0xff]  ;;  %v2037_v57 = vld [vmem:[%s6427_s1 + $0x248] sm:$0xff] }
 0x38f   : > { %v1957_v54 = vsel %vm1835_vm5, %v1925_v24, %v5942_v48  ;;  %v1924_v32 = vsel %vm1802_vm4, %v1892_v27, %v5858_v23 }
 0x390   : > { %v1536_v28 = vpop.permute.xlu1 %1535  ;;  %v2177_v33 = vpack.c.bf16 %v2105_v13, %v2102_v18  ;;  %v6779_v18 = vpack.c.bf16 %v5804_v36, %v5802_v16  ;;  %v1956_v13 = vsel %vm1835_vm5, %v1924_v32, %v5906_v53  ;;  %v2136_v48 = vmul.f32 %v2040_v40, %v1957_v54  ;;  %v6781_v53 = vld [vmem:[#allocation108_spill] sm:$0xff] }
 0x391   : > { %v5990_v52 = vpop.permute.xlu0 %1629  ;;  %v2133_v23 = vmul.f32 %v2037_v57, %v1956_v13  ;;  %v1828_v16 = vsel %vm1802_vm4, %v1795_v45, %v5922_v50  ;;  %v1895_v36 = vsel %vm1769_vm3, %v6669_v2, %v1536_v28  ;;  %v1894_v28 = vsel %vm1769_vm3, %v6664_v5, %v5954_v51 }
 0x392   : > { %2484 = vmatmul.mubr.bf16.gmra.mrb[24].mxu1 %v2174_v42  ;;  %v1861_v34 = vsel %vm1835_vm5, %v1828_v16, %v5973_v55  ;;  %v6782_v55 = vpack.c.bf16 %v5832_v11, %v5830_v43  ;;  %v1926_v5 = vsel %vm1802_vm4, %v1894_v28, %v5990_v52  ;;  %v2052_v16 = vld [vmem:[%s6427_s1 + $0x2c0] sm:$0xff] }
 0x393   : > { %2491 = vmatprep.mubr.bf16.mxu1 %v2178_v62  ;;  %v2193_v50 = vpack.c.bf16 %v2136_v48, %v2133_v23  ;;  %v2049_v23 = vld [vmem:[%s6427_s1 + $0x2a8] sm:$0xff] }
 0x394   : > { %v5999_v46 = vpop.permute.xlu1 %1183 }
 0x395   : > { %v6001_v38 = vpop.permute.xlu0 %1309 }
 0x398   : > { %v1632_v44 = vpop.permute.xlu1 %1631 }
 0x399   : > { %v1726_v3 = vpop.permute.xlu0 %1725  ;;  %v1927_v47 = vsel %vm1802_vm4, %v1895_v36, %v1632_v44  ;;  %v2036_v44 = vld [vmem:[%s6427_s1 + $0x240] sm:$0xff] }
 0x39a   : > { %2492 = vmatmul.mubr.bf16.gmra.mrb[28].mxu1 %v2177_v33  ;;  %v1958_v7 = vsel %vm1835_vm5, %v1926_v5, %v1726_v3  ;;  %v2045_v3 = vld [vmem:[%s6427_s1 + $0x288] sm:$0xff] }
 0x39b   : > { %2499 = vmatprep.mubr.bf16.mxu1 %v6772_v61 }
 0x39c   : > { %v1312_v42 = vpop.permute.xlu1 %1311 }
 0x39d   : > { %v6006_v12 = vpop.permute.xlu0 %1437 }
 0x3a0   : > { %v1728_v1 = vpop.permute.xlu1 %1727 }
 0x3a1   : > { %v6008_v17 = vpop.permute.xlu0 %1185  ;;  %v1959_v24 = vsel %vm1835_vm5, %v1927_v47, %v1728_v1  ;;  %v2043_v1 = vld [vmem:[%s6427_s1 + $0x278] sm:$0xff] }
 0x3a2   : > { %2500 = vmatmul.mubr.bf16.gmra.mrb[32].mxu1 %v6773_v9  ;;  %v2139_v54 = vmul.f32 %v2043_v1, %v1958_v7 }
 0x3a3   : > { %2507 = vmatprep.mubr.bf16.mxu1 %v2184_v59 }
 0x3a4   : > { %v1440_v10 = vpop.permute.xlu1 %1439 }
 0x3a5   : > { %v6016_v62 = vpop.permute.xlu0 %1313 }
 0x3a8   : > { %v6018_v31 = vpop.permute.xlu1 %1187 }
 0x3a9   : > { %v6020_v22 = vpop.permute.xlu0 %1729 }
 0x3aa   : > { %2508 = vmatmul.mubr.bf16.gmra.mrb[36].mxu1 %v6774_v6  ;;  %v1794_v6 = vsel %vm1769_vm3, %v6781_v53, %v5825_v29  ;;  %v2046_v29 = vld [vmem:[%s6427_s1 + $0x290] sm:$0xff] }
 0x3ab   : > { %2515 = vmatprep.mubr.bf16.mxu1 %v6775_v30  ;;  %v2039_v30 = vld [vmem:[%s6427_s1 + $0x258] sm:$0xff]  ;;  %v1827_v2 = vsel %vm1802_vm4, %v1794_v6, %v5879_v56  ;;  %v2142_v11 = vmul.f32 %v2046_v29, %v1959_v24  ;;  %v1799_v24 = vsel %vm1769_vm3, %v5435_v60, %v6018_v31 }
 0x3ac   : > { %v6028_v58 = vpop.permute.xlu1 %1731  ;;  %v1860_v56 = vsel %vm1835_vm5, %v1827_v2, %v5927_v4  ;;  %v2135_v51 = vmul.f32 %v2039_v30, %v1861_v34  ;;  %v1797_v4 = vsel %vm1769_vm3, %v5382_v35, %v5999_v46 }
 0x3ad   : > { %v6030_v0 = vpop.permute.xlu0 %1441  ;;  %v2132_v40 = vmul.f32 %v2036_v44, %v1860_v56  ;;  %v1830_v52 = vsel %vm1802_vm4, %v1797_v4, %v1312_v42  ;;  %v2196_v35 = vpack.c.bf16 %v2142_v11, %v2139_v54 }
 0x3ae   : > { %v1863_v13 = vsel %vm1835_vm5, %v1830_v52, %v1440_v10 }
 0x3af   : > { %v2192_v32 = vpack.c.bf16 %v2135_v51, %v2132_v40  ;;  %v2141_v10 = vmul.f32 %v2045_v3, %v1863_v13  ;;  %v2055_v51 = vld [vmem:[%s6427_s1 + $0x2d8] sm:$0xff]  ;;  %v6201_v13 = vld [vmem:[%s6432_s6] ss:$0 sm:$0xff] }
 0x3b0   : > { %v6035_v59 = vpop.permute.xlu1 %1191 }
 0x3b1   : > { %v6039_v15 = vpop.permute.xlu0 %1189  ;;  %v1801_v54 = vsel %vm1769_vm3, %v5592_v63, %v6035_v59 }
 0x3b2   : > { %2516 = vmatmul.mubr.bf16.gmra.mrb[40].mxu1 %v6778_v37 }
 0x3b3   : > { %2523 = vmatprep.mubr.bf16.mxu1 %v6779_v18  ;;  %v6783_v18 = vld [vmem:[#allocation132_spill] sm:$0xff] }
 0x3b4   : > { %v6062_v33 = vpop.permute.xlu1 %1543  ;;  %v1796_v57 = vsel %vm1769_vm3, %v6783_v18, %v5975_v19  ;;  %v2042_v19 = vld [vmem:[%s6427_s1 + $0x270] sm:$0xff] }
 0x3b5   : > { %v6064_v61 = vpop.permute.xlu0 %1541  ;;  %v1829_v46 = vsel %vm1802_vm4, %v1796_v57, %v6001_v38 }
 0x3b6   : > { %v1862_v45 = vsel %vm1835_vm5, %v1829_v46, %v6006_v12  ;;  %v1898_v44 = vsel %vm1769_vm3, %v4640_v39, %v6064_v61  ;;  %v2058_v39 = vld [vmem:[%s6427_s1 + $0x2f0] sm:$0xff] }
 0x3b7   : > { %v2138_v6 = vmul.f32 %v2042_v19, %v1862_v45  ;;  %v6784_v19 = vld [vmem:[#allocation24_spill] sm:$0xff] }
 0x3b8   : > { %v6073_v9 = vpop.permute.xlu1 %1639 }
 0x3b9   : > { %v6084_v8 = vpop.permute.xlu0 %1637 }
 0x3ba   : > { %2524 = vmatmul.mubr.bf16.gmra.mrb[44].mxu1 %v6782_v55  ;;  %v1930_v56 = vsel %vm1802_vm4, %v1898_v44, %v6084_v8 }
 0x3bb   : > { %2531 = vmatprep.mubr.bf16.mxu1 %v2193_v50  ;;  %v2195_v50 = vpack.c.bf16 %v2141_v10, %v2138_v6 }
 0x3bc   : > { %v6109_v43 = vpop.permute.xlu1 %1319 }
 0x3bd   : > { %v1538_v27 = vpop.permute.xlu0 %1537 }
 0x3be   : > { %v1896_v48 = vsel %vm1769_vm3, %v4654_v20, %v1538_v27 }
 0x3c0   : > { %v1540_v37 = vpop.permute.xlu1 %1539 }
 0x3c1   : > { %v1634_v21 = vpop.permute.xlu0 %1633  ;;  %v1897_v20 = vsel %vm1769_vm3, %v4651_v14, %v1540_v37 }
 0x3c2   : > { %v1928_v42 = vsel %vm1802_vm4, %v1896_v48, %v1634_v21  ;;  %2532 = vmatmul.mubr.bf16.gmra.mrb[48].mxu1 %v2192_v32 }
 0x3c3   : > { %2539 = vmatprep.mubr.bf16.mxu1 %v2196_v35  ;;  %v1960_v38 = vsel %vm1835_vm5, %v1928_v42, %v6020_v22  ;;  %v1798_v22 = vsel %vm1769_vm3, %v5417_v26, %v6008_v17  ;;  %v2051_v26 = vld [vmem:[%s6427_s1 + $0x2b8] sm:$0xff] }
 0x3c4   : > { %v1636_v36 = vpop.permute.xlu1 %1635  ;;  %v2145_v14 = vmul.f32 %v2049_v23, %v1960_v38  ;;  %v1831_v28 = vsel %vm1802_vm4, %v1798_v22, %v6016_v62  ;;  %v6785_v23 = vld [vmem:[#allocation78_spill] sm:$0xff] }
 0x3c5   : > { %v1929_v53 = vsel %vm1802_vm4, %v1897_v20, %v1636_v36  ;;  %v1734_v12 = vpop.permute.xlu0 %1733  ;;  %v1864_v55 = vsel %vm1835_vm5, %v1831_v28, %v6030_v0  ;;  %v1899_v0 = vsel %vm1769_vm3, %v4675_v49, %v6062_v33  ;;  %v1800_v49 = vsel %vm1769_vm3, %v5576_v25, %v6039_v15  ;;  %v2057_v25 = vld [vmem:[%s6427_s1 + $0x2e8] sm:$0xff] }
 0x3c6   : > { %v1961_v30 = vsel %vm1835_vm5, %v1929_v53, %v6028_v58  ;;  %v2048_v58 = vld [vmem:[%s6427_s1 + $0x2a0] sm:$0xff]  ;;  %v1962_v1 = vsel %vm1835_vm5, %v1930_v56, %v1734_v12  ;;  %v1931_v61 = vsel %vm1802_vm4, %v1899_v0, %v6073_v9  ;;  %v2054_v9 = vld [vmem:[%s6427_s1 + $0x2d0] sm:$0xff]  ;;  %v1834_v15 = vsel %vm1802_vm4, %v1801_v54, %v6109_v43 }
 0x3c7   : > { %v2148_v34 = vmul.f32 %v2052_v16, %v1961_v30  ;;  %v2144_v31 = vmul.f32 %v2048_v58, %v1864_v55  ;;  %v2151_v27 = vmul.f32 %v2055_v51, %v1962_v1  ;;  %v6787_v55 = vld [vmem:[#allocation76_spill] sm:$0xff] }
 0x3c8   : > { %v1316_v47 = vpop.permute.xlu1 %1315 }
 0x3c9   : > { %v2199_v2 = vpack.c.bf16 %v2148_v34, %v2145_v14  ;;  %v1318_v29 = vpop.permute.xlu0 %1317  ;;  %v1832_v17 = vsel %vm1802_vm4, %v1799_v24, %v1316_v47 }
 0x3ca   : > { %2540 = vmatmul.mubr.bf16.gmra.mrb[52].mxu1 %v2195_v50  ;;  %v1833_v40 = vsel %vm1802_vm4, %v1800_v49, %v1318_v29 }
 0x3cb   : > { %2547 = vmatprep.mubr.bf16.mxu1 %v2199_v2  ;;  %v6786_v2 = vld [vmem:[#allocation75_spill] sm:$0xff] }
 0x3cc   : > { %v1444_v62 = vpop.permute.xlu1 %1443 }
 0x3cd   : > { %v1865_v60 = vsel %vm1835_vm5, %v1832_v17, %v1444_v62  ;;  %v1446_v7 = vpop.permute.xlu0 %1445 }
 0x3ce   : > { %v2147_v5 = vmul.f32 %v2051_v26, %v1865_v60  ;;  %v1866_v52 = vsel %vm1835_vm5, %v1833_v40, %v1446_v7 }
 0x3cf   : > { %v2150_v57 = vmul.f32 %v2054_v9, %v1866_v52 }
 0x3d0   : > { %v1736_v8 = vpop.permute.xlu1 %1735  ;;  %v2198_v11 = vpack.c.bf16 %v2147_v5, %v2144_v31 }
 0x3d1   : > { %v1963_v33 = vsel %vm1835_vm5, %v1931_v61, %v1736_v8  ;;  %v6788_v8 = vld [vmem:[#allocation82_spill] sm:$0xff] }
 0x3d2   : > { %v2154_v4 = vmul.f32 %v2058_v39, %v1963_v33  ;;  %2548 = vmatmul.mubr.bf16.gmra.mrb[56].mxu1 %v2198_v11 }
 0x3d4   : > { %v1448_v37 = vpop.permute.xlu1 %1447  ;;  %v2202_v32 = vpack.c.bf16 %v2154_v4, %v2151_v27  ;;  %v6789_v4 = vld [vmem:[#allocation85_spill] sm:$0xff] }
 0x3d5   : > { %v1867_v18 = vsel %vm1835_vm5, %v1834_v15, %v1448_v37 }
 0x3d6   : > { %v2153_v3 = vmul.f32 %v2057_v25, %v1867_v18  ;;  %2555 = vmatprep.mubr.bf16.mxu1 %v2202_v32 }
 0x3d8   : > { %v2201_v63 = vpack.c.bf16 %v2153_v3, %v2150_v57 }
 0x3da   : > { %2556 = vmatmul.mubr.bf16.gmra.mrb[60].mxu1 %v2201_v63 }
 0x435   : > { %v3303_v59 = vpop.f32.mrb[0].mxu1 }
 0x436   : > { %v3304_v48 = vpop.f32.mrb[1].mxu1 }
 0x437   : > { %v3305_v21 = vadd.f32 %v3304_v48, %v3303_v59  ;;  %v3306_v35 = vpop.f32.mrb[2].mxu1 }
 0x438   : > { %v3307_v46 = vpop.f32.mrb[3].mxu1 }
 0x439   : > { %v2438_v43 = vadd.f32 %v3305_v21, %v6201_v13  ;;  %v3308_v42 = vadd.f32 %v3307_v46, %v3306_v35 }
 0x43b   : > { %v6205_v45 = vadd.f32 %v6784_v19, %v2438_v43  ;;  %v2441_v10 = vadd.f32 %v3308_v42, %v6201_v13  ;;  %v6790_v43 = vld [vmem:[#allocation23_spill] sm:$0xff] }
 0x43d   : > { %v2725_v20 = vmax.f32 %v6205_v45, 0.0  ;;  %v2602_v38 = vadd.f32 %v6785_v23, %v2441_v10  ;;  %v3309_v16 = vpop.f32.mrb[4].mxu1  ;;  %v2959_v45 = vld [vmem:[%s6433_s7] sm:$0xff] }
 0x43e   : > { %v3310_v36 = vpop.f32.mrb[5].mxu1 }
 0x43f   : > { %v2726_v53 = vmax.f32 %v2602_v38, 0.0  ;;  %v3311_v12 = vadd.f32 %v3310_v36, %v3309_v16  ;;  %v3312_v6 = vpop.f32.mrb[6].mxu1  ;;  %v6212_v14 = vrot.slane %v2725_v20, 7  ;;  %v6791_v16 = vld [vmem:[#allocation83_spill] sm:$0xff] }
 0x440   : > { %v3313_v30 = vpop.f32.mrb[7].mxu1 }
 0x441   : > { %v2758_v34 = vrot.slane %v2726_v53, 7  ;;  %v2446_v47 = vadd.f32 %v3311_v12, %v6201_v13  ;;  %v3314_v50 = vadd.f32 %v3313_v30, %v3312_v6 }
 0x443   : > { %v2819_v22 = vsel %vm999_vm2, %v6212_v14, %v2758_v34  ;;  %v2607_v28 = vadd.f32 %v6786_v2, %v2446_v47  ;;  %v2449_v29 = vadd.f32 %v3314_v50, %v6201_v13 }
 0x444   : > { %v6220_v24 = vmax.f32 %v2726_v53, %v2819_v22 }
 0x445   : > { %v2727_v58 = vmax.f32 %v2607_v28, 0.0  ;;  %v2610_v26 = vadd.f32 %v6787_v55, %v2449_v29  ;;  %v3315_v17 = vpop.f32.mrb[8].mxu1 }
 0x446   : > { %v3316_v62 = vpop.f32.mrb[9].mxu1 }
 0x447   : > { %v2759_v44 = vrot.slane %v2727_v58, 7  ;;  %v2728_v60 = vmax.f32 %v2610_v26, 0.0  ;;  %v3317_v31 = vadd.f32 %v3316_v62, %v3315_v17  ;;  %v3318_v56 = vpop.f32.mrb[10].mxu1  ;;  %v6792_v62 = vld [vmem:[#allocation91_spill] sm:$0xff] }
 0x448   : > { %v3319_v5 = vpop.f32.mrb[11].mxu1 }
 0x449   : > { %v2818_v0 = vsel %vm999_vm2, %v2758_v34, %v2759_v44  ;;  %v2760_v51 = vrot.slane %v2728_v60, 7  ;;  %v2454_v1 = vadd.f32 %v3317_v31, %v6201_v13  ;;  %v3320_v39 = vadd.f32 %v3319_v5, %v3318_v56 }
 0x44a   : > { %v2823_v61 = vmax.f32 %v2727_v58, %v2818_v0  ;;  %v6793_v0 = vld [vmem:[#allocation94_spill] sm:$0xff] }
 0x44b   : > { %v2817_v7 = vsel %vm999_vm2, %v2759_v44, %v2760_v51  ;;  %v2615_v11 = vadd.f32 %v6788_v8, %v2454_v1  ;;  %v2457_v49 = vadd.f32 %v3320_v39, %v6201_v13 }
 0x44c   : > { %v2855_v33 = vmax.f32 %v2823_v61, %v6220_v24  ;;  %v2824_v27 = vmax.f32 %v2728_v60, %v2817_v7  ;;  %v6255_v7 = vld [vmem:[%s6428_s2] sm:$0xff] }
 0x44d   : > { %v2729_v40 = vmax.f32 %v2615_v11, 0.0  ;;  %v2618_v54 = vadd.f32 %v6789_v4, %v2457_v49  ;;  %v3321_v9 = vpop.f32.mrb[12].mxu1 }
 0x44e   : > { %v2856_v52 = vmax.f32 %v2824_v27, %v2823_v61  ;;  %v3322_v25 = vpop.f32.mrb[13].mxu1 }
 0x44f   : > { %v2761_v15 = vrot.slane %v2729_v40, 7  ;;  %v2730_v37 = vmax.f32 %v2618_v54, 0.0  ;;  %v3323_v32 = vadd.f32 %v3322_v25, %v3321_v9  ;;  %v3324_v18 = vpop.f32.mrb[14].mxu1 }
 0x450   : > { %v3325_v57 = vpop.f32.mrb[15].mxu1  ;;  %v6232_v3 = vpack.c.bf16 %v2856_v52, %v2855_v33 }
 0x451   : > { %v2816_v63 = vsel %vm999_vm2, %v2760_v51, %v2761_v15  ;;  %v2762_v59 = vrot.slane %v2730_v37, 7  ;;  %v2462_v48 = vadd.f32 %v3323_v32, %v6201_v13  ;;  %v3326_v21 = vadd.f32 %v3325_v57, %v3324_v18  ;;  %v6794_v32 = vld [vmem:[#allocation90_spill] sm:$0xff] }
 0x452   : > { %v2825_v35 = vmax.f32 %v2729_v40, %v2816_v63 }
 0x453   : > { %v2815_v46 = vsel %vm999_vm2, %v2761_v15, %v2762_v59  ;;  %v2623_v42 = vadd.f32 %v6790_v43, %v2462_v48  ;;  %v2465_v19 = vadd.f32 %v3326_v21, %v6201_v13  ;;  %v6795_v21 = vld [vmem:[#allocation92_spill] sm:$0xff] }
 0x454   : > { %v2857_v10 = vmax.f32 %v2825_v35, %v2824_v27  ;;  %v2826_v23 = vmax.f32 %v2730_v37, %v2815_v46  ;;  %v2887_v27 = vcombine.high %v6255_v7, %v6255_v7 }
 0x455   : > { %v2731_v38 = vmax.f32 %v2623_v42, 0.0  ;;  %v2626_v36 = vadd.f32 %v6791_v16, %v2465_v19  ;;  %v3327_v53 = vpop.f32.mrb[16].mxu1 }
 0x456   : > { %v2858_v12 = vmax.f32 %v2826_v23, %v2825_v35  ;;  %v3328_v6 = vpop.f32.mrb[17].mxu1  ;;  %2953 = vmatprep.mubr.f32.mxu0 %v2887_v27  ;;  %v6798_v27 = vld [vmem:[#allocation100_spill] sm:$0xff] }
 0x457   : > { %v2763_v30 = vrot.slane %v2731_v38, 7  ;;  %v2732_v34 = vmax.f32 %v2626_v36, 0.0  ;;  %v3329_v47 = vadd.f32 %v3328_v6, %v3327_v53  ;;  %v3330_v50 = vpop.f32.mrb[18].mxu1 }
 0x458   : > { %v3331_v22 = vpop.f32.mrb[19].mxu1  ;;  %v6242_v2 = vpack.c.bf16 %v2858_v12, %v2857_v10 }
 0x459   : > { %v2814_v28 = vsel %vm999_vm2, %v2762_v59, %v2763_v30  ;;  %v2764_v29 = vrot.slane %v2732_v34, 7  ;;  %v2470_v58 = vadd.f32 %v3329_v47, %v6201_v13  ;;  %v3332_v55 = vadd.f32 %v3331_v22, %v3330_v50  ;;  %v6796_v50 = vld [vmem:[#allocation101_spill] sm:$0xff] }
 0x45a   : > { %v2827_v26 = vmax.f32 %v2731_v38, %v2814_v28 }
 0x45b   : > { %v2813_v17 = vsel %vm999_vm2, %v2763_v30, %v2764_v29  ;;  %v2631_v44 = vadd.f32 %v6792_v62, %v2470_v58  ;;  %v2473_v60 = vadd.f32 %v3332_v55, %v6201_v13 }
 0x45c   : > { %v2859_v31 = vmax.f32 %v2827_v26, %v2826_v23  ;;  %v2828_v56 = vmax.f32 %v2732_v34, %v2813_v17 }
 0x45d   : > { %v2733_v5 = vmax.f32 %v2631_v44, 0.0  ;;  %v2634_v51 = vadd.f32 %v6793_v0, %v2473_v60  ;;  %v3333_v1 = vpop.f32.mrb[20].mxu1 }
 0x45e   : > { %v2860_v39 = vmax.f32 %v2828_v56, %v2827_v26  ;;  %v3334_v61 = vpop.f32.mrb[21].mxu1  ;;  %v6797_v26 = vld [vmem:[#allocation104_spill] sm:$0xff] }
 0x45f   : > { %v2765_v8 = vrot.slane %v2733_v5, 7  ;;  %v2734_v11 = vmax.f32 %v2634_v51, 0.0  ;;  %v3335_v49 = vadd.f32 %v3334_v61, %v3333_v1  ;;  %v3336_v33 = vpop.f32.mrb[22].mxu1 }
 0x460   : > { %v3337_v40 = vpop.f32.mrb[23].mxu1  ;;  %v6259_v4 = vpack.c.bf16 %v2860_v39, %v2859_v31 }
 0x461   : > { %v2812_v54 = vsel %vm999_vm2, %v2764_v29, %v2765_v8  ;;  %v2766_v9 = vrot.slane %v2734_v11, 7  ;;  %v2478_v52 = vadd.f32 %v3335_v49, %v6201_v13  ;;  %v3338_v25 = vadd.f32 %v3337_v40, %v3336_v33 }
 0x462   : > { %v2829_v15 = vmax.f32 %v2733_v5, %v2812_v54 }
 0x463   : > { %v2811_v37 = vsel %vm999_vm2, %v2765_v8, %v2766_v9  ;;  %v2639_v18 = vadd.f32 %v6794_v32, %v2478_v52  ;;  %v2481_v57 = vadd.f32 %v3338_v25, %v6201_v13 }
 0x464   : > { %v2861_v63 = vmax.f32 %v2829_v15, %v2828_v56  ;;  %v2830_v59 = vmax.f32 %v2734_v11, %v2811_v37 }
 0x465   : > { %v2735_v48 = vmax.f32 %v2639_v18, 0.0  ;;  %v2642_v35 = vadd.f32 %v6795_v21, %v2481_v57  ;;  %v3339_v46 = vpop.f32.mrb[24].mxu1 }
 0x466   : > { %v2862_v43 = vmax.f32 %v2830_v59, %v2829_v15  ;;  %v3340_v42 = vpop.f32.mrb[25].mxu1  ;;  %v6799_v15 = vld [vmem:[#allocation102_spill] sm:$0xff] }
 0x467   : > { %v2767_v19 = vrot.slane %v2735_v48, 7  ;;  %v2736_v10 = vmax.f32 %v2642_v35, 0.0  ;;  %v3341_v23 = vadd.f32 %v3340_v42, %v3339_v46  ;;  %v3342_v38 = vpop.f32.mrb[26].mxu1 }
 0x468   : > { %v3343_v16 = vpop.f32.mrb[27].mxu1  ;;  %v6269_v36 = vpack.c.bf16 %v2862_v43, %v2861_v63 }
 0x469   : > { %v2810_v53 = vsel %vm999_vm2, %v2766_v9, %v2767_v19  ;;  %v2768_v12 = vrot.slane %v2736_v10, 7  ;;  %v2486_v6 = vadd.f32 %v3341_v23, %v6201_v13  ;;  %v3344_v30 = vadd.f32 %v3343_v16, %v3342_v38  ;;  %v6800_v16 = vld [vmem:[#allocation110_spill] sm:$0xff] }
 0x46a   : > { %v2831_v34 = vmax.f32 %v2735_v48, %v2810_v53 }
 0x46b   : > { %v2809_v47 = vsel %vm999_vm2, %v2767_v19, %v2768_v12  ;;  %v2647_v22 = vadd.f32 %v6796_v50, %v2486_v6  ;;  %v2489_v28 = vadd.f32 %v3344_v30, %v6201_v13 }
 0x46c   : > { %v2863_v29 = vmax.f32 %v2831_v34, %v2830_v59  ;;  %v2832_v58 = vmax.f32 %v2736_v10, %v2809_v47  ;;  %v6801_v47 = vld [vmem:[#allocation113_spill] sm:$0xff] }
 0x46d   : > { %v2737_v55 = vmax.f32 %v2647_v22, 0.0  ;;  %v2650_v17 = vadd.f32 %v6797_v26, %v2489_v28  ;;  %v3345_v62 = vpop.f32.mrb[28].mxu1 }
 0x46e   : > { %v2864_v44 = vmax.f32 %v2832_v58, %v2831_v34  ;;  %v3346_v60 = vpop.f32.mrb[29].mxu1 }
 0x46f   : > { %v2769_v31 = vrot.slane %v2737_v55, 7  ;;  %v2738_v56 = vmax.f32 %v2650_v17, 0.0  ;;  %v3347_v5 = vadd.f32 %v3346_v60, %v3345_v62  ;;  %v3348_v0 = vpop.f32.mrb[30].mxu1 }
 0x470   : > { %v3349_v51 = vpop.f32.mrb[31].mxu1  ;;  %v6279_v1 = vpack.c.bf16 %v2864_v44, %v2863_v29 }
 0x471   : > { %v2808_v39 = vsel %vm999_vm2, %v2768_v12, %v2769_v31  ;;  %v2770_v61 = vrot.slane %v2738_v56, 7  ;;  %v2494_v8 = vadd.f32 %v3347_v5, %v6201_v13  ;;  %v3350_v11 = vadd.f32 %v3349_v51, %v3348_v0 }
 0x472   : > { %v2833_v49 = vmax.f32 %v2737_v55, %v2808_v39  ;;  %v6802_v39 = vld [vmem:[#allocation109_spill] sm:$0xff] }
 0x473   : > { %v2807_v33 = vsel %vm999_vm2, %v2769_v31, %v2770_v61  ;;  %v2655_v40 = vadd.f32 %v6798_v27, %v2494_v8  ;;  %v2497_v54 = vadd.f32 %v3350_v11, %v6201_v13  ;;  %v6803_v27 = vld [vmem:[#allocation111_spill] sm:$0xff] }
 0x474   : > { %v2865_v9 = vmax.f32 %v2833_v49, %v2832_v58  ;;  %v2834_v52 = vmax.f32 %v2738_v56, %v2807_v33 }
 0x475   : > { %v2739_v25 = vmax.f32 %v2655_v40, 0.0  ;;  %v2658_v37 = vadd.f32 %v6799_v15, %v2497_v54  ;;  %v3351_v32 = vpop.f32.mrb[32].mxu1 }
 0x476   : > { %v2866_v18 = vmax.f32 %v2834_v52, %v2833_v49  ;;  %v3352_v57 = vpop.f32.mrb[33].mxu1 }
 0x477   : > { %v2771_v63 = vrot.slane %v2739_v25, 7  ;;  %v2740_v59 = vmax.f32 %v2658_v37, 0.0  ;;  %v3353_v48 = vadd.f32 %v3352_v57, %v3351_v32  ;;  %v3354_v21 = vpop.f32.mrb[34].mxu1 }
 0x478   : > { %v3355_v35 = vpop.f32.mrb[35].mxu1  ;;  %v6289_v46 = vpack.c.bf16 %v2866_v18, %v2865_v9 }
 0x479   : > { %v2806_v43 = vsel %vm999_vm2, %v2770_v61, %v2771_v63  ;;  %v2772_v42 = vrot.slane %v2740_v59, 7  ;;  %v2502_v19 = vadd.f32 %v3353_v48, %v6201_v13  ;;  %v3356_v10 = vadd.f32 %v3355_v35, %v3354_v21 }
 0x47a   : > { %v2835_v23 = vmax.f32 %v2739_v25, %v2806_v43 }
 0x47b   : > { %v2805_v38 = vsel %vm999_vm2, %v2771_v63, %v2772_v42  ;;  %v2663_v53 = vadd.f32 %v6800_v16, %v2502_v19  ;;  %v2505_v12 = vadd.f32 %v3356_v10, %v6201_v13 }
 0x47c   : > { %v2867_v6 = vmax.f32 %v2835_v23, %v2834_v52  ;;  %v2836_v30 = vmax.f32 %v2740_v59, %v2805_v38 }
 0x47d   : > { %v2741_v34 = vmax.f32 %v2663_v53, 0.0  ;;  %v2666_v50 = vadd.f32 %v6801_v47, %v2505_v12  ;;  %v3357_v22 = vpop.f32.mrb[36].mxu1  ;;  %v6805_v53 = vld [vmem:[#allocation122_spill] sm:$0xff] }
 0x47e   : > { %v2868_v28 = vmax.f32 %v2836_v30, %v2835_v23  ;;  %v3358_v29 = vpop.f32.mrb[37].mxu1 }
 0x47f   : > { %v2773_v58 = vrot.slane %v2741_v34, 7  ;;  %v2742_v55 = vmax.f32 %v2666_v50, 0.0  ;;  %v3359_v26 = vadd.f32 %v3358_v29, %v3357_v22  ;;  %v3360_v17 = vpop.f32.mrb[38].mxu1 }
 0x480   : > { %v3361_v62 = vpop.f32.mrb[39].mxu1  ;;  %v6299_v44 = vpack.c.bf16 %v2868_v28, %v2867_v6 }
 0x481   : > { %v2804_v60 = vsel %vm999_vm2, %v2772_v42, %v2773_v58  ;;  %v2774_v31 = vrot.slane %v2742_v55, 7  ;;  %v2510_v56 = vadd.f32 %v3359_v26, %v6201_v13  ;;  %v3362_v5 = vadd.f32 %v3361_v62, %v3360_v17  ;;  %v6804_v42 = vld [vmem:[#allocation119_spill] sm:$0xff] }
 0x482   : > { %v2837_v0 = vmax.f32 %v2741_v34, %v2804_v60 }
 0x483   : > { %v2803_v51 = vsel %vm999_vm2, %v2773_v58, %v2774_v31  ;;  %v2671_v61 = vadd.f32 %v6802_v39, %v2510_v56  ;;  %v2513_v8 = vadd.f32 %v3362_v5, %v6201_v13  ;;  %v6806_v56 = vld [vmem:[#allocation118_spill] sm:$0xff] }
 0x484   : > { %v2838_v11 = vmax.f32 %v2742_v55, %v2803_v51  ;;  %v2869_v49 = vmax.f32 %v2837_v0, %v2836_v30 }
 0x485   : > { %v2743_v33 = vmax.f32 %v2671_v61, 0.0  ;;  %v2674_v40 = vadd.f32 %v6803_v27, %v2513_v8  ;;  %v3363_v54 = vpop.f32.mrb[40].mxu1  ;;  %v6807_v8 = vld [vmem:[#allocation120_spill] sm:$0xff] }
 0x486   : > { %v3364_v9 = vpop.f32.mrb[41].mxu1  ;;  %v2870_v52 = vmax.f32 %v2838_v11, %v2837_v0 }
 0x487   : > { %v2775_v25 = vrot.slane %v2743_v33, 7  ;;  %v2744_v15 = vmax.f32 %v2674_v40, 0.0  ;;  %v3365_v37 = vadd.f32 %v3364_v9, %v3363_v54  ;;  %v3366_v32 = vpop.f32.mrb[42].mxu1 }
 0x488   : > { %v3367_v18 = vpop.f32.mrb[43].mxu1  ;;  %v3561_v57 = vpack.c.bf16 %v2870_v52, %v2869_v49 }
 0x489   : > { %v2802_v63 = vsel %vm999_vm2, %v2774_v31, %v2775_v25  ;;  %v2776_v59 = vrot.slane %v2744_v15, 7  ;;  %v2518_v48 = vadd.f32 %v3365_v37, %v6201_v13  ;;  %v3368_v21 = vadd.f32 %v3367_v18, %v3366_v32 }
 0x48a   : > { %v2839_v35 = vmax.f32 %v2743_v33, %v2802_v63  ;;  %3562 = vmatprep.subr.bf16.mxu0 %v3561_v57 }
 0x48b   : > { %v2801_v43 = vsel %vm999_vm2, %v2775_v25, %v2776_v59  ;;  %v2679_v19 = vadd.f32 %v6804_v42, %v2518_v48  ;;  %v2521_v10 = vadd.f32 %v3368_v21, %v6201_v13  ;;  %v6808_v48 = vld [vmem:[#allocation127_spill] sm:$0xff] }
 0x48c   : > { %v2840_v23 = vmax.f32 %v2744_v15, %v2801_v43  ;;  %v2871_v38 = vmax.f32 %v2839_v35, %v2838_v11 }
 0x48d   : > { %v2745_v16 = vmax.f32 %v2679_v19, 0.0  ;;  %v2682_v12 = vadd.f32 %v6805_v53, %v2521_v10  ;;  %v3369_v6 = vpop.f32.mrb[44].mxu1  ;;  %v6809_v10 = vld [vmem:[#allocation129_spill] sm:$0xff] }
 0x48e   : > { %v3370_v30 = vpop.f32.mrb[45].mxu1  ;;  %v2872_v34 = vmax.f32 %v2840_v23, %v2839_v35 }
 0x48f   : > { %v2777_v47 = vrot.slane %v2745_v16, 7  ;;  %v2746_v50 = vmax.f32 %v2682_v12, 0.0  ;;  %v3371_v22 = vadd.f32 %v3370_v30, %v3369_v6  ;;  %v3372_v28 = vpop.f32.mrb[46].mxu1 }
 0x490   : > { %v3373_v29 = vpop.f32.mrb[47].mxu1  ;;  %v6317_v58 = vpack.c.bf16 %v2872_v34, %v2871_v38 }
 0x491   : > { %v2800_v55 = vsel %vm999_vm2, %v2776_v59, %v2777_v47  ;;  %v2778_v26 = vrot.slane %v2746_v50, 7  ;;  %v2526_v17 = vadd.f32 %v3371_v22, %v6201_v13  ;;  %v3374_v62 = vadd.f32 %v3373_v29, %v3372_v28 }
 0x492   : > { %v2841_v60 = vmax.f32 %v2745_v16, %v2800_v55 }
 0x493   : > { %v2799_v31 = vsel %vm999_vm2, %v2777_v47, %v2778_v26  ;;  %v2687_v5 = vadd.f32 %v6806_v56, %v2526_v17  ;;  %v2529_v0 = vadd.f32 %v3374_v62, %v6201_v13  ;;  %v6810_v62 = vld [vmem:[#allocation126_spill] sm:$0xff] }
 0x494   : > { %v2842_v51 = vmax.f32 %v2746_v50, %v2799_v31  ;;  %v2873_v39 = vmax.f32 %v2841_v60, %v2840_v23 }
 0x495   : > { %v2747_v61 = vmax.f32 %v2687_v5, 0.0  ;;  %v2690_v11 = vadd.f32 %v6807_v8, %v2529_v0  ;;  %v3375_v49 = vpop.f32.mrb[48].mxu1 }
 0x496   : > { %v3376_v33 = vpop.f32.mrb[49].mxu1  ;;  %v2874_v27 = vmax.f32 %v2842_v51, %v2841_v60 }
 0x497   : > { %v2779_v40 = vrot.slane %v2747_v61, 7  ;;  %v2748_v54 = vmax.f32 %v2690_v11, 0.0  ;;  %v3377_v9 = vadd.f32 %v3376_v33, %v3375_v49  ;;  %v3378_v52 = vpop.f32.mrb[50].mxu1 }
 0x498   : > { %v3379_v25 = vpop.f32.mrb[51].mxu1  ;;  %v6327_v15 = vpack.c.bf16 %v2874_v27, %v2873_v39 }
 0x499   : > { %v2798_v37 = vsel %vm999_vm2, %v2778_v26, %v2779_v40  ;;  %v2780_v32 = vrot.slane %v2748_v54, 7  ;;  %v2534_v18 = vadd.f32 %v3377_v9, %v6201_v13  ;;  %v3380_v57 = vadd.f32 %v3379_v25, %v3378_v52 }
 0x49a   : > { %v2843_v63 = vmax.f32 %v2747_v61, %v2798_v37 }
 0x49b   : > { %v2797_v59 = vsel %vm999_vm2, %v2779_v40, %v2780_v32  ;;  %v2695_v21 = vadd.f32 %v6808_v48, %v2534_v18  ;;  %v2537_v35 = vadd.f32 %v3380_v57, %v6201_v13 }
 0x49c   : > { %v2844_v43 = vmax.f32 %v2748_v54, %v2797_v59  ;;  %v2875_v42 = vmax.f32 %v2843_v63, %v2842_v51  ;;  %v6811_v51 = vld [vmem:[#allocation128_spill] sm:$0xff] }
 0x49d   : > { %v2749_v19 = vmax.f32 %v2695_v21, 0.0  ;;  %v2698_v23 = vadd.f32 %v6809_v10, %v2537_v35  ;;  %v3381_v38 = vpop.f32.mrb[52].mxu1 }
 0x49e   : > { %v3382_v16 = vpop.f32.mrb[53].mxu1  ;;  %v2876_v53 = vmax.f32 %v2844_v43, %v2843_v63  ;;  %v6812_v63 = vld [vmem:[#allocation134_spill] sm:$0xff] }
 0x49f   : > { %v2781_v12 = vrot.slane %v2749_v19, 7  ;;  %v2750_v6 = vmax.f32 %v2698_v23, 0.0  ;;  %v3383_v30 = vadd.f32 %v3382_v16, %v3381_v38  ;;  %v3384_v34 = vpop.f32.mrb[54].mxu1 }
 0x4a0   : > { %v3385_v47 = vpop.f32.mrb[55].mxu1  ;;  %v6337_v50 = vpack.c.bf16 %v2876_v53, %v2875_v42  ;;  %v6813_v42 = vld [vmem:[#allocation137_spill] sm:$0xff] }
 0x4a1   : > { %v2796_v22 = vsel %vm999_vm2, %v2780_v32, %v2781_v12  ;;  %v2782_v28 = vrot.slane %v2750_v6, 7  ;;  %v2542_v29 = vadd.f32 %v3383_v30, %v6201_v13  ;;  %v3386_v55 = vadd.f32 %v3385_v47, %v3384_v34 }
 0x4a2   : > { %v2845_v26 = vmax.f32 %v2749_v19, %v2796_v22 }
 0x4a3   : > { %v2795_v17 = vsel %vm999_vm2, %v2781_v12, %v2782_v28  ;;  %v2703_v60 = vadd.f32 %v6810_v62, %v2542_v29  ;;  %v2545_v31 = vadd.f32 %v3386_v55, %v6201_v13 }
 0x4a4   : > { %v2846_v56 = vmax.f32 %v2750_v6, %v2795_v17  ;;  %v2877_v5 = vmax.f32 %v2845_v26, %v2844_v43  ;;  %v6814_v17 = vld [vmem:[#allocation133_spill] sm:$0xff] }
 0x4a5   : > { %v2751_v0 = vmax.f32 %v2703_v60, 0.0  ;;  %v2706_v39 = vadd.f32 %v6811_v51, %v2545_v31  ;;  %v3387_v61 = vpop.f32.mrb[56].mxu1 }
 0x4a6   : > { %v3388_v8 = vpop.f32.mrb[57].mxu1  ;;  %v2878_v11 = vmax.f32 %v2846_v56, %v2845_v26 }
 0x4a7   : > { %v2783_v49 = vrot.slane %v2751_v0, 7  ;;  %v2752_v33 = vmax.f32 %v2706_v39, 0.0  ;;  %v3389_v27 = vadd.f32 %v3388_v8, %v3387_v61  ;;  %v3390_v40 = vpop.f32.mrb[58].mxu1 }
 0x4a8   : > { %v3391_v54 = vpop.f32.mrb[59].mxu1  ;;  %v3577_v9 = vpack.c.bf16 %v2878_v11, %v2877_v5 }
 0x4a9   : > { %v2794_v52 = vsel %vm999_vm2, %v2782_v28, %v2783_v49  ;;  %v2784_v25 = vrot.slane %v2752_v33, 7  ;;  %v2550_v37 = vadd.f32 %v3389_v27, %v6201_v13  ;;  %v3392_v32 = vadd.f32 %v3391_v54, %v3390_v40 }
 0x4aa   : > { %v2847_v18 = vmax.f32 %v2751_v0, %v2794_v52  ;;  %v6815_v0 = vld [vmem:[#allocation135_spill] sm:$0xff] }
 0x4ab   : > { %v2793_v57 = vsel %vm999_vm2, %v2783_v49, %v2784_v25  ;;  %v2711_v59 = vadd.f32 %v6812_v63, %v2550_v37  ;;  %v2553_v48 = vadd.f32 %v3392_v32, %v6201_v13 }
 0x4ac   : > { %v2848_v21 = vmax.f32 %v2752_v33, %v2793_v57  ;;  %v2879_v35 = vmax.f32 %v2847_v18, %v2846_v56 }
 0x4ad   : > { %v2753_v43 = vmax.f32 %v2711_v59, 0.0  ;;  %v2714_v19 = vadd.f32 %v6813_v42, %v2553_v48  ;;  %v3393_v10 = vpop.f32.mrb[60].mxu1  ;;  %v3049_v48 = vld [vmem:[#allocation2] sm:$0x1] }
 0x4ae   : > { %v3394_v23 = vpop.f32.mrb[61].mxu1  ;;  %v2880_v38 = vmax.f32 %v2848_v21, %v2847_v18 }
 0x4af   : > { %v2785_v16 = vrot.slane %v2753_v43, 7  ;;  %v2754_v53 = vmax.f32 %v2714_v19, 0.0  ;;  %v3395_v12 = vadd.f32 %v3394_v23, %v3393_v10  ;;  %v3396_v6 = vpop.f32.mrb[62].mxu1  ;;  %v3048_v23 = vld [vmem:[%s6435_s9] sm:$0x1] }
 0x4b0   : > { %v3397_v30 = vpop.f32.mrb[63].mxu1  ;;  %v3581_v34 = vpack.c.bf16 %v2880_v38, %v2879_v35  ;;  %v3262_v35 = vld [vmem:[%s6434_s8] ss:$0 sm:$0xff]  ;;  %v3057_v38 = vsub.s32 0, %v4226_v41 }
 0x4b1   : > { %v2792_v47 = vsel %vm999_vm2, %v2784_v25, %v2785_v16  ;;  %v2786_v22 = vrot.slane %v2754_v53, 7  ;;  %v2558_v28 = vadd.f32 %v3395_v12, %v6201_v13  ;;  %v3398_v29 = vadd.f32 %v3397_v30, %v3396_v6 }
 0x4b2   : > { %v2849_v55 = vmax.f32 %v2753_v43, %v2792_v47 }
 0x4b3   : > { %v2791_v26 = vsel %vm999_vm2, %v2785_v16, %v2786_v22  ;;  %v2719_v62 = vadd.f32 %v6814_v17, %v2558_v28  ;;  %v2561_v60 = vadd.f32 %v3398_v29, %v6201_v13 }
 0x4b4   : > { %v2850_v31 = vmax.f32 %v2754_v53, %v2791_v26  ;;  %v2881_v56 = vmax.f32 %v2849_v55, %v2848_v21  ;;  %v3673_v21 = vmov 0  }
 0x4b5   : > { %v2755_v5 = vmax.f32 %v2719_v62, 0.0  ;;  %v2722_v51 = vadd.f32 %v6815_v0, %v2561_v60  ;;  %3620 = vset.pattern.permute.xlu0 %v3673_v21 }
 0x4b6   : > { %v2882_v39 = vmax.f32 %v2850_v31, %v2849_v55  ;;  %3052 = vperm.xlu0 %3620, %v3049_v48  }
 0x4b7   : > { %v2787_v61 = vrot.slane %v2755_v5, 7  ;;  %v2756_v8 = vmax.f32 %v2722_v51, 0.0 }
 0x4b8   : > { %v3585_v11 = vpack.c.bf16 %v2882_v39, %v2881_v56 }
 0x4b9   : > { %v2790_v49 = vsel %vm999_vm2, %v2786_v22, %v2787_v61  ;;  %v2788_v33 = vrot.slane %v2756_v8, 7 }
 0x4ba   : > { %v2851_v27 = vmax.f32 %v2755_v5, %v2790_v49 }
 0x4bb   : > { %v2789_v40 = vsel %vm999_vm2, %v2787_v61, %v2788_v33  ;;  %v2820_v13 = vsel %vm999_vm2, %v2788_v33, %v6212_v14 }
 0x4bc   : > { %v2821_v54 = vmax.f32 %v2725_v20, %v2820_v13  ;;  %v2852_v52 = vmax.f32 %v2756_v8, %v2789_v40  ;;  %v2883_v25 = vmax.f32 %v2851_v27, %v2850_v31  ;;  %v2960_v20 = vld [vmem:[%s6433_s7 + $0x8] sm:$0xff] }
 0x4bd   : > { %v3594_v14 = vpack.c.bf16 %v2960_v20, %v2959_v45 }
 0x4be   : > { %v2853_v37 = vmax.f32 %v2821_v54, %v2852_v52  ;;  %v2854_v32 = vmax.f32 %v6220_v24, %v2821_v54  ;;  %v2884_v18 = vmax.f32 %v2852_v52, %v2851_v27  ;;  %v3670_v24 = vmov 0.0|0.0  }
 0x4c0   : > { %v3563_v57 = vpack.c.bf16 %v2854_v32, %v2853_v37  ;;  %v3589_v63 = vpack.c.bf16 %v2884_v18, %v2883_v25 }
 0x4c2   : > { %3564 = vmatpush3.bf16.msra.mxu0 %v3563_v57 }
 0x4c3   : > { %3566 = vmatprep.subr.bf16.mxu0 %v6317_v58 }
 0x4c6   : > { %3568 = vmatpush3.bf16.msra.mxu0 %v6232_v3  ;;  %v2961_v3 = vld [vmem:[%s6433_s7 + $0x10] sm:$0xff] }
 0x4c7   : > { %3570 = vmatprep.subr.bf16.mxu0 %v6327_v15  ;;  %v3672_v15 = vmov 0.0  }
 0x4ca   : > { %3572 = vmatpush3.bf16.msra.mxu0 %v6242_v2  ;;  %v2962_v2 = vld [vmem:[%s6433_s7 + $0x18] sm:$0xff] }
 0x4cb   : > { %3574 = vmatprep.subr.bf16.mxu0 %v6337_v50 }
 0x4ce   : > { %3576 = vmatpush3.bf16.msra.mxu0 %v6259_v4  ;;  %v3597_v4 = vpack.c.bf16 %v2962_v2, %v2961_v3 }
 0x4cf   : > { %3578 = vmatprep.subr.bf16.mxu0 %v3577_v9 }
 0x4d2   : > { %3580 = vmatpush3.bf16.msra.mxu0 %v6269_v36  ;;  %v2963_v36 = vld [vmem:[%s6433_s7 + $0x20] sm:$0xff] }
 0x4d3   : > { %3582 = vmatprep.subr.bf16.mxu0 %v3581_v34 }
 0x4d6   : > { %3584 = vmatpush3.bf16.msra.mxu0 %v6279_v1  ;;  %v2964_v1 = vld [vmem:[%s6433_s7 + $0x28] sm:$0xff] }
 0x4d7   : > { %3586 = vmatprep.subr.bf16.mxu0 %v3585_v11 }
 0x4da   : > { %3588 = vmatpush3.bf16.msra.mxu0 %v6289_v46  ;;  %v3600_v46 = vpack.c.bf16 %v2964_v1, %v2963_v36 }
 0x4db   : > { %3590 = vmatprep.subr.bf16.mxu0 %v3589_v63 }
 0x4de   : > { %3592 = vmatpush3.bf16.msra.mxu0 %v6299_v44  ;;  %v2966_v44 = vld [vmem:[%s6433_s7 + $0x38] sm:$0xff] }
 0x4df   : > { %3593 = vmatprep.subr.bf16.mxu0 %v3670_v24 }
 0x4e1   : > { %2954 = vmatmul.mubr.f32.vlgmr.msra.gmra.mrb[64].mxu0 %v6255_v7  ;;  %v2965_v7 = vld [vmem:[%s6433_s7 + $0x30] sm:$0xff] }
 0x4e2   : > { %3595 = vmatpush3.bf16.msra.mxu0 %v3594_v14  ;;  %v3603_v58 = vpack.c.bf16 %v2966_v44, %v2965_v7  ;;  %3553 = vmatprep.mubr.msk.f32.mxu0 %vm3671_vm6, %v3672_v15 }
 0x4e3   : > { %3596 = vmatprep.subr.bf16.mxu0 %v3670_v24 }
 0x4e6   : > { %3598 = vmatpush3.bf16.msra.mxu0 %v3597_v4 }
 0x4e7   : > { %3599 = vmatprep.subr.bf16.mxu0 %v3670_v24 }
 0x4ea   : > { %3601 = vmatpush3.bf16.msra.mxu0 %v3600_v46 }
 0x4eb   : > { %3602 = vmatprep.subr.bf16.mxu0 %v3670_v24 }
 0x4ee   : > { %3604 = vmatpush3.bf16.msra.mxu0 %v3603_v58 }
 0x4ef   : > { %3556 = vmatprep.subr.mxu0 %v3672_v15 }
 0x535   : > { %v3053_v16 = vpop.permute.xlu0 %3052 }
 0x536   : > { %v3058_v53 = vrot.slane %v3053_v16, %v3057_v38 }
 0x5b4   : > { %v3449_v50 = vpop.f32.mrb[64].mxu0 }
 0x5b5   : > { %v3450_v9 = vpop.f32.mrb[65].mxu0 }
 0x5b6   : > { %v3451_v59 = vadd.f32 %v3450_v9, %v3449_v50 }
 0x5b8   : > { %3554 = vmatmul.mubr.msk.f32.vlgmr.msra.gmra.mrb[66].mxu0 %vm1802_vm4, %v3451_v59 }
 0x5b9   : > { %3558 = vmatprep.mubr.msk.f32.mxu0 %vm3671_vm6, %v3672_v15 }
 0x68b   : > { %v3043_v43 = vpop.f32.mrb[66].mxu0 }
 0x68c   : > { %v3044_v42 = vadd.f32 %v3262_v35, %v3043_v43  ;;  %v3555_v19 = vpop.f32.mrb[67].mxu0 }
 0x68e   : > { %v3047_v10 = vmax.f32 %v3044_v42, 0.0 }
 0x690   : > { %3557 = vmatpush3.xpose.msk.msra.mxu0 %vm1802_vm4, %v3047_v10 }
 0x693   : > { %3559 = vmatmul.mubr.msk.f32.vlgmr.msra.gmra.mrb[68].mxu0 %vm1802_vm4, %v3048_v23 }
 0x766   : > { %v3131_v12 = vpop.f32.mrb[68].mxu0 }
 0x767   : > { %v3132_v6 = vadd.f32 %v3131_v12, %v3058_v53  ;;  %v3560_v30 = vpop.f32.mrb[69].mxu0 }
 0x769   : > { %3136 = vst.msk [vmem:[%s386_s24] sm:$0x1] %vm3135_vm7, %v3132_v6 }
 0x76a PF: > { %s23_s19 = sadd.s32 1, %s3665_s19  }
 0x76b   : > { %p20_p5 = scmp.ge.s32.totalorder %s23_s19, 4  }
 0x76d   :  { %22 = sbr.rel (!%p20_p5) target bundleno = 3 (0x3), region = 94 }

</bundles_post_ra>
